<compile_context>
chip_gen: v7x
topology: tpu7x:2x2x1
jax: 0.10.0
libtpu: 0.0.40
codegen_flags: <defaults>
</compile_context>

<pallas_src>
import math
from functools import partial

import jax
import jax.numpy as jnp
from jax.experimental import pallas as pl
from jax.experimental.pallas import tpu as pltpu


# ----------------------------- in-kernel helpers -----------------------------

def _layer_norm_f32(x, w, eps=1e-5):
    # F.layer_norm over last dim (no bias), then * weight (matches LayerNorm module).
    mu = jnp.mean(x, axis=-1, keepdims=True)
    var = jnp.mean((x - mu) ** 2, axis=-1, keepdims=True)
    return (x - mu) * jax.lax.rsqrt(var + eps) * w


def _gelu_tanh(x):
    # GELU(approximate='tanh')
    c = math.sqrt(2.0 / math.pi)
    return 0.5 * x * (1.0 + jnp.tanh(c * (x + 0.044715 * x * x * x)))


# --------------------------------- kernel ------------------------------------

def ddit_block_kernel(
    x_ref, c_ref, cos_ref, sin_ref,
    ln1_w_ref, qkv_w_ref, wo_ref,
    ln2_w_ref, w1_ref, b1_ref, w2_ref, b2_ref,
    ada_w_ref, ada_b_ref,
    o_ref,
    *, n_heads, head_dim,
):
    f32 = jnp.float32
    bf16 = jnp.bfloat16
    D = n_heads * head_dim
    hd2 = head_dim // 2

    x = x_ref[0].astype(f32)            # (S, D)
    S = x.shape[0]
    cond = c_ref[0]                     # (1, cond_dim)
    cos = cos_ref[...]                  # (S, D), f32, tiled per head [cos | cos]
    sin = sin_ref[...]                  # (S, D), f32, sign baked: per head [-sin | +sin]

    # --- adaLN modulation -> six (1, D) rows broadcast over the sequence axis ---
    mod = jnp.dot(cond.astype(bf16), ada_w_ref[...],
                  preferred_element_type=f32) + ada_b_ref[...]          # (1, 6D)
    shift_msa = mod[:, 0 * D:1 * D]
    one_p_scale_msa = 1.0 + mod[:, 1 * D:2 * D]     # hoisted (1 + scale)
    gate_msa = mod[:, 2 * D:3 * D]
    shift_mlp = mod[:, 3 * D:4 * D]
    one_p_scale_mlp = 1.0 + mod[:, 4 * D:5 * D]
    gate_mlp = mod[:, 5 * D:6 * D]

    x_skip = x

    # --- attention branch ---
    xm = _layer_norm_f32(x, ln1_w_ref[...]) * one_p_scale_msa + shift_msa   # f32 (S, D)

    # Fused QKV: one large-N MXU pass, bf16 operands, f32 accumulation.
    qkv = jnp.dot(xm.astype(bf16), qkv_w_ref[...], preferred_element_type=f32)  # (S, 3D)
    q = qkv[:, 0 * D:1 * D]
    k = qkv[:, 1 * D:2 * D]
    v = qkv[:, 2 * D:3 * D]

    def swap_halves(t):
        # per head: [t1 | t2] -> [t2 | t1]; sign lives in the precomputed sin table.
        pieces = []
        for h in range(n_heads):
            b0 = h * head_dim
            pieces.append(t[:, b0 + hd2:b0 + head_dim])
            pieces.append(t[:, b0:b0 + hd2])
        return jnp.concatenate(pieces, axis=-1)

    # Full-width rotary (once, outside the head loop); fold softmax scale into q.
    sm_scale = 1.0 / math.sqrt(head_dim)
    q = (q * cos + swap_halves(q) * sin) * sm_scale
    k = k * cos + swap_halves(k) * sin

    q_b = q.astype(bf16)
    k_b = k.astype(bf16)
    v_b = v.astype(bf16)
    wo = wo_ref[...]                    # (D, D) bf16

    # q @ k^T without an explicit transpose: contract dim 1 of both operands.
    dn = (((1,), (1,)), ((), ()))

    attn_proj = jnp.zeros((S, D), f32)
    for h in range(n_heads):            # static loop over heads (small H)
        b0 = h * head_dim
        qh = q_b[:, b0:b0 + head_dim]
        kh = k_b[:, b0:b0 + head_dim]
        vh = v_b[:, b0:b0 + head_dim]
        s = jax.lax.dot_general(qh, kh, dn, preferred_element_type=f32)     # (S, S)
        s = s - jnp.max(s, axis=-1, keepdims=True)
        p = jnp.exp(s)
        p = p * pl.reciprocal(jnp.sum(p, axis=-1, keepdims=True), approx=True)
        oh = jnp.dot(p.astype(bf16), vh, preferred_element_type=f32)        # (S, hd)
        # Accumulate straight into the output projection (no concat, no extra pass).
        attn_proj = attn_proj + jnp.dot(oh.astype(bf16), wo[b0:b0 + head_dim, :],
                                        preferred_element_type=f32)

    # bias_dropout_add_scale (eval mode -> dropout is identity)
    x = x_skip + gate_msa * attn_proj

    # --- MLP branch ---
    xm2 = _layer_norm_f32(x, ln2_w_ref[...]) * one_p_scale_mlp + shift_mlp
    h1 = jnp.dot(xm2.astype(bf16), w1_ref[...], preferred_element_type=f32) + b1_ref[...]
    h1 = _gelu_tanh(h1)
    mlp = jnp.dot(h1.astype(bf16), w2_ref[...], preferred_element_type=f32) + b2_ref[...]
    x = x + gate_mlp * mlp

    o_ref[0] = x.astype(o_ref.dtype)


# --------------------------------- wrapper -----------------------------------

def ddit_block_pallas(x, c, cos, sin, params, *, n_heads):
    B, S, D = x.shape
    head_dim = D // n_heads
    cond_dim = c.shape[-1]
    hidden = params["w1"].shape[1]
    bf16 = jnp.bfloat16

    # bf16 matmul operands (weights); biases / LN weights stay f32.
    qkv_w = jnp.concatenate([params["qw"], params["kw"], params["vw"]], axis=1).astype(bf16)
    wo = params["wo"].astype(bf16)
    w1 = params["w1"].astype(bf16)
    w2 = params["w2"].astype(bf16)
    ada_w = params["ada_w"].astype(bf16)

    # Full-width rotary tables (S, D): per head cos -> [cos | cos], sin -> [-sin | +sin]
    # (sign baked in so the kernel needs only swap-halves + two multiplies).
    cos_full = jnp.tile(jnp.concatenate([cos, cos], axis=-1), (1, n_heads)).astype(jnp.float32)
    sin_full = jnp.tile(jnp.concatenate([-sin, sin], axis=-1), (1, n_heads)).astype(jnp.float32)

    c3 = c.reshape(B, 1, cond_dim)      # 3D so the (1, cond_dim) block == full last-2 dims

    full2 = lambda b: (0, 0)
    in_specs = [
        pl.BlockSpec((1, S, D), lambda b: (b, 0, 0)),          # x
        pl.BlockSpec((1, 1, cond_dim), lambda b: (b, 0, 0)),   # c
        pl.BlockSpec((S, D), full2),                           # cos_full
        pl.BlockSpec((S, D), full2),                           # sin_full (signed)
        pl.BlockSpec((1, D), full2),                           # ln1 weight
        pl.BlockSpec((D, 3 * D), full2),                       # fused qkv weight
        pl.BlockSpec((D, D), full2),                           # attn_out weight
        pl.BlockSpec((1, D), full2),                           # ln2 weight
        pl.BlockSpec((D, hidden), full2),                      # mlp w1
        pl.BlockSpec((1, hidden), full2),                      # mlp b1
        pl.BlockSpec((hidden, D), full2),                      # mlp w2
        pl.BlockSpec((1, D), full2),                           # mlp b2
        pl.BlockSpec((cond_dim, 6 * D), full2),                # adaLN w
        pl.BlockSpec((1, 6 * D), full2),                       # adaLN b
    ]
    out_spec = pl.BlockSpec((1, S, D), lambda b: (b, 0, 0))

    # Advisory cost estimate for the XLA scheduler.
    flops = B * (2 * S * D * 3 * D            # qkv
                 + 4 * S * S * D              # scores + p@v
                 + 2 * S * D * D              # output projection
                 + 4 * S * D * hidden         # mlp
                 + 2 * cond_dim * 6 * D)      # adaLN
    transcendentals = B * (n_heads * S * S + S * hidden)
    bytes_accessed = (2 * B * S * D * 4 + B * cond_dim * 4 + 2 * S * D * 4
                      + 2 * (qkv_w.size + wo.size + w1.size + w2.size + ada_w.size)
                      + 4 * (params["b1"].size + params["b2"].size + params["ada_b"].size
                             + params["ln1_w"].size + params["ln2_w"].size))

    kernel = partial(ddit_block_kernel, n_heads=n_heads, head_dim=head_dim)
    return pl.pallas_call(
        kernel,
        out_shape=jax.ShapeDtypeStruct((B, S, D), x.dtype),
        grid_spec=pltpu.PrefetchScalarGridSpec(
            num_scalar_prefetch=0,
            grid=(B,),
            in_specs=in_specs,
            out_specs=out_spec,
        ),
        compiler_params=pltpu.CompilerParams(
            dimension_semantics=("parallel",),          # batch iterations independent
            vmem_limit_bytes=48 * 1024 * 1024,          # above scoped default, < v7x physical
        ),
        cost_estimate=pl.CostEstimate(
            flops=int(flops),
            transcendentals=int(transcendentals),
            bytes_accessed=int(bytes_accessed),
        ),
    )(
        x, c3, cos_full, sin_full,
        params["ln1_w"], qkv_w, wo,
        params["ln2_w"], w1, params["b1"], w2, params["b2"],
        ada_w, params["ada_b"],
    )


# ------------------------------ pure-JAX reference ----------------------------

def ddit_block_ref(x, c, cos, sin, params, *, n_heads):
    B, S, D = x.shape
    hd = D // n_heads
    hd2 = hd // 2
    x = x.astype(jnp.float32)

    mod = c.astype(jnp.float32) @ params["ada_w"] + params["ada_b"]        # (B, 6D)
    sm, scm, gm, smlp, scmlp, gmlp = [mod[:, None, i * D:(i + 1) * D] for i in range(6)]

    def ln(t, w):
        mu = jnp.mean(t, -1, keepdims=True)
        var = jnp.mean((t - mu) ** 2, -1, keepdims=True)
        return (t - mu) * jax.lax.rsqrt(var + 1e-5) * w

    x_skip = x
    xm = ln(x, params["ln1_w"]) * (1.0 + scm) + sm
    q = xm @ params["qw"]
    k = xm @ params["kw"]
    v = xm @ params["vw"]
    q = q.reshape(B, S, n_heads, hd)
    k = k.reshape(B, S, n_heads, hd)
    v = v.reshape(B, S, n_heads, hd)

    def rot(t):
        t1, t2 = t[..., :hd2], t[..., hd2:]
        cs = cos[None, :, None, :]
        sn = sin[None, :, None, :]
        return jnp.concatenate([t1 * cs - t2 * sn, t2 * cs + t1 * sn], axis=-1)

    q, k = rot(q), rot(k)
    q, k, v = (jnp.transpose(t, (0, 2, 1, 3)) for t in (q, k, v))          # (B, H, S, hd)
    s = jnp.einsum("bhsd,bhtd->bhst", q, k) / math.sqrt(hd)
    p = jax.nn.softmax(s, axis=-1)
    o = jnp.einsum("bhst,bhtd->bhsd", p, v)
    o = jnp.transpose(o, (0, 2, 1, 3)).reshape(B, S, D)
    x = x_skip + gm * (o @ params["wo"])

    xm2 = ln(x, params["ln2_w"]) * (1.0 + scmlp) + smlp
    h1 = xm2 @ params["w1"] + params["b1"]
    c0 = math.sqrt(2.0 / math.pi)
    h1 = 0.5 * h1 * (1.0 + jnp.tanh(c0 * (h1 + 0.044715 * h1 ** 3)))
    mlp = h1 @ params["w2"] + params["b2"]
    return x + gmlp * mlp


# ----------------------------------- main -------------------------------------

if __name__ == "__main__":
    # Small but TPU-friendly shapes: D multiple of 128 (lane-dense output stores).
    B, S, D = 2, 64, 128
    n_heads = 4
    head_dim = D // n_heads
    cond_dim = 64
    mlp_ratio = 4
    hidden = mlp_ratio * D

    key = jax.random.PRNGKey(0)
    ks = jax.random.split(key, 12)

    def lin(k, fan_in, shape, scale=None):
        scale = scale if scale is not None else 1.0 / math.sqrt(fan_in)
        return jax.random.normal(k, shape, jnp.float32) * scale

    params = {
        "ln1_w": jnp.ones((1, D), jnp.float32),
        "ln2_w": jnp.ones((1, D), jnp.float32),
        "qw": lin(ks[0], D, (D, D)),
        "kw": lin(ks[1], D, (D, D)),
        "vw": lin(ks[2], D, (D, D)),
        "wo": lin(ks[3], D, (D, D)),
        "w1": lin(ks[4], D, (D, hidden)),
        "b1": lin(ks[5], D, (1, hidden)),
        "w2": lin(ks[6], hidden, (hidden, D)),
        "b2": lin(ks[7], hidden, (1, D)),
        # adaLN: zero in the PyTorch __init__; small random here so the path is exercised.
        "ada_w": lin(ks[8], cond_dim, (cond_dim, 6 * D), scale=0.05),
        "ada_b": lin(ks[9], cond_dim, (1, 6 * D), scale=0.05),
    }

    x = jax.random.normal(ks[10], (B, S, D), jnp.float32)
    c = jax.random.normal(ks[11], (B, cond_dim), jnp.float32)

    # rotary tables, (S, head_dim // 2)
    inv_freq = 1.0 / (10000.0 ** (jnp.arange(0, head_dim, 2, dtype=jnp.float32) / head_dim))
    t = jnp.arange(S, dtype=jnp.float32)
    freqs = jnp.outer(t, inv_freq)
    cos, sin = jnp.cos(freqs), jnp.sin(freqs)

    out = ddit_block_pallas(x, c, cos, sin, params, n_heads=n_heads)
    out = jax.block_until_ready(out)

    ref = ddit_block_ref(x, c, cos, sin, params, n_heads=n_heads)
    assert out.shape == (B, S, D)
    # bf16 MXU operands with f32 accumulation vs pure-f32 reference -> bf16-level tolerance.
    max_err = float(jnp.max(jnp.abs(out - ref)))
    assert max_err < 1e-1, max_err

    print("KERNEL_OK")
</pallas_src>

<mosaic_0001>
module attributes {stable_mosaic.version = 11 : i64} {
  func.func @ddit_block_kernel(%arg0: i32, %arg1: memref<1x64x128xf32, #tpu.memory_space<vmem>>, %arg2: memref<1x1x64xf32, #tpu.memory_space<vmem>>, %arg3: memref<64x128xf32, #tpu.memory_space<vmem>>, %arg4: memref<64x128xf32, #tpu.memory_space<vmem>>, %arg5: memref<1x128xf32, #tpu.memory_space<vmem>>, %arg6: memref<128x384xbf16, #tpu.memory_space<vmem>>, %arg7: memref<128x128xbf16, #tpu.memory_space<vmem>>, %arg8: memref<1x128xf32, #tpu.memory_space<vmem>>, %arg9: memref<128x512xbf16, #tpu.memory_space<vmem>>, %arg10: memref<1x512xf32, #tpu.memory_space<vmem>>, %arg11: memref<512x128xbf16, #tpu.memory_space<vmem>>, %arg12: memref<1x128xf32, #tpu.memory_space<vmem>>, %arg13: memref<64x768xbf16, #tpu.memory_space<vmem>>, %arg14: memref<1x768xf32, #tpu.memory_space<vmem>>, %arg15: memref<1x64x128xf32, #tpu.memory_space<vmem>>) attributes {dimension_semantics = [#tpu.dimension_semantics<parallel>], iteration_bounds = array<i64: 2>, scalar_prefetch = 0 : i64, scratch_operands = 0 : i64, tpu.core_type = #tpu.core_type<tc>, window_params = [{transform_indices = @transform_0, window_bounds = array<i64: 1, 64, 128>}, {transform_indices = @transform_1, window_bounds = array<i64: 1, 1, 64>}, {pipeline_mode = #tpu.pipeline_mode<synchronous>, transform_indices = @transform_2, window_bounds = array<i64: 64, 128>}, {pipeline_mode = #tpu.pipeline_mode<synchronous>, transform_indices = @transform_3, window_bounds = array<i64: 64, 128>}, {pipeline_mode = #tpu.pipeline_mode<synchronous>, transform_indices = @transform_4, window_bounds = array<i64: 1, 128>}, {pipeline_mode = #tpu.pipeline_mode<synchronous>, transform_indices = @transform_5, window_bounds = array<i64: 128, 384>}, {pipeline_mode = #tpu.pipeline_mode<synchronous>, transform_indices = @transform_6, window_bounds = array<i64: 128, 128>}, {pipeline_mode = #tpu.pipeline_mode<synchronous>, transform_indices = @transform_7, window_bounds = array<i64: 1, 128>}, {pipeline_mode = #tpu.pipeline_mode<synchronous>, transform_indices = @transform_8, window_bounds = array<i64: 128, 512>}, {pipeline_mode = #tpu.pipeline_mode<synchronous>, transform_indices = @transform_9, window_bounds = array<i64: 1, 512>}, {pipeline_mode = #tpu.pipeline_mode<synchronous>, transform_indices = @transform_10, window_bounds = array<i64: 512, 128>}, {pipeline_mode = #tpu.pipeline_mode<synchronous>, transform_indices = @transform_11, window_bounds = array<i64: 1, 128>}, {pipeline_mode = #tpu.pipeline_mode<synchronous>, transform_indices = @transform_12, window_bounds = array<i64: 64, 768>}, {pipeline_mode = #tpu.pipeline_mode<synchronous>, transform_indices = @transform_13, window_bounds = array<i64: 1, 768>}, {transform_indices = @transform_14, window_bounds = array<i64: 1, 64, 128>}]} {
    %c0 = arith.constant 0 : index
    %c0_0 = arith.constant 0 : index
    %c0_1 = arith.constant 0 : index
    %0 = vector.load %arg1[%c0, %c0_0, %c0_1] : memref<1x64x128xf32, #tpu.memory_space<vmem>>, vector<1x64x128xf32>
    %1 = vector.shape_cast %0 : vector<1x64x128xf32> to vector<64x128xf32>
    %c0_2 = arith.constant 0 : index
    %c0_3 = arith.constant 0 : index
    %c0_4 = arith.constant 0 : index
    %2 = vector.load %arg2[%c0_2, %c0_3, %c0_4] : memref<1x1x64xf32, #tpu.memory_space<vmem>>, vector<1x1x64xf32>
    %3 = vector.shape_cast %2 : vector<1x1x64xf32> to vector<1x64xf32>
    %c0_5 = arith.constant 0 : index
    %c0_6 = arith.constant 0 : index
    %4 = vector.load %arg3[%c0_5, %c0_6] : memref<64x128xf32, #tpu.memory_space<vmem>>, vector<64x128xf32>
    %c0_7 = arith.constant 0 : index
    %c0_8 = arith.constant 0 : index
    %5 = vector.load %arg4[%c0_7, %c0_8] : memref<64x128xf32, #tpu.memory_space<vmem>>, vector<64x128xf32>
    %6 = arith.truncf %3 : vector<1x64xf32> to vector<1x64xbf16>
    %c0_9 = arith.constant 0 : index
    %c0_10 = arith.constant 0 : index
    %7 = vector.load %arg13[%c0_9, %c0_10] : memref<64x768xbf16, #tpu.memory_space<vmem>>, vector<64x768xbf16>
    %cst = arith.constant dense<0.000000e+00> : vector<1x768xf32>
    %8 = tpu.matmul %6, %7, %cst {dimension_numbers = #tpu.dot_dimension_numbers<[1], [0], [0], [1], [0, 0, 1, 1], [], []>} : vector<1x64xbf16>, vector<64x768xbf16>, vector<1x768xf32> -> vector<1x768xf32>
    %c0_11 = arith.constant 0 : index
    %c0_12 = arith.constant 0 : index
    %9 = vector.load %arg14[%c0_11, %c0_12] : memref<1x768xf32, #tpu.memory_space<vmem>>, vector<1x768xf32>
    %10 = arith.addf %8, %9 : vector<1x768xf32>
    %11 = vector.extract_strided_slice %10 {offsets = [0, 0], sizes = [1, 128], strides = [1, 1]} : vector<1x768xf32> to vector<1x128xf32>
    %12 = vector.extract_strided_slice %10 {offsets = [0, 128], sizes = [1, 128], strides = [1, 1]} : vector<1x768xf32> to vector<1x128xf32>
    %cst_13 = arith.constant 1.000000e+00 : f32
    %13 = vector.broadcast %cst_13 : f32 to vector<1x128xf32>
    %14 = arith.addf %13, %12 : vector<1x128xf32>
    %15 = vector.extract_strided_slice %10 {offsets = [0, 256], sizes = [1, 128], strides = [1, 1]} : vector<1x768xf32> to vector<1x128xf32>
    %16 = vector.extract_strided_slice %10 {offsets = [0, 384], sizes = [1, 128], strides = [1, 1]} : vector<1x768xf32> to vector<1x128xf32>
    %17 = vector.extract_strided_slice %10 {offsets = [0, 512], sizes = [1, 128], strides = [1, 1]} : vector<1x768xf32> to vector<1x128xf32>
    %cst_14 = arith.constant 1.000000e+00 : f32
    %18 = vector.broadcast %cst_14 : f32 to vector<1x128xf32>
    %19 = arith.addf %18, %17 : vector<1x128xf32>
    %20 = vector.extract_strided_slice %10 {offsets = [0, 640], sizes = [1, 128], strides = [1, 1]} : vector<1x768xf32> to vector<1x128xf32>
    %c0_15 = arith.constant 0 : index
    %c0_16 = arith.constant 0 : index
    %21 = vector.load %arg5[%c0_15, %c0_16] : memref<1x128xf32, #tpu.memory_space<vmem>>, vector<1x128xf32>
    %cst_17 = arith.constant dense<0.000000e+00> : vector<64xf32>
    %22 = vector.multi_reduction <add>, %1, %cst_17 [1] : vector<64x128xf32> to vector<64xf32>
    %23 = vector.shape_cast %22 : vector<64xf32> to vector<64x1xf32>
    %cst_18 = arith.constant 1.280000e+02 : f32
    %24 = vector.broadcast %cst_18 : f32 to vector<64x1xf32>
    %25 = arith.divf %23, %24 : vector<64x1xf32>
    %26 = vector.broadcast %25 : vector<64x1xf32> to vector<64x128xf32>
    %27 = arith.subf %1, %26 : vector<64x128xf32>
    %28 = arith.mulf %27, %27 : vector<64x128xf32>
    %cst_19 = arith.constant dense<0.000000e+00> : vector<64xf32>
    %29 = vector.multi_reduction <add>, %28, %cst_19 [1] : vector<64x128xf32> to vector<64xf32>
    %30 = vector.shape_cast %29 : vector<64xf32> to vector<64x1xf32>
    %cst_20 = arith.constant 1.280000e+02 : f32
    %31 = vector.broadcast %cst_20 : f32 to vector<64x1xf32>
    %32 = arith.divf %30, %31 : vector<64x1xf32>
    %33 = vector.broadcast %25 : vector<64x1xf32> to vector<64x128xf32>
    %34 = arith.subf %1, %33 : vector<64x128xf32>
    %cst_21 = arith.constant 9.99999974E-6 : f32
    %35 = vector.broadcast %cst_21 : f32 to vector<64x1xf32>
    %36 = arith.addf %32, %35 : vector<64x1xf32>
    %37 = math.rsqrt %36 : vector<64x1xf32>
    %38 = vector.broadcast %37 : vector<64x1xf32> to vector<64x128xf32>
    %39 = arith.mulf %34, %38 : vector<64x128xf32>
    %40 = vector.broadcast %21 : vector<1x128xf32> to vector<64x128xf32>
    %41 = arith.mulf %39, %40 : vector<64x128xf32>
    %42 = vector.broadcast %14 : vector<1x128xf32> to vector<64x128xf32>
    %43 = arith.mulf %41, %42 : vector<64x128xf32>
    %44 = vector.broadcast %11 : vector<1x128xf32> to vector<64x128xf32>
    %45 = arith.addf %43, %44 : vector<64x128xf32>
    %46 = arith.truncf %45 : vector<64x128xf32> to vector<64x128xbf16>
    %c0_22 = arith.constant 0 : index
    %c0_23 = arith.constant 0 : index
    %47 = vector.load %arg6[%c0_22, %c0_23] : memref<128x384xbf16, #tpu.memory_space<vmem>>, vector<128x384xbf16>
    %cst_24 = arith.constant dense<0.000000e+00> : vector<64x384xf32>
    %48 = tpu.matmul %46, %47, %cst_24 {dimension_numbers = #tpu.dot_dimension_numbers<[1], [0], [0], [1], [0, 0, 1, 1], [], []>} : vector<64x128xbf16>, vector<128x384xbf16>, vector<64x384xf32> -> vector<64x384xf32>
    %49 = vector.extract_strided_slice %48 {offsets = [0, 0], sizes = [64, 128], strides = [1, 1]} : vector<64x384xf32> to vector<64x128xf32>
    %50 = vector.extract_strided_slice %48 {offsets = [0, 128], sizes = [64, 128], strides = [1, 1]} : vector<64x384xf32> to vector<64x128xf32>
    %51 = vector.extract_strided_slice %48 {offsets = [0, 256], sizes = [64, 128], strides = [1, 1]} : vector<64x384xf32> to vector<64x128xf32>
    %52 = arith.mulf %49, %4 : vector<64x128xf32>
    %53 = vector.extract_strided_slice %49 {offsets = [0, 16], sizes = [64, 16], strides = [1, 1]} : vector<64x128xf32> to vector<64x16xf32>
    %54 = vector.extract_strided_slice %49 {offsets = [0, 0], sizes = [64, 16], strides = [1, 1]} : vector<64x128xf32> to vector<64x16xf32>
    %55 = vector.extract_strided_slice %49 {offsets = [0, 48], sizes = [64, 16], strides = [1, 1]} : vector<64x128xf32> to vector<64x16xf32>
    %56 = vector.extract_strided_slice %49 {offsets = [0, 32], sizes = [64, 16], strides = [1, 1]} : vector<64x128xf32> to vector<64x16xf32>
    %57 = vector.extract_strided_slice %49 {offsets = [0, 80], sizes = [64, 16], strides = [1, 1]} : vector<64x128xf32> to vector<64x16xf32>
    %58 = vector.extract_strided_slice %49 {offsets = [0, 64], sizes = [64, 16], strides = [1, 1]} : vector<64x128xf32> to vector<64x16xf32>
    %59 = vector.extract_strided_slice %49 {offsets = [0, 112], sizes = [64, 16], strides = [1, 1]} : vector<64x128xf32> to vector<64x16xf32>
    %60 = vector.extract_strided_slice %49 {offsets = [0, 96], sizes = [64, 16], strides = [1, 1]} : vector<64x128xf32> to vector<64x16xf32>
    %61 = tpu.concatenate %53, %54, %55, %56, %57, %58, %59, %60 in 1 : vector<64x16xf32>, vector<64x16xf32>, vector<64x16xf32>, vector<64x16xf32>, vector<64x16xf32>, vector<64x16xf32>, vector<64x16xf32>, vector<64x16xf32> -> vector<64x128xf32>
    %62 = arith.mulf %61, %5 : vector<64x128xf32>
    %63 = arith.addf %52, %62 : vector<64x128xf32>
    %cst_25 = arith.constant 0.176776692 : f32
    %64 = vector.broadcast %cst_25 : f32 to vector<64x128xf32>
    %65 = arith.mulf %63, %64 : vector<64x128xf32>
    %66 = arith.mulf %50, %4 : vector<64x128xf32>
    %67 = vector.extract_strided_slice %50 {offsets = [0, 16], sizes = [64, 16], strides = [1, 1]} : vector<64x128xf32> to vector<64x16xf32>
    %68 = vector.extract_strided_slice %50 {offsets = [0, 0], sizes = [64, 16], strides = [1, 1]} : vector<64x128xf32> to vector<64x16xf32>
    %69 = vector.extract_strided_slice %50 {offsets = [0, 48], sizes = [64, 16], strides = [1, 1]} : vector<64x128xf32> to vector<64x16xf32>
    %70 = vector.extract_strided_slice %50 {offsets = [0, 32], sizes = [64, 16], strides = [1, 1]} : vector<64x128xf32> to vector<64x16xf32>
    %71 = vector.extract_strided_slice %50 {offsets = [0, 80], sizes = [64, 16], strides = [1, 1]} : vector<64x128xf32> to vector<64x16xf32>
    %72 = vector.extract_strided_slice %50 {offsets = [0, 64], sizes = [64, 16], strides = [1, 1]} : vector<64x128xf32> to vector<64x16xf32>
    %73 = vector.extract_strided_slice %50 {offsets = [0, 112], sizes = [64, 16], strides = [1, 1]} : vector<64x128xf32> to vector<64x16xf32>
    %74 = vector.extract_strided_slice %50 {offsets = [0, 96], sizes = [64, 16], strides = [1, 1]} : vector<64x128xf32> to vector<64x16xf32>
    %75 = tpu.concatenate %67, %68, %69, %70, %71, %72, %73, %74 in 1 : vector<64x16xf32>, vector<64x16xf32>, vector<64x16xf32>, vector<64x16xf32>, vector<64x16xf32>, vector<64x16xf32>, vector<64x16xf32>, vector<64x16xf32> -> vector<64x128xf32>
    %76 = arith.mulf %75, %5 : vector<64x128xf32>
    %77 = arith.addf %66, %76 : vector<64x128xf32>
    %78 = arith.truncf %65 : vector<64x128xf32> to vector<64x128xbf16>
    %79 = arith.truncf %77 : vector<64x128xf32> to vector<64x128xbf16>
    %80 = arith.truncf %51 : vector<64x128xf32> to vector<64x128xbf16>
    %c0_26 = arith.constant 0 : index
    %c0_27 = arith.constant 0 : index
    %81 = vector.load %arg7[%c0_26, %c0_27] : memref<128x128xbf16, #tpu.memory_space<vmem>>, vector<128x128xbf16>
    %cst_28 = arith.constant 0.000000e+00 : f32
    %82 = vector.broadcast %cst_28 : f32 to vector<64x128xf32>
    %83 = vector.extract_strided_slice %78 {offsets = [0, 0], sizes = [64, 32], strides = [1, 1]} : vector<64x128xbf16> to vector<64x32xbf16>
    %84 = vector.extract_strided_slice %79 {offsets = [0, 0], sizes = [64, 32], strides = [1, 1]} : vector<64x128xbf16> to vector<64x32xbf16>
    %85 = vector.extract_strided_slice %80 {offsets = [0, 0], sizes = [64, 32], strides = [1, 1]} : vector<64x128xbf16> to vector<64x32xbf16>
    %cst_29 = arith.constant dense<0.000000e+00> : vector<64x64xf32>
    %86 = tpu.matmul %83, %84, %cst_29 {dimension_numbers = #tpu.dot_dimension_numbers<[1], [1], [0], [0], [0, 0, 1, 0], [], []>} : vector<64x32xbf16>, vector<64x32xbf16>, vector<64x64xf32> -> vector<64x64xf32>
    %cst_30 = arith.constant dense<0xFF800000> : vector<64xf32>
    %87 = vector.multi_reduction <maximumf>, %86, %cst_30 [1] : vector<64x64xf32> to vector<64xf32>
    %88 = vector.shape_cast %87 : vector<64xf32> to vector<64x1xf32>
    %89 = vector.broadcast %88 : vector<64x1xf32> to vector<64x64xf32>
    %90 = arith.subf %86, %89 : vector<64x64xf32>
    %91 = math.exp %90 : vector<64x64xf32>
    %cst_31 = arith.constant dense<0.000000e+00> : vector<64xf32>
    %92 = vector.multi_reduction <add>, %91, %cst_31 [1] : vector<64x64xf32> to vector<64xf32>
    %93 = vector.shape_cast %92 : vector<64xf32> to vector<64x1xf32>
    %94 = tpu.reciprocal %93 {approx = true} : vector<64x1xf32> -> vector<64x1xf32>
    %95 = vector.broadcast %94 : vector<64x1xf32> to vector<64x64xf32>
    %96 = arith.mulf %91, %95 : vector<64x64xf32>
    %97 = arith.truncf %96 : vector<64x64xf32> to vector<64x64xbf16>
    %cst_32 = arith.constant dense<0.000000e+00> : vector<64x32xf32>
    %98 = tpu.matmul %97, %85, %cst_32 {dimension_numbers = #tpu.dot_dimension_numbers<[1], [0], [0], [1], [0, 0, 1, 1], [], []>} : vector<64x64xbf16>, vector<64x32xbf16>, vector<64x32xf32> -> vector<64x32xf32>
    %99 = arith.truncf %98 : vector<64x32xf32> to vector<64x32xbf16>
    %100 = vector.extract_strided_slice %81 {offsets = [0, 0], sizes = [32, 128], strides = [1, 1]} : vector<128x128xbf16> to vector<32x128xbf16>
    %cst_33 = arith.constant dense<0.000000e+00> : vector<64x128xf32>
    %101 = tpu.matmul %99, %100, %cst_33 {dimension_numbers = #tpu.dot_dimension_numbers<[1], [0], [0], [1], [0, 0, 1, 1], [], []>} : vector<64x32xbf16>, vector<32x128xbf16>, vector<64x128xf32> -> vector<64x128xf32>
    %102 = arith.addf %82, %101 : vector<64x128xf32>
    %103 = vector.extract_strided_slice %78 {offsets = [0, 32], sizes = [64, 32], strides = [1, 1]} : vector<64x128xbf16> to vector<64x32xbf16>
    %104 = vector.extract_strided_slice %79 {offsets = [0, 32], sizes = [64, 32], strides = [1, 1]} : vector<64x128xbf16> to vector<64x32xbf16>
    %105 = vector.extract_strided_slice %80 {offsets = [0, 32], sizes = [64, 32], strides = [1, 1]} : vector<64x128xbf16> to vector<64x32xbf16>
    %cst_34 = arith.constant dense<0.000000e+00> : vector<64x64xf32>
    %106 = tpu.matmul %103, %104, %cst_34 {dimension_numbers = #tpu.dot_dimension_numbers<[1], [1], [0], [0], [0, 0, 1, 0], [], []>} : vector<64x32xbf16>, vector<64x32xbf16>, vector<64x64xf32> -> vector<64x64xf32>
    %cst_35 = arith.constant dense<0xFF800000> : vector<64xf32>
    %107 = vector.multi_reduction <maximumf>, %106, %cst_35 [1] : vector<64x64xf32> to vector<64xf32>
    %108 = vector.shape_cast %107 : vector<64xf32> to vector<64x1xf32>
    %109 = vector.broadcast %108 : vector<64x1xf32> to vector<64x64xf32>
    %110 = arith.subf %106, %109 : vector<64x64xf32>
    %111 = math.exp %110 : vector<64x64xf32>
    %cst_36 = arith.constant dense<0.000000e+00> : vector<64xf32>
    %112 = vector.multi_reduction <add>, %111, %cst_36 [1] : vector<64x64xf32> to vector<64xf32>
    %113 = vector.shape_cast %112 : vector<64xf32> to vector<64x1xf32>
    %114 = tpu.reciprocal %113 {approx = true} : vector<64x1xf32> -> vector<64x1xf32>
    %115 = vector.broadcast %114 : vector<64x1xf32> to vector<64x64xf32>
    %116 = arith.mulf %111, %115 : vector<64x64xf32>
    %117 = arith.truncf %116 : vector<64x64xf32> to vector<64x64xbf16>
    %cst_37 = arith.constant dense<0.000000e+00> : vector<64x32xf32>
    %118 = tpu.matmul %117, %105, %cst_37 {dimension_numbers = #tpu.dot_dimension_numbers<[1], [0], [0], [1], [0, 0, 1, 1], [], []>} : vector<64x64xbf16>, vector<64x32xbf16>, vector<64x32xf32> -> vector<64x32xf32>
    %119 = arith.truncf %118 : vector<64x32xf32> to vector<64x32xbf16>
    %120 = vector.extract_strided_slice %81 {offsets = [32, 0], sizes = [32, 128], strides = [1, 1]} : vector<128x128xbf16> to vector<32x128xbf16>
    %cst_38 = arith.constant dense<0.000000e+00> : vector<64x128xf32>
    %121 = tpu.matmul %119, %120, %cst_38 {dimension_numbers = #tpu.dot_dimension_numbers<[1], [0], [0], [1], [0, 0, 1, 1], [], []>} : vector<64x32xbf16>, vector<32x128xbf16>, vector<64x128xf32> -> vector<64x128xf32>
    %122 = arith.addf %102, %121 : vector<64x128xf32>
    %123 = vector.extract_strided_slice %78 {offsets = [0, 64], sizes = [64, 32], strides = [1, 1]} : vector<64x128xbf16> to vector<64x32xbf16>
    %124 = vector.extract_strided_slice %79 {offsets = [0, 64], sizes = [64, 32], strides = [1, 1]} : vector<64x128xbf16> to vector<64x32xbf16>
    %125 = vector.extract_strided_slice %80 {offsets = [0, 64], sizes = [64, 32], strides = [1, 1]} : vector<64x128xbf16> to vector<64x32xbf16>
    %cst_39 = arith.constant dense<0.000000e+00> : vector<64x64xf32>
    %126 = tpu.matmul %123, %124, %cst_39 {dimension_numbers = #tpu.dot_dimension_numbers<[1], [1], [0], [0], [0, 0, 1, 0], [], []>} : vector<64x32xbf16>, vector<64x32xbf16>, vector<64x64xf32> -> vector<64x64xf32>
    %cst_40 = arith.constant dense<0xFF800000> : vector<64xf32>
    %127 = vector.multi_reduction <maximumf>, %126, %cst_40 [1] : vector<64x64xf32> to vector<64xf32>
    %128 = vector.shape_cast %127 : vector<64xf32> to vector<64x1xf32>
    %129 = vector.broadcast %128 : vector<64x1xf32> to vector<64x64xf32>
    %130 = arith.subf %126, %129 : vector<64x64xf32>
    %131 = math.exp %130 : vector<64x64xf32>
    %cst_41 = arith.constant dense<0.000000e+00> : vector<64xf32>
    %132 = vector.multi_reduction <add>, %131, %cst_41 [1] : vector<64x64xf32> to vector<64xf32>
    %133 = vector.shape_cast %132 : vector<64xf32> to vector<64x1xf32>
    %134 = tpu.reciprocal %133 {approx = true} : vector<64x1xf32> -> vector<64x1xf32>
    %135 = vector.broadcast %134 : vector<64x1xf32> to vector<64x64xf32>
    %136 = arith.mulf %131, %135 : vector<64x64xf32>
    %137 = arith.truncf %136 : vector<64x64xf32> to vector<64x64xbf16>
    %cst_42 = arith.constant dense<0.000000e+00> : vector<64x32xf32>
    %138 = tpu.matmul %137, %125, %cst_42 {dimension_numbers = #tpu.dot_dimension_numbers<[1], [0], [0], [1], [0, 0, 1, 1], [], []>} : vector<64x64xbf16>, vector<64x32xbf16>, vector<64x32xf32> -> vector<64x32xf32>
    %139 = arith.truncf %138 : vector<64x32xf32> to vector<64x32xbf16>
    %140 = vector.extract_strided_slice %81 {offsets = [64, 0], sizes = [32, 128], strides = [1, 1]} : vector<128x128xbf16> to vector<32x128xbf16>
    %cst_43 = arith.constant dense<0.000000e+00> : vector<64x128xf32>
    %141 = tpu.matmul %139, %140, %cst_43 {dimension_numbers = #tpu.dot_dimension_numbers<[1], [0], [0], [1], [0, 0, 1, 1], [], []>} : vector<64x32xbf16>, vector<32x128xbf16>, vector<64x128xf32> -> vector<64x128xf32>
    %142 = arith.addf %122, %141 : vector<64x128xf32>
    %143 = vector.extract_strided_slice %78 {offsets = [0, 96], sizes = [64, 32], strides = [1, 1]} : vector<64x128xbf16> to vector<64x32xbf16>
    %144 = vector.extract_strided_slice %79 {offsets = [0, 96], sizes = [64, 32], strides = [1, 1]} : vector<64x128xbf16> to vector<64x32xbf16>
    %145 = vector.extract_strided_slice %80 {offsets = [0, 96], sizes = [64, 32], strides = [1, 1]} : vector<64x128xbf16> to vector<64x32xbf16>
    %cst_44 = arith.constant dense<0.000000e+00> : vector<64x64xf32>
    %146 = tpu.matmul %143, %144, %cst_44 {dimension_numbers = #tpu.dot_dimension_numbers<[1], [1], [0], [0], [0, 0, 1, 0], [], []>} : vector<64x32xbf16>, vector<64x32xbf16>, vector<64x64xf32> -> vector<64x64xf32>
    %cst_45 = arith.constant dense<0xFF800000> : vector<64xf32>
    %147 = vector.multi_reduction <maximumf>, %146, %cst_45 [1] : vector<64x64xf32> to vector<64xf32>
    %148 = vector.shape_cast %147 : vector<64xf32> to vector<64x1xf32>
    %149 = vector.broadcast %148 : vector<64x1xf32> to vector<64x64xf32>
    %150 = arith.subf %146, %149 : vector<64x64xf32>
    %151 = math.exp %150 : vector<64x64xf32>
    %cst_46 = arith.constant dense<0.000000e+00> : vector<64xf32>
    %152 = vector.multi_reduction <add>, %151, %cst_46 [1] : vector<64x64xf32> to vector<64xf32>
    %153 = vector.shape_cast %152 : vector<64xf32> to vector<64x1xf32>
    %154 = tpu.reciprocal %153 {approx = true} : vector<64x1xf32> -> vector<64x1xf32>
    %155 = vector.broadcast %154 : vector<64x1xf32> to vector<64x64xf32>
    %156 = arith.mulf %151, %155 : vector<64x64xf32>
    %157 = arith.truncf %156 : vector<64x64xf32> to vector<64x64xbf16>
    %cst_47 = arith.constant dense<0.000000e+00> : vector<64x32xf32>
    %158 = tpu.matmul %157, %145, %cst_47 {dimension_numbers = #tpu.dot_dimension_numbers<[1], [0], [0], [1], [0, 0, 1, 1], [], []>} : vector<64x64xbf16>, vector<64x32xbf16>, vector<64x32xf32> -> vector<64x32xf32>
    %159 = arith.truncf %158 : vector<64x32xf32> to vector<64x32xbf16>
    %160 = vector.extract_strided_slice %81 {offsets = [96, 0], sizes = [32, 128], strides = [1, 1]} : vector<128x128xbf16> to vector<32x128xbf16>
    %cst_48 = arith.constant dense<0.000000e+00> : vector<64x128xf32>
    %161 = tpu.matmul %159, %160, %cst_48 {dimension_numbers = #tpu.dot_dimension_numbers<[1], [0], [0], [1], [0, 0, 1, 1], [], []>} : vector<64x32xbf16>, vector<32x128xbf16>, vector<64x128xf32> -> vector<64x128xf32>
    %162 = arith.addf %142, %161 : vector<64x128xf32>
    %163 = vector.broadcast %15 : vector<1x128xf32> to vector<64x128xf32>
    %164 = arith.mulf %163, %162 : vector<64x128xf32>
    %165 = arith.addf %1, %164 : vector<64x128xf32>
    %c0_49 = arith.constant 0 : index
    %c0_50 = arith.constant 0 : index
    %166 = vector.load %arg8[%c0_49, %c0_50] : memref<1x128xf32, #tpu.memory_space<vmem>>, vector<1x128xf32>
    %cst_51 = arith.constant dense<0.000000e+00> : vector<64xf32>
    %167 = vector.multi_reduction <add>, %165, %cst_51 [1] : vector<64x128xf32> to vector<64xf32>
    %168 = vector.shape_cast %167 : vector<64xf32> to vector<64x1xf32>
    %cst_52 = arith.constant 1.280000e+02 : f32
    %169 = vector.broadcast %cst_52 : f32 to vector<64x1xf32>
    %170 = arith.divf %168, %169 : vector<64x1xf32>
    %171 = vector.broadcast %170 : vector<64x1xf32> to vector<64x128xf32>
    %172 = arith.subf %165, %171 : vector<64x128xf32>
    %173 = arith.mulf %172, %172 : vector<64x128xf32>
    %cst_53 = arith.constant dense<0.000000e+00> : vector<64xf32>
    %174 = vector.multi_reduction <add>, %173, %cst_53 [1] : vector<64x128xf32> to vector<64xf32>
    %175 = vector.shape_cast %174 : vector<64xf32> to vector<64x1xf32>
    %cst_54 = arith.constant 1.280000e+02 : f32
    %176 = vector.broadcast %cst_54 : f32 to vector<64x1xf32>
    %177 = arith.divf %175, %176 : vector<64x1xf32>
    %178 = vector.broadcast %170 : vector<64x1xf32> to vector<64x128xf32>
    %179 = arith.subf %165, %178 : vector<64x128xf32>
    %cst_55 = arith.constant 9.99999974E-6 : f32
    %180 = vector.broadcast %cst_55 : f32 to vector<64x1xf32>
    %181 = arith.addf %177, %180 : vector<64x1xf32>
    %182 = math.rsqrt %181 : vector<64x1xf32>
    %183 = vector.broadcast %182 : vector<64x1xf32> to vector<64x128xf32>
    %184 = arith.mulf %179, %183 : vector<64x128xf32>
    %185 = vector.broadcast %166 : vector<1x128xf32> to vector<64x128xf32>
    %186 = arith.mulf %184, %185 : vector<64x128xf32>
    %187 = vector.broadcast %19 : vector<1x128xf32> to vector<64x128xf32>
    %188 = arith.mulf %186, %187 : vector<64x128xf32>
    %189 = vector.broadcast %16 : vector<1x128xf32> to vector<64x128xf32>
    %190 = arith.addf %188, %189 : vector<64x128xf32>
    %191 = arith.truncf %190 : vector<64x128xf32> to vector<64x128xbf16>
    %c0_56 = arith.constant 0 : index
    %c0_57 = arith.constant 0 : index
    %192 = vector.load %arg9[%c0_56, %c0_57] : memref<128x512xbf16, #tpu.memory_space<vmem>>, vector<128x512xbf16>
    %cst_58 = arith.constant dense<0.000000e+00> : vector<64x512xf32>
    %193 = tpu.matmul %191, %192, %cst_58 {dimension_numbers = #tpu.dot_dimension_numbers<[1], [0], [0], [1], [0, 0, 1, 1], [], []>} : vector<64x128xbf16>, vector<128x512xbf16>, vector<64x512xf32> -> vector<64x512xf32>
    %c0_59 = arith.constant 0 : index
    %c0_60 = arith.constant 0 : index
    %194 = vector.load %arg10[%c0_59, %c0_60] : memref<1x512xf32, #tpu.memory_space<vmem>>, vector<1x512xf32>
    %195 = vector.broadcast %194 : vector<1x512xf32> to vector<64x512xf32>
    %196 = arith.addf %193, %195 : vector<64x512xf32>
    %cst_61 = arith.constant 5.000000e-01 : f32
    %197 = vector.broadcast %cst_61 : f32 to vector<64x512xf32>
    %198 = arith.mulf %197, %196 : vector<64x512xf32>
    %cst_62 = arith.constant 4.471500e-02 : f32
    %199 = vector.broadcast %cst_62 : f32 to vector<64x512xf32>
    %200 = arith.mulf %199, %196 : vector<64x512xf32>
    %201 = arith.mulf %200, %196 : vector<64x512xf32>
    %202 = arith.mulf %201, %196 : vector<64x512xf32>
    %203 = arith.addf %196, %202 : vector<64x512xf32>
    %cst_63 = arith.constant 0.797884583 : f32
    %204 = vector.broadcast %cst_63 : f32 to vector<64x512xf32>
    %205 = arith.mulf %204, %203 : vector<64x512xf32>
    %206 = math.tanh %205 : vector<64x512xf32>
    %cst_64 = arith.constant 1.000000e+00 : f32
    %207 = vector.broadcast %cst_64 : f32 to vector<64x512xf32>
    %208 = arith.addf %207, %206 : vector<64x512xf32>
    %209 = arith.mulf %198, %208 : vector<64x512xf32>
    %210 = arith.truncf %209 : vector<64x512xf32> to vector<64x512xbf16>
    %c0_65 = arith.constant 0 : index
    %c0_66 = arith.constant 0 : index
    %211 = vector.load %arg11[%c0_65, %c0_66] : memref<512x128xbf16, #tpu.memory_space<vmem>>, vector<512x128xbf16>
    %cst_67 = arith.constant dense<0.000000e+00> : vector<64x128xf32>
    %212 = tpu.matmul %210, %211, %cst_67 {dimension_numbers = #tpu.dot_dimension_numbers<[1], [0], [0], [1], [0, 0, 1, 1], [], []>} : vector<64x512xbf16>, vector<512x128xbf16>, vector<64x128xf32> -> vector<64x128xf32>
    %c0_68 = arith.constant 0 : index
    %c0_69 = arith.constant 0 : index
    %213 = vector.load %arg12[%c0_68, %c0_69] : memref<1x128xf32, #tpu.memory_space<vmem>>, vector<1x128xf32>
    %214 = vector.broadcast %213 : vector<1x128xf32> to vector<64x128xf32>
    %215 = arith.addf %212, %214 : vector<64x128xf32>
    %216 = vector.broadcast %20 : vector<1x128xf32> to vector<64x128xf32>
    %217 = arith.mulf %216, %215 : vector<64x128xf32>
    %218 = arith.addf %165, %217 : vector<64x128xf32>
    %c0_70 = arith.constant 0 : index
    %c0_71 = arith.constant 0 : index
    %c0_72 = arith.constant 0 : index
    %219 = vector.load %arg15[%c0_70, %c0_71, %c0_72] : memref<1x64x128xf32, #tpu.memory_space<vmem>>, vector<1x64x128xf32>
    %220 = vector.shape_cast %219 : vector<1x64x128xf32> to vector<64x128xf32>
    %221 = vector.shape_cast %218 : vector<64x128xf32> to vector<1x64x128xf32>
    tpu.vector_store %arg15[%c0_70, %c0_71, %c0_72], %221 {strides = array<i32>} : memref<1x64x128xf32, #tpu.memory_space<vmem>>, vector<1x64x128xf32>,
    return
  }
  func.func @transform_0(%arg0: i32) -> (i32, i32, i32) {
    %c0_i32 = arith.constant 0 : i32
    %c0_i32_0 = arith.constant 0 : i32
    %c0_i32_1 = arith.constant 0 : i32
    return %arg0, %c0_i32, %c0_i32_0 : i32, i32, i32
  }
  func.func @transform_1(%arg0: i32) -> (i32, i32, i32) {
    %c0_i32 = arith.constant 0 : i32
    %c0_i32_0 = arith.constant 0 : i32
    %c0_i32_1 = arith.constant 0 : i32
    return %arg0, %c0_i32, %c0_i32_0 : i32, i32, i32
  }
  func.func @transform_2(%arg0: i32) -> (i32, i32) {
    %c0_i32 = arith.constant 0 : i32
    %c0_i32_0 = arith.constant 0 : i32
    %c0_i32_1 = arith.constant 0 : i32
    return %c0_i32, %c0_i32_0 : i32, i32
  }
  func.func @transform_3(%arg0: i32) -> (i32, i32) {
    %c0_i32 = arith.constant 0 : i32
    %c0_i32_0 = arith.constant 0 : i32
    %c0_i32_1 = arith.constant 0 : i32
    return %c0_i32, %c0_i32_0 : i32, i32
  }
  func.func @transform_4(%arg0: i32) -> (i32, i32) {
    %c0_i32 = arith.constant 0 : i32
    %c0_i32_0 = arith.constant 0 : i32
    %c0_i32_1 = arith.constant 0 : i32
    return %c0_i32, %c0_i32_0 : i32, i32
  }
  func.func @transform_5(%arg0: i32) -> (i32, i32) {
    %c0_i32 = arith.constant 0 : i32
    %c0_i32_0 = arith.constant 0 : i32
    %c0_i32_1 = arith.constant 0 : i32
    return %c0_i32, %c0_i32_0 : i32, i32
  }
  func.func @transform_6(%arg0: i32) -> (i32, i32) {
    %c0_i32 = arith.constant 0 : i32
    %c0_i32_0 = arith.constant 0 : i32
    %c0_i32_1 = arith.constant 0 : i32
    return %c0_i32, %c0_i32_0 : i32, i32
  }
  func.func @transform_7(%arg0: i32) -> (i32, i32) {
    %c0_i32 = arith.constant 0 : i32
    %c0_i32_0 = arith.constant 0 : i32
    %c0_i32_1 = arith.constant 0 : i32
    return %c0_i32, %c0_i32_0 : i32, i32
  }
  func.func @transform_8(%arg0: i32) -> (i32, i32) {
    %c0_i32 = arith.constant 0 : i32
    %c0_i32_0 = arith.constant 0 : i32
    %c0_i32_1 = arith.constant 0 : i32
    return %c0_i32, %c0_i32_0 : i32, i32
  }
  func.func @transform_9(%arg0: i32) -> (i32, i32) {
    %c0_i32 = arith.constant 0 : i32
    %c0_i32_0 = arith.constant 0 : i32
    %c0_i32_1 = arith.constant 0 : i32
    return %c0_i32, %c0_i32_0 : i32, i32
  }
  func.func @transform_10(%arg0: i32) -> (i32, i32) {
    %c0_i32 = arith.constant 0 : i32
    %c0_i32_0 = arith.constant 0 : i32
    %c0_i32_1 = arith.constant 0 : i32
    return %c0_i32, %c0_i32_0 : i32, i32
  }
  func.func @transform_11(%arg0: i32) -> (i32, i32) {
    %c0_i32 = arith.constant 0 : i32
    %c0_i32_0 = arith.constant 0 : i32
    %c0_i32_1 = arith.constant 0 : i32
    return %c0_i32, %c0_i32_0 : i32, i32
  }
  func.func @transform_12(%arg0: i32) -> (i32, i32) {
    %c0_i32 = arith.constant 0 : i32
    %c0_i32_0 = arith.constant 0 : i32
    %c0_i32_1 = arith.constant 0 : i32
    return %c0_i32, %c0_i32_0 : i32, i32
  }
  func.func @transform_13(%arg0: i32) -> (i32, i32) {
    %c0_i32 = arith.constant 0 : i32
    %c0_i32_0 = arith.constant 0 : i32
    %c0_i32_1 = arith.constant 0 : i32
    return %c0_i32, %c0_i32_0 : i32, i32
  }
  func.func @transform_14(%arg0: i32) -> (i32, i32, i32) {
    %c0_i32 = arith.constant 0 : i32
    %c0_i32_0 = arith.constant 0 : i32
    %c0_i32_1 = arith.constant 0 : i32
    return %arg0, %c0_i32, %c0_i32_0 : i32, i32, i32
  }
}

</mosaic_0001>

<bundles_post_ra>
// kernel: tpu_custom_call.1
= control target key start
LH: loop header
LB: loop body
LE: loop exit
PB: predicated region body
PF: predicated region fallthrough
CT: control target
= control target key end

     0   :  { %s8076_s0 = inlined_call_operand.hbm [shape: f32[2,64,128], index: 0, kind: input, shape index: {}]   ;;  %s8077_s1 = inlined_call_operand.hbm [shape: f32[2,1,64], index: 1, kind: input, shape index: {}]   ;;  %s8078_s2 = inlined_call_operand.hbm [shape: f32[64,128], index: 2, kind: input, shape index: {}]   ;;  %s8079_s3 = inlined_call_operand.hbm [shape: f32[64,128], index: 3, kind: input, shape index: {}]   ;;  %s8080_s4 = inlined_call_operand.vmem [shape: f32[1,128], index: 4, kind: input, shape index: {}]   ;;  %s8081_s5 = inlined_call_operand.hbm [shape: bf16[128,384], index: 5, kind: input, shape index: {}]   ;;  %s8082_s6 = inlined_call_operand.hbm [shape: bf16[128,128], index: 6, kind: input, shape index: {}]   ;;  %s8083_s7 = inlined_call_operand.vmem [shape: f32[1,128], index: 7, kind: input, shape index: {}]   ;;  %s8084_s8 = inlined_call_operand.hbm [shape: bf16[128,512], index: 8, kind: input, shape index: {}]   ;;  %s8085_s9 = inlined_call_operand.vmem [shape: f32[1,512], index: 9, kind: input, shape index: {}]   ;;  %s8086_s10 = inlined_call_operand.hbm [shape: bf16[512,128], index: 10, kind: input, shape index: {}]   ;;  %s8087_s11 = inlined_call_operand.vmem [shape: f32[1,128], index: 11, kind: input, shape index: {}]   ;;  %s8088_s12 = inlined_call_operand.hbm [shape: bf16[64,768], index: 12, kind: input, shape index: {}]   ;;  %s8089_s13 = inlined_call_operand.vmem [shape: f32[1,768], index: 13, kind: input, shape index: {}]   ;;  %s8090_s14 = inlined_call_operand.hbm [shape: f32[2,64,128], index: 14, kind: output, shape index: {}]  }
   0x1   :  { %8132 = sst [smem:[#allocation60_spill]] %s8076_s0 }
   0x2   :  { %8133 = sst [smem:[#allocation61_spill]] %s8078_s2 }
   0x3   :  { %8134 = sst [smem:[#allocation62_spill]] %s8079_s3 }
   0x4   :  { %8135 = sst [smem:[#allocation63_spill]] %s8080_s4 }
   0x5   :  { %8136 = sst [smem:[#allocation64_spill]] %s8081_s5 }
   0x6   :  { %8137 = sst [smem:[#allocation65_spill]] %s8082_s6 }
   0x7   :  { %8138 = sst [smem:[#allocation66_spill]] %s8083_s7 }
   0x8   :  { %8139 = sst [smem:[#allocation67_spill]] %s8085_s9 }
   0x9   :  { %8140 = sst [smem:[#allocation68_spill]] %s8087_s11 }
   0xa   :  { %8141 = sst [smem:[#allocation69_spill]] %s8089_s13 }
   0xb   :  { %8142 = sst [smem:[#allocation70_spill]] %s8090_s14 }
   0xc   :  { %19 = vsyncpa [#allocation3], 0 }
   0xd   :  { %21 = vsyncpa [#allocation3 + $0x1], 0 }
   0xe   :  { %22 = vsyncpa [#allocation6], 0 }
   0xf   :  { %24 = vsyncpa [#allocation6 + $0x1], 0 }
  0x10   :  { %25 = vsyncpa [#allocation9], 0 }
  0x11   :  { %26 = vsyncpa [#allocation12], 0 }
  0x12   :  { %27 = vsyncpa [#allocation15], 0 }
  0x13   :  { %28 = vsyncpa [#allocation4], 0 }
  0x14   :  { %30 = vsyncpa [#allocation4 + $0x1], 0  ;;  %s6240_s29 = smov 0   ;;  %s6242_s30 = smov 0  }
  0x15   :  { %s6244_s15 = smov 0   ;;  %s6246_s16 = smov 0  }
  0x16 LB: > { %s6137_s17 = smov [#allocation7]   ;;  %s6261_s19 = sadd.s32 4294967295, %s6135_s16   ;;  %s6135_s16 = sphi %s6246_s16, %s8252_s16   ;;  %s6131_s15 = sphi %s6244_s15, %s8251_s15   ;;  %s6127_s30 = sphi %s6242_s30, %s8250_s30   ;;  %s6123_s29 = sphi %s6240_s29, %s8249_s29  }
  0x17   : > { %s383_s18 = sshll.u32 %s6137_s17, 4  ;;  %p4623_p0 = scmp.ge.s32.totalorder %s6135_s16, 1  ;;  %s6266_s18 = int_to_ptr.vmem [resolvable:$true] %s383_s18 }
  0x18   : > { %p8095_p1 = scmp.eq.s32.totalorder %s6261_s19, 0  ;;  %p371_p2 = scmp.lt.s32.totalorder %s6135_s16, 3 }
  0x19   : > { %s6138_s21 = smov [#allocation8]   ;;  %s6139_s24 = smov [#allocation11]  }
  0x1a   : > { %p6268_p3 = pnand %p4623_p0, %p371_p2  ;;  %s396_s22 = sshll.u32 %s6138_s21, 4  ;;  %s6281_s22 = int_to_ptr.vmem [resolvable:$true] %s396_s22 }
  0x1b   : > { %s425_s25 = sshll.u32 %s6139_s24, 4  ;;  %s8145_s2 = sld [smem:[#allocation61_spill]]  ;;  %s6283_s25 = int_to_ptr.vmem [resolvable:$true] %s425_s25 }
  0x1c   : > { %s8143_s20 = scalar_select %p6268_p3, 1, 0 }
  0x1d   : > { %p5297_p5 = pneg %p6268_p3 }
  0x1f   : > { %p6277_p6 = pnand %p5297_p5, %p8095_p1 }
  0x21   : > { %s5793_s28 = scalar_lea.hbm %s8145_s2, 1024  ;;  %p6293_p8 = pneg %p6277_p6 }
  0x22   : > { %p5794_p7 = scmp.ne.s32.totalorder %s8145_s2, %s5793_s28  ;;  %p5800_p11 = scmp.lt.u32.totalorder %s5793_s28, %s8145_s2 }
  0x24   : > { %p5796_p9 = pnand %p6293_p8, %p5794_p7 }
  0x26   : > { %p5797_p10 = pneg %p5796_p9 }
  0x28   : > { %p5802_p12 = pnand %p5800_p11, %p5797_p10 }
  0x2a   : > { %5805 = shalt.err (!%p5802_p12)
}
  0x2b   : > { %s5806_s14 = scalar_lea.vmem %s6266_s18, 1024  ;;  %p5814_p5 = scmp.lt.s32.totalorder %s6266_s18, %s6266_s18 }
  0x2c   : > { %p5807_p13 = scmp.ne.s32.totalorder %s6266_s18, %s5806_s14  ;;  %p5815_p4 = scmp.lt.s32.totalorder %s5806_s14, %s5806_s14 }
  0x2e   : > { %p5809_p0 = pnand %p5807_p13, %p6293_p8  ;;  %p5816_p7 = por %p5815_p4, %p5814_p5 }
  0x30   : > { %p5810_p2 = pneg %p5809_p0 }
  0x32   : > { %p5817_p9 = pnand %p5816_p7, %p5810_p2 }
  0x34   : > { %5820 = shalt.err (!%p5817_p9)
}
  0x35   : > { %s8093_s26 = smov 128   ;;  %s8094_s11 = smov 8  }
  0x36   : > { %5300 = dma.hbm_to_vmem [thread:$0]  (!%p6277_p6), %s8145_s2, 1024, %s6266_s18, [#allocation6], %s8093_s26, %s8093_s26, %s8094_s11  }
  0x37   : > { %s8147_s3 = sld [smem:[#allocation62_spill]] }
  0x3d   : > { %s5821_s14 = scalar_lea.hbm %s8147_s3, 1024 }
  0x3e   : > { %p5822_p4 = scmp.ne.s32.totalorder %s8147_s3, %s5821_s14  ;;  %p5828_p12 = scmp.lt.u32.totalorder %s5821_s14, %s8147_s3 }
  0x40   : > { %p5824_p10 = pnand %p5822_p4, %p6293_p8 }
  0x42   : > { %p5825_p11 = pneg %p5824_p10 }
  0x44   : > { %p5830_p13 = pnand %p5828_p12, %p5825_p11 }
  0x46   : > { %5833 = shalt.err (!%p5830_p13)
}
  0x47   : > { %s5834_s18 = scalar_lea.vmem %s6281_s22, 1024  ;;  %p5842_p7 = scmp.lt.s32.totalorder %s6281_s22, %s6281_s22 }
  0x48   : > { %p5835_p0 = scmp.ne.s32.totalorder %s6281_s22, %s5834_s18  ;;  %p5843_p9 = scmp.lt.s32.totalorder %s5834_s18, %s5834_s18 }
  0x4a   : > { %p5837_p2 = pnand %p5835_p0, %p6293_p8  ;;  %p5844_p4 = por %p5843_p9, %p5842_p7 }
  0x4c   : > { %p5838_p5 = pneg %p5837_p2 }
  0x4e   : > { %p5845_p10 = pnand %p5844_p4, %p5838_p5 }
  0x50   : > { %5848 = shalt.err (!%p5845_p10)
}
  0x51   : > { %5303 = dma.hbm_to_vmem [thread:$0]  (!%p6277_p6), %s8147_s3, 1024, %s6281_s22, [#allocation9], %s8093_s26, %s8093_s26, %s8094_s11  }
  0x52   : > { %s8148_s6 = sld [smem:[#allocation65_spill]] }
  0x58   : > { %s5849_s27 = scalar_lea.hbm %s8148_s6, 1024 }
  0x59   : > { %p5850_p11 = scmp.ne.s32.totalorder %s8148_s6, %s5849_s27  ;;  %p5856_p0 = scmp.lt.u32.totalorder %s5849_s27, %s8148_s6 }
  0x5b   : > { %p5852_p12 = pnand %p5850_p11, %p6293_p8 }
  0x5d   : > { %p5853_p13 = pneg %p5852_p12 }
  0x5f   : > { %p5858_p2 = pnand %p5856_p0, %p5853_p13 }
  0x61   : > { %5861 = shalt.err (!%p5858_p2)
}
  0x62   : > { %s5862_s22 = scalar_lea.vmem %s6283_s25, 1024  ;;  %p5870_p4 = scmp.lt.s32.totalorder %s6283_s25, %s6283_s25 }
  0x63   : > { %p5863_p5 = scmp.ne.s32.totalorder %s6283_s25, %s5862_s22  ;;  %p5871_p10 = scmp.lt.s32.totalorder %s5862_s22, %s5862_s22 }
  0x65   : > { %p5865_p7 = pnand %p5863_p5, %p6293_p8  ;;  %p5872_p11 = por %p5871_p10, %p5870_p4 }
  0x67   : > { %p5866_p9 = pneg %p5865_p7 }
  0x69   : > { %p5873_p12 = pnand %p5872_p11, %p5866_p9 }
  0x6b   : > { %5876 = shalt.err (!%p5873_p12)
}
  0x6c   : > { %s6142_s18 = smov 64   ;;  %s6143_s4 = smov 4  }
  0x6d   : > { %5309 = dma.hbm_to_vmem [thread:$0]  (!%p6277_p6), %s8148_s6, 1024, %s6283_s25, [#allocation12], %s6142_s18, %s6142_s18, %s6143_s4  }
  0x6e   : > { %s6144_s13 = smov [#allocation14]   ;;  %s6145_s28 = smov [#allocation10]  }
  0x6f   : > { %s457_s27 = sshll.u32 %s6144_s13, 4  ;;  %s412_s17 = sshll.u32 %s6145_s28, 4  ;;  %s458_s27 = int_to_ptr.vmem [resolvable:$true] %s457_s27  ;;  %s413_s17 = int_to_ptr.vmem [resolvable:$true] %s412_s17 }
  0x70   : > { %s5877_s22 = scalar_lea.hbm %s8086_s10, 4096 }
  0x71   : > { %p5878_p13 = scmp.ne.s32.totalorder %s8086_s10, %s5877_s22  ;;  %p5884_p5 = scmp.lt.u32.totalorder %s5877_s22, %s8086_s10 }
  0x73   : > { %p5880_p0 = pnand %p5878_p13, %p6293_p8 }
  0x75   : > { %p5881_p2 = pneg %p5880_p0 }
  0x77   : > { %p5886_p7 = pnand %p5884_p5, %p5881_p2 }
  0x79   : > { %5889 = shalt.err (!%p5886_p7)
}
  0x7a   : > { %s5890_s25 = scalar_lea.vmem %s458_s27, 4096  ;;  %p5898_p11 = scmp.lt.s32.totalorder %s458_s27, %s458_s27 }
  0x7b   : > { %p5891_p9 = scmp.ne.s32.totalorder %s458_s27, %s5890_s25  ;;  %p5899_p12 = scmp.lt.s32.totalorder %s5890_s25, %s5890_s25 }
  0x7d   : > { %p5893_p4 = pnand %p5891_p9, %p6293_p8  ;;  %p5900_p1 = por %p5899_p12, %p5898_p11 }
  0x7f   : > { %p5894_p10 = pneg %p5893_p4 }
  0x81   : > { %p5901_p3 = pnand %p5900_p1, %p5894_p10 }
  0x83   : > { %5904 = shalt.err (!%p5901_p3)
}
  0x84   : > { %5315 = dma.hbm_to_vmem [thread:$0]  (!%p6277_p6), %s8086_s10, 4096, %s458_s27, [#allocation15], %s6142_s18, %s6142_s18, %s6143_s4  }
  0x85   : > { %s8149_s5 = sld [smem:[#allocation64_spill]] }
  0x8b   : > { %s5905_s7 = scalar_lea.hbm %s8149_s5, 3072 }
  0x8c   : > { %p5906_p13 = scmp.ne.s32.totalorder %s8149_s5, %s5905_s7  ;;  %p5912_p3 = scmp.lt.u32.totalorder %s5905_s7, %s8149_s5 }
  0x8e   : > { %p5908_p0 = pnand %p5906_p13, %p6293_p8 }
  0x90   : > { %p5909_p1 = pneg %p5908_p0 }
  0x92   : > { %p5914_p2 = pnand %p5912_p3, %p5909_p1 }
  0x94   : > { %5917 = shalt.err (!%p5914_p2)
}
  0x95   : > { %s5918_s14 = scalar_lea.vmem %s413_s17, 3072  ;;  %p5926_p4 = scmp.lt.s32.totalorder %s413_s17, %s413_s17 }
  0x96   : > { %p5919_p5 = scmp.ne.s32.totalorder %s413_s17, %s5918_s14  ;;  %p5927_p10 = scmp.lt.s32.totalorder %s5918_s14, %s5918_s14 }
  0x98   : > { %p5921_p7 = pnand %p5919_p5, %p6293_p8  ;;  %p5928_p11 = por %p5927_p10, %p5926_p4 }
  0x9a   : > { %p5922_p9 = pneg %p5921_p7 }
  0x9c   : > { %p5929_p12 = pnand %p5928_p11, %p5922_p9 }
  0x9e   : > { %5932 = shalt.err (!%p5929_p12)
}
  0x9f   : > { %s6146_s18 = smov 192   ;;  %s6147_s4 = smov 12  }
  0xa0   : > { %5306 = dma.hbm_to_vmem [thread:$0]  (!%p6277_p6), %s8149_s5, 3072, %s413_s17, [#allocation9], %s6146_s18, %s6146_s18, %s6147_s4  }
  0xa1   : > { %s6148_s25 = smov [#allocation13]   ;;  %s5933_s3 = scalar_lea.hbm %s8084_s8, 4096 }
  0xa2   : > { %s441_s26 = sshll.u32 %s6148_s25, 4  ;;  %p5934_p13 = scmp.ne.s32.totalorder %s8084_s8, %s5933_s3  ;;  %s442_s26 = int_to_ptr.vmem [resolvable:$true] %s441_s26 }
  0xa3   : > { %p5940_p3 = scmp.lt.u32.totalorder %s5933_s3, %s8084_s8 }
  0xa4   : > { %p5936_p0 = pnand %p5934_p13, %p6293_p8 }
  0xa6   : > { %p5937_p1 = pneg %p5936_p0 }
  0xa8   : > { %p5942_p2 = pnand %p5940_p3, %p5937_p1 }
  0xaa   : > { %5945 = shalt.err (!%p5942_p2)
}
  0xab   : > { %s5946_s17 = scalar_lea.vmem %s442_s26, 4096  ;;  %p5954_p4 = scmp.lt.s32.totalorder %s442_s26, %s442_s26 }
  0xac   : > { %p5947_p5 = scmp.ne.s32.totalorder %s442_s26, %s5946_s17  ;;  %p5955_p10 = scmp.lt.s32.totalorder %s5946_s17, %s5946_s17 }
  0xae   : > { %p5949_p7 = pnand %p5947_p5, %p6293_p8  ;;  %p5956_p11 = por %p5955_p10, %p5954_p4 }
  0xb0   : > { %p5950_p9 = pneg %p5949_p7 }
  0xb2   : > { %p5957_p12 = pnand %p5956_p11, %p5950_p9 }
  0xb4   : > { %5960 = shalt.err (!%p5957_p12)
}
  0xb5   : > { %s6149_s24 = smov 256   ;;  %s6150_s14 = smov 16  }
  0xb6   : > { %5312 = dma.hbm_to_vmem [thread:$0]  (!%p6277_p6), %s8084_s8, 4096, %s442_s26, [#allocation12], %s6149_s24, %s6149_s24, %s6150_s14  }
  0xb7   : > { %s6151_s27 = smov [#allocation16]   ;;  %s5961_s2 = scalar_lea.hbm %s8088_s12, 3072 }
  0xb8   : > { %s473_s22 = sshll.u32 %s6151_s27, 4  ;;  %p5962_p13 = scmp.ne.s32.totalorder %s8088_s12, %s5961_s2  ;;  %s474_s22 = int_to_ptr.vmem [resolvable:$true] %s473_s22 }
  0xb9   : > { %p5968_p3 = scmp.lt.u32.totalorder %s5961_s2, %s8088_s12 }
  0xba   : > { %p5964_p0 = pnand %p5962_p13, %p6293_p8 }
  0xbc   : > { %p5965_p1 = pneg %p5964_p0 }
  0xbe   : > { %p5970_p2 = pnand %p5968_p3, %p5965_p1 }
  0xc0   : > { %5973 = shalt.err (!%p5970_p2)
}
  0xc1   : > { %s5974_s26 = scalar_lea.vmem %s474_s22, 3072  ;;  %p5982_p4 = scmp.lt.s32.totalorder %s474_s22, %s474_s22 }
  0xc2   : > { %p5975_p5 = scmp.ne.s32.totalorder %s474_s22, %s5974_s26  ;;  %p5983_p10 = scmp.lt.s32.totalorder %s5974_s26, %s5974_s26 }
  0xc4   : > { %p5977_p7 = pnand %p5975_p5, %p6293_p8  ;;  %p5984_p11 = por %p5983_p10, %p5982_p4 }
  0xc6   : > { %p5978_p9 = pneg %p5977_p7 }
  0xc8   : > { %p5985_p12 = pnand %p5984_p11, %p5978_p9 }
  0xca   : > { %5988 = shalt.err (!%p5985_p12)
}
  0xcb   : > { %s6152_s28 = smov 384   ;;  %s6153_s21 = smov 24  }
  0xcc   : > { %5318 = dma.hbm_to_vmem [thread:$0]  (!%p6277_p6), %s8088_s12, 3072, %s474_s22, [#allocation15], %s6152_s28, %s6152_s28, %s6153_s21  }
  0xcd   : > { %s4622_s14 = sadd.s32 4294967294, %s6135_s16   ;;  %s6440_s18 = sadd.s32 1, %s6135_s16  }
  0xce   : > { %s43_s4 = sadd.s32 1, %s6131_s15  ;;  %s40_s27 = ssub.s32 %s6135_s16, %s6440_s18 }
  0xcf   : > { %p50_p8 = scmp.ne.s32.totalorder %s6131_s15, %s6127_s30  ;;  %p41_p13 = scmp.eq.s32.totalorder %s40_s27, 0 }
  0xd0   : > { %p51_p0 = scmp.eq.s32.totalorder %s6135_s16, 0  ;;  %p56_p1 = scmp.ne.s32.totalorder %s6127_s30, %s6123_s29 }
  0xd1   : > { %p358_p3 = scmp.eq.s32.totalorder %s6261_s19, 1  ;;  %p8150_p5 = scmp.eq.s32.totalorder %s6261_s19, 0 }
  0xd2   : > { %s6452_s23 = scalar_select %p41_p13, %s6131_s15, %s43_s4  }
  0xd3   : > { %p52_p2 = por %p51_p0, %p50_p8  ;;  %p6456_p7 = por %p8150_p5, %p56_p1 }
  0xd4   : > { %p6460_p6 = por %p358_p3, %p50_p8  ;;  %p364_p9 = scmp.eq.s32.totalorder %s4622_s14, 1 }
  0xd5   : > { %s8151_s22 = scalar_select %p6456_p7, 1, 0 }
  0xd6   : > { %s8152_s25 = scalar_select %p6460_p6, 1, 0 }
  0xd7   : > { %p5337_p4 = scmp.lt.s32.totalorder %s6135_s16, 2  ;;  %s6466_s11 = sand.u32 1, %s6131_s15  }
  0xd8   : > { %p6468_p10 = por %p364_p9, %p56_p1  ;;  %s4632_s3 = sshll.u32 %s6466_s11, 6 }
  0xd9   : > { %s4825_s7 = sshll.u32 %s6135_s16, 10  ;;  %s8154_s0 = sld [smem:[#allocation60_spill]] }
  0xda   : > { %s8153_s2 = scalar_select %p6468_p10, 1, 0 }
  0xdb   : > { %s494_s28 = scalar_lea.vmem [#allocation2], %s4632_s3  ;;  %p6479_p11 = pnand %p5337_p4, %p52_p2 }
  0xdc   : > { %s501_s21 = sshll.u32 %s494_s28, 4  ;;  %s491_s14 = scalar_lea.sflag [#allocation3], %s6466_s11  ;;  %s6483_s21 = int_to_ptr.vmem [resolvable:$true] %s501_s21 }
  0xdd   : > { %p5991_p8 = pneg %p6479_p11 }
  0xdf   : > { %s6477_s26 = scalar_lea.hbm %s8154_s0, %s4825_s7  ;;  %s5994_s7 = scalar_lea.hbm %s8154_s0, 2048 }
  0xe0   : > { %s5989_s4 = scalar_lea.hbm %s6477_s26, 1024  ;;  %p5995_p1 = scmp.lt.u32.totalorder %s6477_s26, %s8154_s0 }
  0xe1   : > { %p5990_p12 = scmp.ne.s32.totalorder %s6477_s26, %s5989_s4  ;;  %p5996_p3 = scmp.lt.u32.totalorder %s5994_s7, %s5989_s4 }
  0xe2   : > { %p5998_p5 = scmp.lt.u32.totalorder %s5989_s4, %s6477_s26 }
  0xe3   : > { %p5992_p13 = pnand %p5991_p8, %p5990_p12  ;;  %p5997_p2 = por %p5996_p3, %p5995_p1 }
  0xe5   : > { %p5993_p0 = pneg %p5992_p13  ;;  %p5999_p9 = por %p5998_p5, %p5997_p2 }
  0xe7   : > { %p6000_p4 = pnand %p5999_p9, %p5993_p0 }
  0xe9   : > { %6003 = shalt.err (!%p6000_p4)
}
  0xea   : > { %s6004_s28 = scalar_lea.vmem %s6483_s21, 1024  ;;  %s6154_s27 = smov [#allocation2]  }
  0xeb   : > { %p6005_p12 = scmp.ne.s32.totalorder %s6483_s21, %s6004_s28  ;;  %s6009_s3 = sshll.u32 %s6154_s27, 4  ;;  %s6010_s3 = int_to_ptr.vmem [resolvable:$false] %s6009_s3 }
  0xec   : > { %s6011_s9 = scalar_lea.vmem %s6010_s3, 2048  ;;  %p6012_p6 = scmp.lt.s32.totalorder %s6483_s21, %s6010_s3 }
  0xed   : > { %p6007_p13 = pnand %p6005_p12, %p5991_p8  ;;  %p6013_p1 = scmp.lt.s32.totalorder %s6011_s9, %s6004_s28 }
  0xef   : > { %p6008_p10 = pneg %p6007_p13  ;;  %p6014_p3 = por %p6013_p1, %p6012_p6 }
  0xf1   : > { %p6015_p2 = pnand %p6014_p3, %p6008_p10 }
  0xf3   : > { %6018 = shalt.err (!%p6015_p2)
}
  0xf4   : > { %s8156_s4 = smov 8   ;;  %s8157_s7 = smov 128  }
  0xf5   : > { %5322 = dma.hbm_to_vmem [thread:$0]  (!%p6479_p11), %s6477_s26, 1024, %s6483_s21, %s491_s14, %s8157_s7, %s8157_s7, %s8156_s4  }
  0xf6   : > { %s4635_s13 = sshll.u32 %s6135_s16, 4  ;;  %s514_s9 = scalar_lea.vmem [#allocation5], %s6466_s11 }
  0xf7   : > { %s6521_s3 = scalar_lea.hbm %s8077_s1, %s4635_s13  ;;  %s521_s24 = sshll.u32 %s514_s9, 4  ;;  %s522_s24 = int_to_ptr.vmem [resolvable:$true] %s521_s24 }
  0xf8   : > { %s8158_s0 = sand.u32 1, %s6135_s16   ;;  %s6019_s6 = scalar_lea.hbm %s6521_s3, 16 }
  0xf9   : > { %s512_s5 = scalar_lea.sflag [#allocation6], %s8158_s0  ;;  %p6020_p6 = scmp.ne.s32.totalorder %s6521_s3, %s6019_s6 }
  0xfa   : > { %s6024_s14 = scalar_lea.hbm %s8077_s1, 32  ;;  %p6025_p5 = scmp.lt.u32.totalorder %s6521_s3, %s8077_s1 }
  0xfb   : > { %p6022_p10 = pnand %p6020_p6, %p5991_p8  ;;  %p6026_p9 = scmp.lt.u32.totalorder %s6024_s14, %s6019_s6 }
  0xfc   : > { %p6028_p12 = scmp.lt.u32.totalorder %s6019_s6, %s6521_s3 }
  0xfd   : > { %p6023_p0 = pneg %p6022_p10  ;;  %p6027_p4 = por %p6026_p9, %p6025_p5 }
  0xff   : > { %p6029_p13 = por %p6028_p12, %p6027_p4 }
 0x101   : > { %p6030_p1 = pnand %p6029_p13, %p6023_p0 }
 0x103   : > { %6033 = shalt.err (!%p6030_p1)
}
 0x104   : > { %s6034_s0 = scalar_lea.vmem %s522_s24, 16  ;;  %s6155_s11 = smov [#allocation5]  }
 0x105   : > { %p6035_p3 = scmp.ne.s32.totalorder %s522_s24, %s6034_s0  ;;  %s6039_s13 = sshll.u32 %s6155_s11, 4  ;;  %s6040_s13 = int_to_ptr.vmem [resolvable:$false] %s6039_s13 }
 0x106   : > { %s6041_s27 = scalar_lea.vmem %s6040_s13, 32  ;;  %p6042_p10 = scmp.lt.s32.totalorder %s522_s24, %s6040_s13 }
 0x107   : > { %p6037_p2 = pnand %p6035_p3, %p5991_p8  ;;  %p6043_p7 = scmp.lt.s32.totalorder %s6041_s27, %s6034_s0 }
 0x109   : > { %p6038_p6 = pneg %p6037_p2  ;;  %p6044_p5 = por %p6043_p7, %p6042_p10 }
 0x10b   : > { %p6045_p9 = pnand %p6044_p5, %p6038_p6 }
 0x10d   : > { %6048 = shalt.err (!%p6045_p9)
}
 0x10e   : > { %5325 = dma.hbm_to_vmem [thread:$0]  (!%p6479_p11), %s6521_s3, 16, %s522_s24, %s512_s5  }
 0x10f   : > { %p8159_p0 = scmp.ne.s32.totalorder %s8143_s20, 0 }
 0x111   : > { %530 = sbr.rel (%p8159_p0) target bundleno = 4099 (0x1003), region = 76 }
 0x118   : > { %s6548_s6 = sand.u32 1, %s6127_s30   ;;  %p8160_p7 = scmp.ne.s32.totalorder %s8151_s22, 0 }
 0x119   : > { %s4637_s28 = sshll.u32 %s6548_s6, 6  ;;  %s533_s9 = scalar_lea.sflag [#allocation3], %s6548_s6 }
 0x11a   : > { %s6554_s26 = scalar_lea.vmem [#allocation2], %s4637_s28 }
 0x11b   : > { %6094 = dma.done.wait (%p8160_p7), %s533_s9, 1024  }
 0x11c   : > { %6096 = vsyncadd (%p8160_p7), %s533_s9, 4294966272  ;;  %s541_s5 = sand.u32 1, %s6261_s19   ;;  %s544_s17 = scalar_lea.vmem [#allocation5], %s6548_s6 }
 0x11d   : > { %s542_s20 = scalar_lea.sflag [#allocation6], %s541_s5 }
 0x11e   : > { %6098 = dma.done.wait (%p8160_p7), %s542_s20, 16  }
 0x11f   : > { %6100 = vsyncadd (%p8160_p7), %s542_s20, 4294967280  ;;  %p8161_p11 = scmp.eq.s32.totalorder %s6261_s19, 0 }
 0x121   : > { %6102 = dma.done.wait (%p8161_p11), [#allocation6], 1024   ;;  %p8162_p8 = pmov %p8161_p11 }
 0x123   : > { %6104 = vsyncadd (%p8162_p8), [#allocation6], 4294966272  ;;  %p8163_p4 = pmov %p8162_p8 }
 0x125   : > { %6106 = dma.done.wait (%p8163_p4), [#allocation9], 4096   ;;  %p8164_p12 = pmov %p8163_p4 }
 0x126   : > { %p8165_p13 = pmov %p8163_p4 }
 0x127   : > { %6108 = vsyncadd (%p8164_p12), [#allocation9], 4294963200 }
 0x128   : > { %6110 = dma.done.wait (%p8165_p13), [#allocation12], 5120   ;;  %p8166_p1 = pmov %p8163_p4 }
 0x12a   : > { %6112 = vsyncadd (%p8166_p1), [#allocation12], 4294962176  ;;  %p8167_p3 = pmov %p8166_p1 }
 0x12b   : > { %p8168_p2 = pmov %p8166_p1 }
 0x12c   : > { %6114 = dma.done.wait (%p8167_p3), [#allocation15], 7168  }
 0x12d   : > { %6116 = vsyncadd (%p8168_p2), [#allocation15], 4294960128  ;;  %v6156_v0 = vmov 0   ;;  %v6585_v1 = vld [vmem:[%s6554_s26] sm:$0xff]  ;;  %v6588_v2 = vld [vmem:[%s6554_s26 + $0x10] sm:$0xff]  ;;  %vm824_vm0 = vcmask 523264  }
 0x12e   : > { %860 = vmatprep.mubr.bf16.mxu0 %v6156_v0  ;;  %901 = vmatprep.mubr.bf16.mxu1 %v6156_v0  ;;  %v6593_v3 = vld [vmem:[%s6554_s26 + $0x8] sm:$0xff]  ;;  %v6596_v4 = vld [vmem:[%s6554_s26 + $0x18] sm:$0xff]  ;;  %v6601_v8 = vld [vmem:[%s6554_s26 + $0x20] sm:$0xff]  ;;  %s8170_s3 = sld [smem:[#allocation69_spill]]  ;;  %s8172_s4 = sld [smem:[#allocation63_spill]]  ;;  %vm1447_vm1 = vcmask 130048  }
 0x12f   : > { %954 = vadd.xlane.f32.xlu0 %v6585_v1  ;;  %958 = vadd.xlane.f32.xlu1 %v6588_v2  ;;  %v5403_v5 = vld [vmem:[#allocation16 + $0x4] ss:$24 sps:$4 sm:$0xff]   ;;  %v5405_v6 = vld [vmem:[#allocation16] ss:$24 sps:$4 sm:$0xff]   ;;  %v5406_v7 = vld [vmem:[#allocation16 + $0x34] ss:$24 sps:$4 sm:$0xff]  }
 0x130   : > { %v6604_v9 = vld [vmem:[%s6554_s26 + $0x28] sm:$0xff]  ;;  %828 = vmatprep.subr.bf16.mxu0 %v5403_v5  ;;  %v6607_v11 = vld [vmem:[%s6554_s26 + $0x30] sm:$0xff]  ;;  %v6610_v12 = vld [vmem:[%s6554_s26 + $0x38] sm:$0xff]  ;;  %s6157_s7 = smov 112   ;;  %s6158_s0 = smov 16   ;;  %vm1456_vm2 = vcmask 261120  }
 0x131   : > { %829 = vmatpush1.bf16.msra.mxu0 %v5405_v6  ;;  %v5408_v10 = vld [vmem:[#allocation16 + $0x30] ss:$24 sps:$4 sm:$0xff]   ;;  %v5409_v13 = vld [vmem:[#allocation16 + $0x64] ss:$24 sps:$4 sm:$0xff]   ;;  %v5411_v14 = vld [vmem:[#allocation16 + $0x60] ss:$24 sps:$4 sm:$0xff]  }
 0x132   : > { %830 = vmatprep.subr.bf16.mxu0 %v5406_v7  ;;  %v5412_v15 = vld [vmem:[#allocation16 + $0x94] ss:$24 sps:$4 sm:$0xff]   ;;  %v5414_v16 = vld [vmem:[#allocation16 + $0x90] ss:$24 sps:$4 sm:$0xff]   ;;  %v630_v17 = vld [vmem:[%s544_s17] sm:$0x1] }
 0x133   : > { %956 = vadd.xlane.f32.xlu0 %v6593_v3  ;;  %960 = vadd.xlane.f32.xlu1 %v6596_v4  ;;  %v647_v18 = vpack.c.bf16 %v630_v17, %v630_v17  ;;  %v5415_v19 = vld [vmem:[#allocation16 + $0xc] ss:$24 sps:$4 sm:$0xff]   ;;  %v5417_v20 = vld [vmem:[#allocation16 + $0x8] ss:$24 sps:$4 sm:$0xff]   ;;  %v5418_v21 = vld [vmem:[#allocation16 + $0x3c] ss:$24 sps:$4 sm:$0xff]  }
 0x134   : > { %v5421_v22 = vld [vmem:[#allocation16 + $0x10] ss:$24 sps:$4 sm:$0xff]   ;;  %v5423_v23 = vld [vmem:[#allocation16 + $0x14] ss:$24 sps:$4 sm:$0xff]   ;;  %869 = vmatprep.subr.bf16.mxu1 %v5415_v19  ;;  %v5429_v25 = vld [vmem:[#allocation16 + $0x44] ss:$24 sps:$4 sm:$0xff]  }
 0x135   : > { %831 = vmatpush1.bf16.msra.mxu0 %v5408_v10  ;;  %870 = vmatpush1.bf16.msra.mxu1 %v5417_v20  ;;  %v5420_v24 = vld [vmem:[#allocation16 + $0x38] ss:$24 sps:$4 sm:$0xff]   ;;  %v5424_v26 = vld [vmem:[#allocation16 + $0x6c] ss:$24 sps:$4 sm:$0xff]   ;;  %v5426_v28 = vld [vmem:[#allocation16 + $0x68] ss:$24 sps:$4 sm:$0xff]  }
 0x136   : > { %832 = vmatprep.subr.bf16.mxu0 %v5409_v13  ;;  %871 = vmatprep.subr.bf16.mxu1 %v5418_v21  ;;  %v5427_v27 = vld [vmem:[#allocation16 + $0x40] ss:$24 sps:$4 sm:$0xff]   ;;  %v5435_v29 = vld [vmem:[#allocation16 + $0x74] ss:$24 sps:$4 sm:$0xff]   ;;  %v5433_v31 = vld [vmem:[#allocation16 + $0x70] ss:$24 sps:$4 sm:$0xff]  }
 0x137   : > { %962 = vadd.xlane.f32.xlu0 %v6601_v8  ;;  %964 = vadd.xlane.f32.xlu1 %v6604_v9  ;;  %v5430_v30 = vld [vmem:[#allocation16 + $0x9c] ss:$24 sps:$4 sm:$0xff]   ;;  %v5432_v33 = vld [vmem:[#allocation16 + $0x98] ss:$24 sps:$4 sm:$0xff]   ;;  %v5439_v36 = vld [vmem:[#allocation10] ss:$12 sps:$4 sm:$0xff]  }
 0x138   : > { %v5438_v32 = vld [vmem:[#allocation16 + $0xa4] ss:$24 sps:$4 sm:$0xff]   ;;  %v5436_v34 = vld [vmem:[#allocation16 + $0xa0] ss:$24 sps:$4 sm:$0xff]   ;;  %v5445_v7 = vld [vmem:[#allocation10 + $0x8] ss:$12 sps:$4 sm:$0xff]  }
 0x139   : > { %833 = vmatpush1.bf16.msra.mxu0 %v5411_v14  ;;  %872 = vmatpush1.bf16.msra.mxu1 %v5420_v24  ;;  %v5441_v35 = vld [vmem:[#allocation10 + $0x4] ss:$12 sps:$4 sm:$0xff]   ;;  %v5444_v6 = vld [vmem:[#allocation10 + $0x1c] ss:$12 sps:$4 sm:$0xff]   ;;  %v5449_v10 = vld [vmem:[#allocation10 + $0x20] ss:$12 sps:$4 sm:$0xff]  }
 0x13a   : > { %834 = vmatprep.subr.bf16.mxu0 %v5412_v15  ;;  %873 = vmatprep.subr.bf16.mxu1 %v5424_v26  ;;  %v5453_v13 = vld [vmem:[#allocation10 + $0x38] ss:$12 sps:$4 sm:$0xff]   ;;  %v5450_v14 = vld [vmem:[#allocation10 + $0x48] ss:$12 sps:$4 sm:$0xff]   ;;  %v5454_v17 = vld [vmem:[#allocation10 + $0x60] ss:$12 sps:$4 sm:$0xff]  }
 0x13b   : > { %966 = vadd.xlane.f32.xlu0 %v6607_v11  ;;  %968 = vadd.xlane.f32.xlu1 %v6610_v12  ;;  %v5456_v15 = vld [vmem:[#allocation10 + $0x64] ss:$12 sps:$4 sm:$0xff]   ;;  %v5461_v19 = vld [vmem:[#allocation10 + $0x68] ss:$12 sps:$4 sm:$0xff]   ;;  %vm1465_vm3 = vcmask 392192   ;;  %vm1482_vm4 = vcmask 654336  }
 0x13c   : > { %v5458_v20 = vld [vmem:[#allocation10 + $0x78] ss:$12 sps:$4 sm:$0xff]   ;;  %v5464_v21 = vld [vmem:[#allocation10 + $0x94] ss:$12 sps:$4 sm:$0xff]   ;;  %vm1491_vm5 = vcmask 785408   ;;  %vm1500_vm6 = vcmask 916480  }
 0x13d   : > { %835 = vmatpush1.bf16.msra.mxu0 %v5414_v16  ;;  %874 = vmatpush1.bf16.msra.mxu1 %v5426_v28  ;;  %v5457_v16 = vld [vmem:[#allocation10 + $0x50] ss:$12 sps:$4 sm:$0xff]   ;;  %v5466_v24 = vld [vmem:[#allocation10 + $0xa8] ss:$12 sps:$4 sm:$0xff]   ;;  %v5469_v26 = vld [vmem:[#allocation10 + $0x98] ss:$12 sps:$4 sm:$0xff]  }
 0x13e   : > { %910 = vmatprep.subr.bf16.mxu0 %v5423_v23  ;;  %875 = vmatprep.subr.bf16.mxu1 %v5430_v30  ;;  %v5462_v23 = vld [vmem:[#allocation10 + $0x90] ss:$12 sps:$4 sm:$0xff]   ;;  %s6159_s11 = smov 96   ;;  %s6160_s13 = smov 64  }
 0x13f   : > { %s6161_s27 = smov 32   ;;  %s8182_s17 = sld [smem:[#allocation66_spill]] }
 0x140   : > { %4670 = vmatmul.mubr.msk.bf16.vlgmr.msra.gmra.mrb[0].mxu0 %vm824_vm0, %v647_v18  ;;  %s8197_s21 = sld [smem:[#allocation67_spill]]  ;;  %p8246_p10 = scmp.ne.s32.totalorder %s8152_s25, 0 }
 0x141   : > { %942 = vmatprep.mubr.bf16.mxu0 %v6156_v0  ;;  %911 = vmatpush1.bf16.msra.mxu0 %v5421_v22  ;;  %v5465_v22 = vld [vmem:[#allocation10 + $0x80] ss:$12 sps:$4 sm:$0xff]   ;;  %s6162_s22 = smov [#allocation17]  }
 0x142   : > { %912 = vmatprep.subr.bf16.mxu0 %v5429_v25  ;;  %876 = vmatpush1.bf16.msra.mxu1 %v5432_v33  ;;  %v5468_v25 = vld [vmem:[#allocation10 + $0xac] ss:$12 sps:$4 sm:$0xff]   ;;  %s6053_s24 = sshll.u32 %s6162_s22, 4  ;;  %s6054_s24 = int_to_ptr.vmem [resolvable:$false] %s6053_s24 }
 0x143   : > { %1245 = vmatprep.subr.bf16.mxu1 %v5441_v35 }
 0x145   : > { %913 = vmatpush1.bf16.msra.mxu0 %v5427_v27  ;;  %4671 = vmatmul.mubr.msk.bf16.vlgmr.msra.gmra.mrb[0].mxu1 %vm824_vm0, %v647_v18  ;;  %v5470_v27 = vld [vmem:[#allocation10 + $0xb0] ss:$12 sps:$4 sm:$0xff]  }
 0x146   : > { %914 = vmatprep.subr.bf16.mxu0 %v5435_v29  ;;  %1246 = vmatpush1.bf16.msra.mxu1 %v5439_v36 }
 0x147   : > { %1277 = vmatprep.mubr.bf16.mxu1 %v6156_v0  ;;  %1247 = vmatprep.subr.bf16.mxu1 %v5444_v6 }
 0x149   : > { %915 = vmatpush1.bf16.msra.mxu0 %v5433_v31 }
 0x14a   : > { %916 = vmatprep.subr.bf16.mxu0 %v5438_v32 }
 0x14d   : > { %917 = vmatpush1.bf16.msra.mxu0 %v5436_v34 }
 0x14e   : > { %5007 = vmatprep.subr.bf16.mxu0 %v5445_v7 }
 0x150   : > { %4672 = vmatmul.mubr.msk.bf16.vlgmr.msra.gmra.mrb[4].mxu0 %vm824_vm0, %v647_v18  ;;  %v5460_v18 = vld [vmem:[#allocation10 + $0x7c] ss:$12 sps:$4 sm:$0xff]  }
 0x151   : > { %5008 = vmatpush3.bf16.msra.mxu0 %v5445_v7 }
 0x152   : > { %5009 = vmatprep.subr.bf16.mxu0 %v5449_v10 }
 0x155   : > { %5010 = vmatpush3.bf16.msra.mxu0 %v5449_v10 }
 0x156   : > { %5011 = vmatprep.subr.bf16.mxu0 %v5453_v13 }
 0x159   : > { %5012 = vmatpush3.bf16.msra.mxu0 %v5453_v13 }
 0x15a   : > { %5013 = vmatprep.subr.bf16.mxu0 %v5457_v16 }
 0x15d   : > { %5014 = vmatpush3.bf16.msra.mxu0 %v5457_v16 }
 0x15e   : > { %5015 = vmatprep.subr.bf16.mxu0 %v5461_v19 }
 0x161   : > { %5016 = vmatpush3.bf16.msra.mxu0 %v5461_v19 }
 0x162   : > { %5017 = vmatprep.subr.bf16.mxu0 %v5465_v22 }
 0x165   : > { %5018 = vmatpush3.bf16.msra.mxu0 %v5465_v22 }
 0x166   : > { %5019 = vmatprep.subr.bf16.mxu0 %v5469_v26 }
 0x169   : > { %5020 = vmatpush3.bf16.msra.mxu0 %v5469_v26 }
 0x16a   : > { %5021 = vmatprep.subr.bf16.mxu0 %v5470_v27 }
 0x16d   : > { %5022 = vmatpush3.bf16.msra.mxu0 %v5470_v27 }
 0x1bc   : > { %v955_v37 = vpop.xlane.xlu0 %954  ;;  %v959_v38 = vpop.xlane.xlu1 %958 }
 0x1bd   : > { %v971_v39 = vmul.f32 0.0078125, %v955_v37  ;;  %v973_v40 = vmul.f32 0.0078125, %v959_v38  ;;  %v794_v37 = vlaneseq }
 0x1bf   : > { %v6624_v41 = vsub.f32 %v6585_v1, %v971_v39  ;;  %v6627_v42 = vsub.f32 %v6588_v2, %v973_v40  ;;  %v6669_v38 = vshrl.u32 %v794_v37, 7 }
 0x1c0   : > { %v957_v43 = vpop.xlane.xlu0 %956  ;;  %v961_v44 = vpop.xlane.xlu1 %960 }
 0x1c1   : > { %v972_v45 = vmul.f32 0.0078125, %v957_v43  ;;  %v987_v46 = vmul.f32 %v6624_v41, %v6624_v41  ;;  %v974_v47 = vmul.f32 0.0078125, %v961_v44  ;;  %v989_v48 = vmul.f32 %v6627_v42, %v6627_v42  ;;  %8169 = vst [vmem:[#allocation25_spill] sm:$0xff] %v6669_v38  ;;  %v672_v44 = vld [vmem:[%s8170_s3] sm:$0x3f] }
 0x1c2   : > { %v8099_v40 = vsub.s32 1, %v6669_v38 }
 0x1c3   : > { %995 = vadd.xlane.f32.xlu0 %v987_v46  ;;  %v6634_v49 = vsub.f32 %v6593_v3, %v972_v45  ;;  %v6637_v50 = vsub.f32 %v6596_v4, %v974_v47 }
 0x1c4   : > { %v963_v51 = vpop.xlane.xlu0 %962  ;;  %v965_v52 = vpop.xlane.xlu1 %964 }
 0x1c5   : > { %v975_v53 = vmul.f32 0.0078125, %v963_v51  ;;  %v988_v54 = vmul.f32 %v6634_v49, %v6634_v49  ;;  %v976_v55 = vmul.f32 0.0078125, %v965_v52  ;;  %v990_v56 = vmul.f32 %v6637_v50, %v6637_v50 }
 0x1c7   : > { %999 = vadd.xlane.f32.xlu0 %v989_v48  ;;  %997 = vadd.xlane.f32.xlu1 %v988_v54  ;;  %v6644_v57 = vsub.f32 %v6601_v8, %v975_v53  ;;  %v6647_v58 = vsub.f32 %v6604_v9, %v976_v55  ;;  %v5442_v8 = vld [vmem:[#allocation10 + $0x18] ss:$12 sps:$4 sm:$0xff]   ;;  %v5448_v9 = vld [vmem:[#allocation10 + $0x34] ss:$12 sps:$4 sm:$0xff]   ;;  %v801_v48 = vrot.slane %v672_v44, %v8099_v40  ;;  %v6678_v53 = vsub.s32 0, %v6669_v38 }
 0x1c8   : > { %v967_v59 = vpop.xlane.xlu0 %966  ;;  %v969_v60 = vpop.xlane.xlu1 %968  ;;  %1248 = vmatpush1.bf16.msra.mxu1 %v5442_v8 }
 0x1c9   : > { %v977_v61 = vmul.f32 0.0078125, %v967_v59  ;;  %v991_v62 = vmul.f32 %v6644_v57, %v6644_v57  ;;  %v978_v63 = vmul.f32 0.0078125, %v969_v60  ;;  %v992_v1 = vmul.f32 %v6647_v58, %v6647_v58  ;;  %1249 = vmatprep.subr.bf16.mxu1 %v5448_v9  ;;  %8171 = vst [vmem:[#allocation26_spill] sm:$0xff] %v6678_v53 }
 0x1cb   : > { %1001 = vadd.xlane.f32.xlu1 %v990_v56  ;;  %1003 = vadd.xlane.f32.xlu0 %v991_v62  ;;  %v6654_v2 = vsub.f32 %v6607_v11, %v977_v61  ;;  %v6657_v3 = vsub.f32 %v6610_v12, %v978_v63  ;;  %v5446_v11 = vld [vmem:[#allocation10 + $0x30] ss:$12 sps:$4 sm:$0xff]   ;;  %v5452_v12 = vld [vmem:[#allocation10 + $0x4c] ss:$12 sps:$4 sm:$0xff]   ;;  %v797_v63 = vrot.slane %v672_v44, %v6678_v53 }
 0x1cc   : > { %1250 = vmatpush1.bf16.msra.mxu1 %v5446_v11 }
 0x1cd   : > { %v993_v4 = vmul.f32 %v6654_v2, %v6654_v2  ;;  %v994_v5 = vmul.f32 %v6657_v3, %v6657_v3  ;;  %1251 = vmatprep.subr.bf16.mxu1 %v5452_v12 }
 0x1cf   : > { %1005 = vadd.xlane.f32.xlu1 %v992_v1  ;;  %1007 = vadd.xlane.f32.xlu0 %v993_v4 }
 0x1d0   : > { %1252 = vmatpush1.bf16.msra.mxu1 %v5450_v14  ;;  %v4673_v14 = vld [vmem:[%s8172_s4] ss:$0 sm:$0xff] }
 0x1d1   : > { %1253 = vmatprep.subr.bf16.mxu1 %v5456_v15 }
 0x1d3   : > { %1009 = vadd.xlane.f32.xlu1 %v994_v5 }
 0x1d4   : > { %1254 = vmatpush1.bf16.msra.mxu1 %v5454_v17 }
 0x1d5   : > { %1255 = vmatprep.subr.bf16.mxu1 %v5460_v18 }
 0x1d8   : > { %1256 = vmatpush1.bf16.msra.mxu1 %v5458_v20 }
 0x1d9   : > { %1257 = vmatprep.subr.bf16.mxu1 %v5464_v21 }
 0x1dc   : > { %1258 = vmatpush1.bf16.msra.mxu1 %v5462_v23 }
 0x1dd   : > { %1259 = vmatprep.subr.bf16.mxu1 %v5468_v25 }
 0x1e0   : > { %1260 = vmatpush1.bf16.msra.mxu1 %v5466_v24 }
 0x213   : > { %v862_v28 = vpop.f32.mrb[0].mxu0 }
 0x214   : > { %v864_v29 = vpop.f32.mrb[1].mxu0  ;;  %v863_v10 = vadd.f32 %v862_v28, %v797_v63 }
 0x215   : > { %v866_v30 = vpop.f32.mrb[2].mxu0  ;;  %v865_v60 = vadd.f32 %v864_v29, %v801_v48 }
 0x216   : > { %v867_v31 = vpop.f32.mrb[3].mxu0  ;;  %v1072_v19 = vrot.slane %v863_v10, %v6678_v53 }
 0x217   : > { %v951_v7 = vadd.f32 1.0, %v865_v60 }
 0x218   : > { %v6663_v32 = vpop.f32.mrb[0].mxu1 }
 0x219   : > { %v6665_v33 = vpop.f32.mrb[1].mxu1  ;;  %v1060_v16 = vrot.slane %v951_v7, %v6678_v53 }
 0x21a   : > { %v907_v35 = vpop.f32.mrb[2].mxu1 }
 0x21b   : > { %v908_v36 = vpop.f32.mrb[3].mxu1 }
 0x223   : > { %v6667_v34 = vpop.f32.mrb[4].mxu0 }
 0x224   : > { %v6697_v7 = vpop.f32.mrb[5].mxu0 }
 0x225   : > { %8173 = vst [vmem:[#allocation27_spill] sm:$0xff] %v6697_v7 }
 0x250   : > { %v996_v39 = vpop.xlane.xlu0 %995 }
 0x251   : > { %v1011_v43 = vmul.f32 0.0078125, %v996_v39 }
 0x253   : > { %v1019_v45 = vadd.f32 1e-05, %v1011_v43 }
 0x254   : > { %v998_v46 = vpop.xlane.xlu1 %997  ;;  %v1000_v47 = vpop.xlane.xlu0 %999 }
 0x255   : > { %5559 = vrsqrt.f32 %v1019_v45  ;;  %v1012_v51 = vmul.f32 0.0078125, %v998_v46  ;;  %v1013_v52 = vmul.f32 0.0078125, %v1000_v47 }
 0x257   : > { %v1020_v54 = vadd.f32 1e-05, %v1012_v51  ;;  %v1021_v55 = vadd.f32 1e-05, %v1013_v52 }
 0x258   : > { %v1002_v56 = vpop.xlane.xlu1 %1001  ;;  %v1004_v59 = vpop.xlane.xlu0 %1003 }
 0x259   : > { %5561 = vrsqrt.f32 %v1020_v54  ;;  %v1014_v61 = vmul.f32 0.0078125, %v1002_v56  ;;  %v1015_v62 = vmul.f32 0.0078125, %v1004_v59 }
 0x25a   : > { %5563 = vrsqrt.f32 %v1021_v55 }
 0x25b   : > { %v1022_v1 = vadd.f32 1e-05, %v1014_v61  ;;  %v1023_v4 = vadd.f32 1e-05, %v1015_v62 }
 0x25c   : > { %v1006_v5 = vpop.xlane.xlu1 %1005  ;;  %v1008_v6 = vpop.xlane.xlu0 %1007 }
 0x25d   : > { %5565 = vrsqrt.f32 %v1022_v1  ;;  %v1016_v8 = vmul.f32 0.0078125, %v1006_v5  ;;  %v1017_v9 = vmul.f32 0.0078125, %v1008_v6 }
 0x25e   : > { %5567 = vrsqrt.f32 %v1023_v4 }
 0x25f   : > { %v5560_v11 = vpop.eup %5559  ;;  %v1024_v12 = vadd.f32 1e-05, %v1016_v8  ;;  %v1025_v13 = vadd.f32 1e-05, %v1017_v9 }
 0x260   : > { %v1035_v15 = vmul.f32 %v5560_v11, %v6624_v41  ;;  %v1010_v17 = vpop.xlane.xlu1 %1009 }
 0x261   : > { %5569 = vrsqrt.f32 %v1024_v12  ;;  %v1018_v18 = vmul.f32 0.0078125, %v1010_v17 }
 0x262   : > { %5571 = vrsqrt.f32 %v1025_v13  ;;  %v1049_v20 = vmul.f32 %v4673_v14, %v1035_v15 }
 0x263   : > { %v5562_v21 = vpop.eup %5561  ;;  %v1026_v22 = vadd.f32 1e-05, %v1018_v18 }
 0x264   : > { %v5564_v23 = vpop.eup %5563  ;;  %v1036_v24 = vmul.f32 %v5562_v21, %v6634_v49  ;;  %v1061_v25 = vmul.f32 %v1060_v16, %v1049_v20 }
 0x265   : > { %v1037_v26 = vmul.f32 %v5564_v23, %v6627_v42  ;;  %5573 = vrsqrt.f32 %v1026_v22 }
 0x266   : > { %v1050_v27 = vmul.f32 %v4673_v14, %v1036_v24  ;;  %v1073_v41 = vadd.f32 %v1072_v19, %v1061_v25 }
 0x267   : > { %v5566_v28 = vpop.eup %5565  ;;  %v1051_v29 = vmul.f32 %v4673_v14, %v1037_v26 }
 0x268   : > { %v5568_v30 = vpop.eup %5567  ;;  %v1038_v31 = vmul.f32 %v5566_v28, %v6637_v50  ;;  %v1062_v35 = vmul.f32 %v1060_v16, %v1050_v27 }
 0x269   : > { %v1063_v36 = vmul.f32 %v1060_v16, %v1051_v29  ;;  %v1039_v37 = vmul.f32 %v5568_v30, %v6644_v57 }
 0x26a   : > { %v1074_v39 = vadd.f32 %v1072_v19, %v1062_v35  ;;  %v1052_v43 = vmul.f32 %v4673_v14, %v1038_v31 }
 0x26b   : > { %v5570_v44 = vpop.eup %5569  ;;  %v1075_v45 = vadd.f32 %v1072_v19, %v1063_v36  ;;  %v1053_v49 = vmul.f32 %v4673_v14, %v1039_v37 }
 0x26c   : > { %v5572_v46 = vpop.eup %5571  ;;  %v1081_v47 = vpack.c.bf16 %v1074_v39, %v1073_v41  ;;  %v1064_v42 = vmul.f32 %v1060_v16, %v1052_v43  ;;  %v1040_v48 = vmul.f32 %v5570_v44, %v6647_v58 }
 0x26d   : > { %v1065_v51 = vmul.f32 %v1060_v16, %v1053_v49  ;;  %v1041_v52 = vmul.f32 %v5572_v46, %v6654_v2 }
 0x26e   : > { %1278 = vmatmul.mubr.bf16.vlgmr.msra.gmra.mrb[4].mxu1 %v1081_v47  ;;  %5023 = vmatprep.mubr.bf16.mxu0 %v1081_v47  ;;  %v1076_v50 = vadd.f32 %v1072_v19, %v1064_v42  ;;  %v1054_v54 = vmul.f32 %v4673_v14, %v1040_v48 }
 0x26f   : > { %v5574_v55 = vpop.eup %5573  ;;  %1287 = vmatprep.mubr.bf16.mxu1 %v6156_v0  ;;  %v1077_v57 = vadd.f32 %v1072_v19, %v1065_v51  ;;  %v1055_v56 = vmul.f32 %v4673_v14, %v1041_v52 }
 0x270   : > { %v1082_v59 = vpack.c.bf16 %v1076_v50, %v1075_v45  ;;  %v1066_v60 = vmul.f32 %v1060_v16, %v1054_v54  ;;  %v1042_v61 = vmul.f32 %v5574_v55, %v6657_v3  ;;  %v948_v3 = vpop.f32.mrb[6].mxu0  ;;  %v639_v55 = vld [vmem:[#allocation8] sm:$0xff] }
 0x271   : > { %v1067_v62 = vmul.f32 %v1060_v16, %v1055_v56  ;;  %v949_v8 = vpop.f32.mrb[7].mxu0 }
 0x272   : > { %5024 = vmatmul.mubr.bf16.vlgmr.msra.gmra.mrb[8].mxu0 %v1082_v59  ;;  %v1078_v63 = vadd.f32 %v1072_v19, %v1066_v60  ;;  %v1056_v58 = vmul.f32 %v4673_v14, %v1042_v61 }
 0x273   : > { %v1079_v1 = vadd.f32 %v1072_v19, %v1067_v62 }
 0x274   : > { %v1083_v4 = vpack.c.bf16 %v1078_v63, %v1077_v57  ;;  %v1068_v2 = vmul.f32 %v1060_v16, %v1056_v58  ;;  %v631_v63 = vld [vmem:[#allocation7] sm:$0xff] }
 0x276   : > { %1288 = vmatmul.mubr.bf16.gmra.mrb[8].mxu1 %v1082_v59  ;;  %5027 = vmatprep.mubr.bf16.mxu0 %v1083_v4  ;;  %v1080_v5 = vadd.f32 %v1072_v19, %v1068_v2  ;;  %v632_v2 = vld [vmem:[#allocation7 + $0x8] sm:$0xff] }
 0x277   : > { %1297 = vmatprep.mubr.bf16.mxu1 %v6156_v0 }
 0x278   : > { %v1084_v6 = vpack.c.bf16 %v1080_v5, %v1079_v1 }
 0x27a   : > { %5028 = vmatmul.mubr.bf16.gmra.mrb[12].mxu0 %v1084_v6 }
 0x27e   : > { %1298 = vmatmul.mubr.bf16.gmra.mrb[12].mxu1 %v1083_v4 }
 0x27f   : > { %1307 = vmatprep.mubr.bf16.mxu1 %v6156_v0 }
 0x286   : > { %1308 = vmatmul.mubr.bf16.gmra.mrb[16].mxu1 %v1084_v6 }
 0x341   : > { %v6699_v9 = vpop.f32.mrb[4].mxu1 }
 0x342   : > { %1399 = vrot.lane.b32.xlu0 %v6699_v9, %s6157_s7  ;;  %v6703_v10 = vpop.f32.mrb[5].mxu1 }
 0x343   : > { %1573 = vrot.lane.b32.xlu1 %v6703_v10, %s6158_s0  ;;  %v6707_v11 = vpop.f32.mrb[6].mxu1 }
 0x344   : > { %v6709_v12 = vpop.f32.mrb[7].mxu1 }
 0x345   : > { %v5025_v13 = vpop.f32.mrb[8].mxu0 }
 0x346   : > { %1423 = vrot.lane.b32.xlu0 %v6699_v9, %s6158_s0  ;;  %v1352_v14 = vpop.f32.mrb[9].mxu0 }
 0x347   : > { %1401 = vrot.lane.b32.xlu1 %v6707_v11, %s6157_s7  ;;  %v5026_v15 = vpop.f32.mrb[10].mxu0 }
 0x348   : > { %v6715_v16 = vpack.c.bf16 %v5026_v15, %v5025_v13  ;;  %v1355_v17 = vpop.f32.mrb[11].mxu0  ;;  %v640_v13 = vld [vmem:[#allocation8 + $0x8] sm:$0xff]  ;;  %v1383_v15 = vmul.f32 %v6699_v9, %v631_v63 }
 0x349   : > { %v6717_v18 = vpack.c.bf16 %v1355_v17, %v1352_v14  ;;  %v6719_v19 = vpop.f32.mrb[8].mxu1 }
 0x34a   : > { %1549 = vrot.lane.b32.xlu0 %v6703_v10, %s6157_s7  ;;  %v6723_v20 = vpop.f32.mrb[9].mxu1 }
 0x34b   : > { %1425 = vrot.lane.b32.xlu1 %v6707_v11, %s6158_s0  ;;  %v6727_v21 = vpop.f32.mrb[10].mxu1  ;;  %5047 = vmatprep.subr.bf16.mxu0 %v6717_v18 }
 0x34c   : > { %v6730_v22 = vpop.f32.mrb[11].mxu1  ;;  %5048 = vmatpush3.bf16.msra.mxu0 %v6717_v18 }
 0x34d   : > { %v5029_v23 = vpop.f32.mrb[12].mxu0  ;;  %5049 = vmatprep.subr.bf16.mxu0 %v6715_v16 }
 0x34e   : > { %1553 = vrot.lane.b32.xlu0 %v6723_v20, %s6157_s7  ;;  %v1368_v24 = vpop.f32.mrb[13].mxu0 }
 0x34f   : > { %1551 = vrot.lane.b32.xlu1 %v6709_v12, %s6157_s7  ;;  %v5030_v25 = vpop.f32.mrb[14].mxu0 }
 0x350   : > { %v6738_v26 = vpack.c.bf16 %v5030_v25, %v5029_v23  ;;  %v1371_v27 = vpop.f32.mrb[15].mxu0  ;;  %5050 = vmatpush3.bf16.msra.mxu0 %v6715_v16  ;;  %v1384_v23 = vmul.f32 %v6707_v11, %v632_v2 }
 0x351   : > { %v6741_v41 = vpack.c.bf16 %v1371_v27, %v1368_v24  ;;  %v6743_v28 = vpop.f32.mrb[12].mxu1 }
 0x352   : > { %1577 = vrot.lane.b32.xlu0 %v6723_v20, %s6158_s0  ;;  %v6747_v29 = vpop.f32.mrb[13].mxu1 }
 0x353   : > { %1575 = vrot.lane.b32.xlu1 %v6709_v12, %s6158_s0  ;;  %v6751_v30 = vpop.f32.mrb[14].mxu1  ;;  %5051 = vmatprep.subr.bf16.mxu0 %v6741_v41 }
 0x354   : > { %v6754_v31 = vpop.f32.mrb[15].mxu1  ;;  %5052 = vmatpush3.bf16.msra.mxu0 %v6741_v41 }
 0x355   : > { %5053 = vmatprep.subr.bf16.mxu0 %v6738_v26 }
 0x356   : > { %1557 = vrot.lane.b32.xlu0 %v6747_v29, %s6157_s7 }
 0x357   : > { %1555 = vrot.lane.b32.xlu1 %v6730_v22, %s6157_s7 }
 0x358   : > { %5054 = vmatpush3.bf16.msra.mxu0 %v6738_v26 }
 0x359   : > { %v6763_v35 = vpop.f32.mrb[16].mxu1 }
 0x35a   : > { %1581 = vrot.lane.b32.xlu0 %v6747_v29, %s6158_s0  ;;  %v6767_v36 = vpop.f32.mrb[17].mxu1 }
 0x35b   : > { %1579 = vrot.lane.b32.xlu1 %v6730_v22, %s6158_s0  ;;  %v6771_v37 = vpop.f32.mrb[18].mxu1 }
 0x35c   : > { %v6773_v39 = vpop.f32.mrb[19].mxu1 }
 0x35e   : > { %1561 = vrot.lane.b32.xlu0 %v6767_v36, %s6157_s7 }
 0x35f   : > { %1559 = vrot.lane.b32.xlu1 %v6754_v31, %s6157_s7 }
 0x362   : > { %1585 = vrot.lane.b32.xlu0 %v6767_v36, %s6158_s0 }
 0x363   : > { %1583 = vrot.lane.b32.xlu1 %v6754_v31, %s6158_s0 }
 0x366   : > { %1403 = vrot.lane.b32.xlu0 %v6719_v19, %s6157_s7 }
 0x367   : > { %1563 = vrot.lane.b32.xlu1 %v6773_v39, %s6157_s7 }
 0x36a   : > { %1427 = vrot.lane.b32.xlu0 %v6719_v19, %s6158_s0 }
 0x36b   : > { %1587 = vrot.lane.b32.xlu1 %v6773_v39, %s6158_s0 }
 0x36e   : > { %1407 = vrot.lane.b32.xlu0 %v6743_v28, %s6157_s7 }
 0x36f   : > { %1405 = vrot.lane.b32.xlu1 %v6727_v21, %s6157_s7 }
 0x372   : > { %1431 = vrot.lane.b32.xlu0 %v6743_v28, %s6158_s0 }
 0x373   : > { %1429 = vrot.lane.b32.xlu1 %v6727_v21, %s6158_s0 }
 0x376   : > { %1411 = vrot.lane.b32.xlu0 %v6763_v35, %s6157_s7 }
 0x377   : > { %1409 = vrot.lane.b32.xlu1 %v6751_v30, %s6157_s7 }
 0x37a   : > { %1435 = vrot.lane.b32.xlu0 %v6763_v35, %s6158_s0 }
 0x37b   : > { %1433 = vrot.lane.b32.xlu1 %v6751_v30, %s6158_s0 }
 0x37f   : > { %1413 = vrot.lane.b32.xlu1 %v6771_v37, %s6157_s7 }
 0x383   : > { %1437 = vrot.lane.b32.xlu1 %v6771_v37, %s6158_s0 }
 0x3b4   : > { %v1400_v43 = vpop.permute.xlu0 %1399 }
 0x3b5   : > { %v1574_v44 = vpop.permute.xlu1 %1573 }
 0x3b8   : > { %v1424_v45 = vpop.permute.xlu0 %1423 }
 0x3b9   : > { %v1448_v49 = vsel %vm1447_vm1, %v1400_v43, %v1424_v45  ;;  %v1402_v46 = vpop.permute.xlu1 %1401 }
 0x3ba   : > { %v1457_v47 = vsel %vm1456_vm2, %v1448_v49, %v1400_v43 }
 0x3bb   : > { %v1466_v42 = vsel %vm1465_vm3, %v1457_v47, %v1424_v45 }
 0x3bc   : > { %v1474_v48 = vsel %vm824_vm0, %v1466_v42, %v1400_v43  ;;  %v1550_v51 = vpop.permute.xlu0 %1549 }
 0x3bd   : > { %v1483_v52 = vsel %vm1482_vm4, %v1474_v48, %v1424_v45  ;;  %v1597_v50 = vsel %vm1447_vm1, %v1550_v51, %v1574_v44  ;;  %v1426_v54 = vpop.permute.xlu1 %1425 }
 0x3be   : > { %v1492_v57 = vsel %vm1491_vm5, %v1483_v52, %v1400_v43  ;;  %v1605_v56 = vsel %vm1456_vm2, %v1597_v50, %v1550_v51  ;;  %v1449_v59 = vsel %vm1447_vm1, %v1402_v46, %v1426_v54 }
 0x3bf   : > { %v1501_v60 = vsel %vm1500_vm6, %v1492_v57, %v1424_v45  ;;  %v1613_v61 = vsel %vm1465_vm3, %v1605_v56, %v1574_v44  ;;  %v1458_v62 = vsel %vm1456_vm2, %v1449_v59, %v1402_v46 }
 0x3c0   : > { %v1621_v58 = vsel %vm824_vm0, %v1613_v61, %v1550_v51  ;;  %v1467_v1 = vsel %vm1465_vm3, %v1458_v62, %v1426_v54  ;;  %v1554_v4 = vpop.permute.xlu0 %1553  ;;  %v1509_v5 = vmul.f32 %v1501_v60, %v639_v55 }
 0x3c1   : > { %v1475_v6 = vsel %vm824_vm0, %v1467_v1, %v1402_v46  ;;  %v1552_v3 = vpop.permute.xlu1 %1551  ;;  %v1629_v8 = vsel %vm1482_vm4, %v1621_v58, %v1574_v44 }
 0x3c2   : > { %v1484_v14 = vsel %vm1482_vm4, %v1475_v6, %v1426_v54  ;;  %v1637_v27 = vsel %vm1491_vm5, %v1629_v8, %v1550_v51  ;;  %v1517_v47 = vadd.f32 %v1509_v5, %v1383_v15 }
 0x3c3   : > { %v1493_v17 = vsel %vm1491_vm5, %v1484_v14, %v1402_v46  ;;  %v1645_v11 = vsel %vm1500_vm6, %v1637_v27, %v1574_v44  ;;  %v1533_v44 = vmul.f32 %v6703_v10, %v631_v63  ;;  %v1534_v14 = vmul.f32 %v6709_v12, %v632_v2  ;;  %v6858_v12 = vld [vmem:[#allocation8 + $0x10] sm:$0xff] }
 0x3c4   : > { %v1502_v24 = vsel %vm1500_vm6, %v1493_v17, %v1426_v54  ;;  %v1578_v25 = vpop.permute.xlu0 %1577  ;;  %v1525_v59 = vmul.f32 0.17677669, %v1517_v47  ;;  %v1653_v58 = vmul.f32 %v1645_v11, %v639_v55 }
 0x3c5   : > { %v1510_v43 = vmul.f32 %v1502_v24, %v640_v13  ;;  %v1599_v45 = vsel %vm1447_vm1, %v1554_v4, %v1578_v25  ;;  %v1576_v49 = vpop.permute.xlu1 %1575 }
 0x3c6   : > { %v1607_v42 = vsel %vm1456_vm2, %v1599_v45, %v1554_v4  ;;  %v1598_v48 = vsel %vm1447_vm1, %v1552_v3, %v1576_v49  ;;  %v1661_v27 = vadd.f32 %v1653_v58, %v1533_v44 }
 0x3c7   : > { %v1615_v9 = vsel %vm1465_vm3, %v1607_v42, %v1578_v25  ;;  %v1606_v46 = vsel %vm1456_vm2, %v1598_v48, %v1552_v3  ;;  %v1518_v52 = vadd.f32 %v1510_v43, %v1384_v23 }
 0x3c8   : > { %v1623_v50 = vsel %vm824_vm0, %v1615_v9, %v1554_v4  ;;  %v1614_v51 = vsel %vm1465_vm3, %v1606_v46, %v1576_v49  ;;  %v1558_v54 = vpop.permute.xlu0 %1557  ;;  %v6868_v9 = vld [vmem:[#allocation7 + $0x18] sm:$0xff] }
 0x3c9   : > { %v1622_v57 = vsel %vm824_vm0, %v1614_v51, %v1552_v3  ;;  %v1556_v56 = vpop.permute.xlu1 %1555  ;;  %v1526_v60 = vmul.f32 0.17677669, %v1518_v52  ;;  %v1631_v61 = vsel %vm1482_vm4, %v1623_v50, %v1578_v25  ;;  %v6871_v52 = vld [vmem:[#allocation8 + $0x18] sm:$0xff] }
 0x3ca   : > { %v1630_v62 = vsel %vm1482_vm4, %v1622_v57, %v1576_v49  ;;  %v1639_v15 = vsel %vm1491_vm5, %v1631_v61, %v1554_v4  ;;  %v1536_v61 = vmul.f32 %v6730_v22, %v6868_v9 }
 0x3cb   : > { %v1638_v1 = vsel %vm1491_vm5, %v1630_v62, %v1552_v3  ;;  %v6845_v5 = vpack.c.bf16 %v1526_v60, %v1525_v59  ;;  %v1647_v4 = vsel %vm1500_vm6, %v1639_v15, %v1578_v25 }
 0x3cc   : > { %v1646_v6 = vsel %vm1500_vm6, %v1638_v1, %v1576_v49  ;;  %v1582_v8 = vpop.permute.xlu0 %1581  ;;  %v6863_v49 = vld [vmem:[#allocation7 + $0x10] sm:$0xff]  ;;  %v1655_v11 = vmul.f32 %v1647_v4, %v6858_v12 }
 0x3cd   : > { %v1654_v17 = vmul.f32 %v1646_v6, %v640_v13  ;;  %v1601_v23 = vsel %vm1447_vm1, %v1558_v54, %v1582_v8  ;;  %v1580_v24 = vpop.permute.xlu1 %1579  ;;  %5039 = vmatprep.mubr.msk.bf16.mxu1 %vm1456_vm2, %v6845_v5  ;;  %v1535_v57 = vmul.f32 %v6723_v20, %v6863_v49 }
 0x3ce   : > { %v1609_v55 = vsel %vm1456_vm2, %v1601_v23, %v1558_v54  ;;  %v1600_v3 = vsel %vm1447_vm1, %v1556_v56, %v1580_v24  ;;  %v6892_v23 = vld [vmem:[#allocation8 + $0x20] sm:$0xff] }
 0x3cf   : > { %v1662_v10 = vadd.f32 %v1654_v17, %v1534_v14  ;;  %v1617_v63 = vsel %vm1465_vm3, %v1609_v55, %v1582_v8  ;;  %v1608_v43 = vsel %vm1456_vm2, %v1600_v3, %v1556_v56  ;;  %v1663_v14 = vadd.f32 %v1655_v11, %v1535_v57  ;;  %v6897_v3 = vld [vmem:[#allocation7 + $0x20] sm:$0xff] }
 0x3d0   : > { %v1625_v2 = vsel %vm824_vm0, %v1617_v63, %v1558_v54  ;;  %v1616_v13 = vsel %vm1465_vm3, %v1608_v43, %v1580_v24  ;;  %v1562_v45 = vpop.permute.xlu0 %1561  ;;  %v6902_v43 = vld [vmem:[#allocation7 + $0x28] sm:$0xff] }
 0x3d1   : > { %v1624_v47 = vsel %vm824_vm0, %v1616_v13, %v1556_v56  ;;  %v1560_v42 = vpop.permute.xlu1 %1559  ;;  %v6866_v48 = vpack.c.bf16 %v1662_v10, %v1661_v27  ;;  %v1633_v46 = vsel %vm1482_vm4, %v1625_v2, %v1582_v8  ;;  %v6905_v2 = vld [vmem:[#allocation8 + $0x28] sm:$0xff] }
 0x3d2   : > { %v1632_v25 = vsel %vm1482_vm4, %v1624_v47, %v1580_v24  ;;  %v1641_v62 = vsel %vm1491_vm5, %v1633_v46, %v1558_v54 }
 0x3d3   : > { %v1640_v50 = vsel %vm1491_vm5, %v1632_v25, %v1556_v56  ;;  %5247 = vmatprep.subr.msk.bf16.mxu1 %vm1456_vm2, %v6866_v48  ;;  %v1710_v51 = vsel %vm1456_vm2, %v6866_v48, 0  ;;  %v1649_v22 = vsel %vm1500_vm6, %v1641_v62, %v1582_v8  ;;  %v1537_v25 = vmul.f32 %v6747_v29, %v6897_v3 }
 0x3d4   : > { %v1648_v59 = vsel %vm1500_vm6, %v1640_v50, %v1580_v24  ;;  %5032 = vmatpush3.bf16.xpose.msra.mxu1 %v1710_v51  ;;  %v1586_v60 = vpop.permute.xlu0 %1585  ;;  %v1657_v13 = vmul.f32 %v1649_v22, %v6892_v23  ;;  %v1538_v51 = vmul.f32 %v6754_v31, %v6902_v43 }
 0x3d5   : > { %v1656_v56 = vmul.f32 %v1648_v59, %v6871_v52  ;;  %v1603_v58 = vsel %vm1447_vm1, %v1562_v45, %v1586_v60  ;;  %v1584_v1 = vpop.permute.xlu1 %1583 }
 0x3d6   : > { %v1611_v44 = vsel %vm1456_vm2, %v1603_v58, %v1562_v45  ;;  %v1602_v6 = vsel %vm1447_vm1, %v1560_v42, %v1584_v1  ;;  %v1665_v58 = vadd.f32 %v1657_v13, %v1537_v25 }
 0x3d7   : > { %v1664_v20 = vadd.f32 %v1656_v56, %v1536_v61  ;;  %v1619_v15 = vsel %vm1465_vm3, %v1611_v44, %v1586_v60  ;;  %v1610_v17 = vsel %vm1456_vm2, %v1602_v6, %v1560_v42  ;;  %v6926_v6 = vld [vmem:[#allocation8 + $0x30] sm:$0xff] }
 0x3d8   : > { %v1627_v54 = vsel %vm824_vm0, %v1619_v15, %v1562_v45  ;;  %v1618_v24 = vsel %vm1465_vm3, %v1610_v17, %v1584_v1  ;;  %v1404_v55 = vpop.permute.xlu0 %1403  ;;  %v6931_v15 = vld [vmem:[#allocation7 + $0x30] sm:$0xff] }
 0x3d9   : > { %v1626_v27 = vsel %vm824_vm0, %v1618_v24, %v1560_v42  ;;  %v1564_v10 = vpop.permute.xlu1 %1563  ;;  %v6900_v63 = vpack.c.bf16 %v1664_v20, %v1663_v14  ;;  %v1635_v4 = vsel %vm1482_vm4, %v1627_v54, %v1586_v60  ;;  %v1539_v25 = vmul.f32 %v6767_v36, %v6931_v15 }
 0x3da   : > { %v1634_v8 = vsel %vm1482_vm4, %v1626_v27, %v1584_v1  ;;  %v1643_v57 = vsel %vm1491_vm5, %v1635_v4, %v1562_v45  ;;  %v6937_v27 = vld [vmem:[#allocation7 + $0x38] sm:$0xff] }
 0x3db   : > { %v1642_v47 = vsel %vm1491_vm5, %v1634_v8, %v1560_v42  ;;  %5248 = vmatprep.subr.msk.bf16.mxu1 %vm1456_vm2, %v6900_v63  ;;  %v1713_v46 = vsel %vm1456_vm2, %v6900_v63, 0  ;;  %v1651_v31 = vsel %vm1500_vm6, %v1643_v57, %v1586_v60  ;;  %v6940_v8 = vld [vmem:[#allocation8 + $0x38] sm:$0xff] }
 0x3dc   : > { %v1650_v11 = vsel %vm1500_vm6, %v1642_v47, %v1584_v1  ;;  %5034 = vmatpush3.bf16.xpose.msra.mxu1 %v1713_v46  ;;  %v1428_v50 = vpop.permute.xlu0 %1427  ;;  %v1659_v13 = vmul.f32 %v1651_v31, %v6926_v6 }
 0x3dd   : > { %v1658_v42 = vmul.f32 %v1650_v11, %v6905_v2  ;;  %v1450_v59 = vsel %vm1447_vm1, %v1404_v55, %v1428_v50  ;;  %v1588_v61 = vpop.permute.xlu1 %1587 }
 0x3de   : > { %v1459_v62 = vsel %vm1456_vm2, %v1450_v59, %v1404_v55  ;;  %v1604_v56 = vsel %vm1447_vm1, %v1564_v10, %v1588_v61 }
 0x3df   : > { %v1666_v29 = vadd.f32 %v1658_v42, %v1538_v51  ;;  %v1468_v1 = vsel %vm1465_vm3, %v1459_v62, %v1428_v50  ;;  %v1612_v44 = vsel %vm1456_vm2, %v1604_v56, %v1564_v10  ;;  %v1540_v51 = vmul.f32 %v6773_v39, %v6937_v27 }
 0x3e0   : > { %v1476_v45 = vsel %vm824_vm0, %v1468_v1, %v1404_v55  ;;  %v1620_v14 = vsel %vm1465_vm3, %v1612_v44, %v1588_v61  ;;  %v1408_v20 = vpop.permute.xlu0 %1407 }
 0x3e1   : > { %v1485_v17 = vsel %vm1482_vm4, %v1476_v45, %v1428_v50  ;;  %v1628_v22 = vsel %vm824_vm0, %v1620_v14, %v1564_v10  ;;  %v1406_v54 = vpop.permute.xlu1 %1405  ;;  %v6935_v24 = vpack.c.bf16 %v1666_v29, %v1665_v58  ;;  %v1667_v58 = vadd.f32 %v1659_v13, %v1539_v25 }
 0x3e2   : > { %v1494_v4 = vsel %vm1491_vm5, %v1485_v17, %v1404_v55  ;;  %v1636_v60 = vsel %vm1482_vm4, %v1628_v22, %v1588_v61  ;;  %v1385_v22 = vmul.f32 %v6719_v19, %v6863_v49  ;;  %v1386_v19 = vmul.f32 %v6727_v21, %v6868_v9 }
 0x3e3   : > { %v1644_v47 = vsel %vm1491_vm5, %v1636_v60, %v1564_v10  ;;  %5249 = vmatprep.subr.msk.bf16.mxu1 %vm1456_vm2, %v6935_v24  ;;  %v1716_v46 = vsel %vm1456_vm2, %v6935_v24, 0  ;;  %v1503_v57 = vsel %vm1500_vm6, %v1494_v4, %v1428_v50 }
 0x3e4   : > { %v1652_v11 = vsel %vm1500_vm6, %v1644_v47, %v1588_v61  ;;  %5036 = vmatpush3.bf16.xpose.msra.mxu1 %v1716_v46  ;;  %v1432_v55 = vpop.permute.xlu0 %1431  ;;  %v1511_v1 = vmul.f32 %v1503_v57, %v6858_v12 }
 0x3e5   : > { %v1660_v10 = vmul.f32 %v1652_v11, %v6940_v8  ;;  %v1452_v42 = vsel %vm1447_vm1, %v1408_v20, %v1432_v55  ;;  %v1430_v59 = vpop.permute.xlu1 %1429 }
 0x3e6   : > { %v1461_v62 = vsel %vm1456_vm2, %v1452_v42, %v1408_v20  ;;  %v1451_v56 = vsel %vm1447_vm1, %v1406_v54, %v1430_v59  ;;  %v1519_v47 = vadd.f32 %v1511_v1, %v1385_v22 }
 0x3e7   : > { %v1668_v36 = vadd.f32 %v1660_v10, %v1540_v51  ;;  %v1470_v61 = vsel %vm1465_vm3, %v1461_v62, %v1432_v55  ;;  %v1460_v29 = vsel %vm1456_vm2, %v1451_v56, %v1406_v54 }
 0x3e8   : > { %v1478_v39 = vsel %vm824_vm0, %v1470_v61, %v1408_v20  ;;  %v1469_v50 = vsel %vm1465_vm3, %v1460_v29, %v1430_v59  ;;  %v1412_v44 = vpop.permute.xlu0 %1411  ;;  %v1527_v62 = vmul.f32 0.17677669, %v1519_v47  ;;  %v1387_v29 = vmul.f32 %v6743_v28, %v6897_v3 }
 0x3e9   : > { %v1487_v31 = vsel %vm1482_vm4, %v1478_v39, %v1432_v55  ;;  %v1477_v45 = vsel %vm824_vm0, %v1469_v50, %v1406_v54  ;;  %v1410_v14 = vpop.permute.xlu1 %1409  ;;  %v6966_v17 = vpack.c.bf16 %v1668_v36, %v1667_v58  ;;  %v1389_v47 = vmul.f32 %v6763_v35, %v6931_v15 }
 0x3ea   : > { %v1486_v4 = vsel %vm1482_vm4, %v1477_v45, %v1430_v59  ;;  %v1496_v60 = vsel %vm1491_vm5, %v1487_v31, %v1408_v20 }
 0x3eb   : > { %v1495_v12 = vsel %vm1491_vm5, %v1486_v4, %v1406_v54  ;;  %5250 = vmatprep.subr.msk.bf16.mxu1 %vm1456_vm2, %v6966_v17  ;;  %v1719_v13 = vsel %vm1456_vm2, %v6966_v17, 0  ;;  %v1505_v54 = vsel %vm1500_vm6, %v1496_v60, %v1432_v55 }
 0x3ec   : > { %v1504_v46 = vsel %vm1500_vm6, %v1495_v12, %v1430_v59  ;;  %5038 = vmatpush3.bf16.xpose.msra.mxu1 %v1719_v13  ;;  %v1436_v25 = vpop.permute.xlu0 %1435  ;;  %v1513_v9 = vmul.f32 %v1505_v54, %v6892_v23  ;;  %v1388_v23 = vmul.f32 %v6751_v30, %v6902_v43 }
 0x3ed   : > { %v1512_v49 = vmul.f32 %v1504_v46, %v6871_v52  ;;  %v1454_v20 = vsel %vm1447_vm1, %v1412_v44, %v1436_v25  ;;  %v1434_v11 = vpop.permute.xlu1 %1433 }
 0x3ee   : > { %v1463_v51 = vsel %vm1456_vm2, %v1454_v20, %v1412_v44  ;;  %v1453_v57 = vsel %vm1447_vm1, %v1410_v14, %v1434_v11  ;;  %v1521_v4 = vadd.f32 %v1513_v9, %v1387_v29 }
 0x3ef   : > { %v1520_v10 = vadd.f32 %v1512_v49, %v1386_v19  ;;  %v1472_v42 = vsel %vm1465_vm3, %v1463_v51, %v1436_v25  ;;  %v1462_v59 = vsel %vm1456_vm2, %v1453_v57, %v1410_v14  ;;  %v1390_v49 = vmul.f32 %v6771_v37, %v6937_v27 }
 0x3f0   : > { %v1480_v56 = vsel %vm824_vm0, %v1472_v42, %v1412_v44  ;;  %v1471_v21 = vsel %vm1465_vm3, %v1462_v59, %v1434_v11  ;;  %v1529_v43 = vmul.f32 0.17677669, %v1521_v4 }
 0x3f1   : > { %v1528_v52 = vmul.f32 0.17677669, %v1520_v10  ;;  %v1489_v58 = vsel %vm1482_vm4, %v1480_v56, %v1436_v25  ;;  %v1479_v55 = vsel %vm824_vm0, %v1471_v21, %v1410_v14  ;;  %v1414_v36 = vpop.permute.xlu1 %1413 }
 0x3f2   : > { %v1488_v61 = vsel %vm1482_vm4, %v1479_v55, %v1434_v11  ;;  %v1498_v39 = vsel %vm1491_vm5, %v1489_v58, %v1412_v44 }
 0x3f3   : > { %v6995_v1 = vpack.c.bf16 %v1528_v52, %v1527_v62  ;;  %v1497_v50 = vsel %vm1491_vm5, %v1488_v61, %v1410_v14  ;;  %v1507_v28 = vsel %vm1500_vm6, %v1498_v39, %v1436_v25 }
 0x3f4   : > { %v1506_v31 = vsel %vm1500_vm6, %v1497_v50, %v1434_v11  ;;  %v1515_v12 = vmul.f32 %v1507_v28, %v6926_v6 }
 0x3f5   : > { %v1514_v45 = vmul.f32 %v1506_v31, %v6905_v2  ;;  %v1438_v22 = vpop.permute.xlu1 %1437  ;;  %5040 = vmatmul.mubr.msk.bf16.vlgmr.msra.gmra.mrb[20].mxu1 %vm1456_vm2, %v6995_v1 }
 0x3f6   : > { %v1455_v3 = vsel %vm1447_vm1, %v1414_v36, %v1438_v22  ;;  %v1523_v20 = vadd.f32 %v1515_v12, %v1389_v47 }
 0x3f7   : > { %v1464_v44 = vsel %vm1456_vm2, %v1455_v3, %v1414_v36  ;;  %v1522_v60 = vadd.f32 %v1514_v45, %v1388_v23 }
 0x3f8   : > { %v1473_v14 = vsel %vm1465_vm3, %v1464_v44, %v1438_v22  ;;  %v1531_v54 = vmul.f32 0.17677669, %v1523_v20 }
 0x3f9   : > { %v1481_v30 = vsel %vm824_vm0, %v1473_v14, %v1414_v36  ;;  %v1530_v2 = vmul.f32 0.17677669, %v1522_v60 }
 0x3fa   : > { %v1490_v13 = vsel %vm1482_vm4, %v1481_v30, %v1438_v22 }
 0x3fb   : > { %v1499_v46 = vsel %vm1491_vm5, %v1490_v13, %v1414_v36  ;;  %v7015_v25 = vpack.c.bf16 %v1530_v2, %v1529_v43 }
 0x3fc   : > { %v1508_v19 = vsel %vm1500_vm6, %v1499_v46, %v1438_v22 }
 0x3fd   : > { %v1516_v6 = vmul.f32 %v1508_v19, %v6940_v8  ;;  %5043 = vmatprep.mubr.msk.bf16.mxu1 %vm1456_vm2, %v7015_v25 }
 0x3ff   : > { %v1524_v11 = vadd.f32 %v1516_v6, %v1390_v49 }
 0x401   : > { %v1532_v51 = vmul.f32 0.17677669, %v1524_v11 }
 0x403   : > { %v7023_v57 = vpack.c.bf16 %v1532_v51, %v1531_v54 }
 0x405   : > { %5044 = vmatmul.mubr.msk.bf16.gmra.mrb[24].mxu1 %vm1456_vm2, %v7023_v57 }
 0x4c8   : > { %v5041_v35 = vpop.f32.mrb[20].mxu1 }
 0x4c9   : > { %v1755_v15 = vpop.f32.mrb[21].mxu1  ;;  %v1792_v8 = vsel %vm824_vm0, %v5041_v35, -inf }
 0x4ca   : > { %v5042_v10 = vpop.f32.mrb[22].mxu1  ;;  %v1786_v42 = vsel %vm824_vm0, %v1755_v15, -inf }
 0x4cb   : > { %1787 = vmax.xlane.f32.xlu0 %v1786_v42  ;;  %v1758_v37 = vpop.f32.mrb[23].mxu1  ;;  %v1795_v59 = vsel %vm824_vm0, %v5042_v10, -inf }
 0x4cc   : > { %v1789_v27 = vsel %vm824_vm0, %v1758_v37, -inf }
 0x4cd   : > { %1790 = vmax.xlane.f32.xlu1 %v1789_v27 }
 0x4cf   : > { %1793 = vmax.xlane.f32.xlu0 %v1792_v8 }
 0x4d3   : > { %1796 = vmax.xlane.f32.xlu0 %v1795_v59 }
 0x4d8   : > { %v5045_v62 = vpop.f32.mrb[24].mxu1 }
 0x4d9   : > { %v1771_v56 = vpop.f32.mrb[25].mxu1  ;;  %v1804_v55 = vsel %vm824_vm0, %v5045_v62, -inf }
 0x4da   : > { %v5046_v21 = vpop.f32.mrb[26].mxu1  ;;  %v1798_v9 = vsel %vm824_vm0, %v1771_v56, -inf }
 0x4db   : > { %1799 = vmax.xlane.f32.xlu0 %v1798_v9  ;;  %v1774_v52 = vpop.f32.mrb[27].mxu1  ;;  %v1807_v36 = vsel %vm824_vm0, %v5046_v21, -inf }
 0x4dc   : > { %v1801_v58 = vsel %vm824_vm0, %v1774_v52, -inf }
 0x4dd   : > { %1802 = vmax.xlane.f32.xlu1 %v1801_v58 }
 0x4df   : > { %1805 = vmax.xlane.f32.xlu0 %v1804_v55 }
 0x4e1   : > { %1808 = vmax.xlane.f32.xlu1 %v1807_v36 }
 0x558   : > { %v1788_v61 = vpop.xlane.xlu0 %1787 }
 0x559   : > { %v1810_v29 = vsub.f32 %v1755_v15, %v1788_v61 }
 0x55a   : > { %v1791_v39 = vpop.xlane.xlu1 %1790 }
 0x55b   : > { %v1818_v23 = vmul.f32 1.442695, %v1810_v29  ;;  %v1811_v45 = vsub.f32 %v1758_v37, %v1791_v39 }
 0x55c   : > { %v1794_v50 = vpop.xlane.xlu0 %1793 }
 0x55d   : > { %v1812_v31 = vsub.f32 %v5041_v35, %v1794_v50  ;;  %v1820_v3 = vmul.f32 1.442695, %v1811_v45 }
 0x55f   : > { %v1822_v22 = vmul.f32 1.442695, %v1812_v31 }
 0x560   : > { %v1797_v4 = vpop.xlane.xlu0 %1796 }
 0x561   : > { %5575 = vpow2.f32 %v1822_v22  ;;  %v1813_v28 = vsub.f32 %v5042_v10, %v1797_v4 }
 0x562   : > { %5577 = vpow2.f32 %v1818_v23 }
 0x563   : > { %v1824_v44 = vmul.f32 1.442695, %v1813_v28 }
 0x565   : > { %5579 = vpow2.f32 %v1824_v44 }
 0x566   : > { %5581 = vpow2.f32 %v1820_v3 }
 0x568   : > { %v1800_v60 = vpop.xlane.xlu0 %1799 }
 0x569   : > { %v1814_v12 = vsub.f32 %v1771_v56, %v1800_v60 }
 0x56a   : > { %v1803_v10 = vpop.xlane.xlu1 %1802 }
 0x56b   : > { %v7035_v14 = vpop.eup %5575  ;;  %v1826_v46 = vmul.f32 1.442695, %v1814_v12  ;;  %v1815_v27 = vsub.f32 %v1774_v52, %v1803_v10 }
 0x56c   : > { %v1806_v30 = vpop.xlane.xlu0 %1805  ;;  %v1840_v43 = vsel %vm824_vm0, %v7035_v14, 0.0  ;;  %v7039_v2 = vpop.eup %5577 }
 0x56d   : > { %v1816_v13 = vsub.f32 %v5045_v62, %v1806_v30  ;;  %1841 = vadd.xlane.f32.xlu0 %v1840_v43  ;;  %v1834_v49 = vsel %vm824_vm0, %v7039_v2, 0.0  ;;  %v1828_v59 = vmul.f32 1.442695, %v1815_v27 }
 0x56e   : > { %v1809_v42 = vpop.xlane.xlu1 %1808 }
 0x56f   : > { %v7041_v47 = vpop.eup %5579  ;;  %v1830_v19 = vmul.f32 1.442695, %v1816_v13  ;;  %v1817_v37 = vsub.f32 %v5046_v21, %v1809_v42 }
 0x570   : > { %v1843_v6 = vsel %vm824_vm0, %v7041_v47, 0.0  ;;  %v5582_v20 = vpop.eup %5581 }
 0x571   : > { %5583 = vpow2.f32 %v1830_v19  ;;  %1835 = vadd.xlane.f32.xlu0 %v1834_v49  ;;  %1844 = vadd.xlane.f32.xlu1 %v1843_v6  ;;  %v1837_v11 = vsel %vm824_vm0, %v5582_v20, 0.0  ;;  %v1832_v8 = vmul.f32 1.442695, %v1817_v37 }
 0x572   : > { %5585 = vpow2.f32 %v1826_v46 }
 0x573   : > { %5587 = vpow2.f32 %v1832_v8 }
 0x574   : > { %5589 = vpow2.f32 %v1828_v59 }
 0x575   : > { %1838 = vadd.xlane.f32.xlu1 %v1837_v11 }
 0x57b   : > { %v7048_v54 = vpop.eup %5583 }
 0x57c   : > { %v1852_v51 = vsel %vm824_vm0, %v7048_v54, 0.0  ;;  %v7052_v35 = vpop.eup %5585 }
 0x57d   : > { %1853 = vadd.xlane.f32.xlu0 %v1852_v51  ;;  %v1846_v15 = vsel %vm824_vm0, %v7052_v35, 0.0  ;;  %v7070_v62 = vpop.eup %5587 }
 0x57e   : > { %v1855_v56 = vsel %vm824_vm0, %v7070_v62, 0.0  ;;  %v7076_v21 = vpop.eup %5589 }
 0x57f   : > { %v1849_v9 = vsel %vm824_vm0, %v7076_v21, 0.0 }
 0x581   : > { %1847 = vadd.xlane.f32.xlu0 %v1846_v15 }
 0x586   : > { %1977 = vrot.lane.b32.xlu1 %v6900_v63, %s6159_s11 }
 0x58a   : > { %1979 = vrot.lane.b32.xlu1 %v6935_v24, %s6159_s11 }
 0x597   : > { %1975 = vrot.lane.b32.xlu0 %v6866_v48, %s6159_s11 }
 0x59b   : > { %1963 = vrot.lane.b32.xlu0 %v6845_v5, %s6159_s11 }
 0x59f   : > { %1967 = vrot.lane.b32.xlu0 %v7015_v25, %s6159_s11 }
 0x5a3   : > { %2447 = vrot.lane.b32.xlu0 %v6866_v48, %s6160_s13 }
 0x5a7   : > { %2451 = vrot.lane.b32.xlu0 %v6935_v24, %s6160_s13 }
 0x5ab   : > { %2439 = vrot.lane.b32.xlu0 %v6845_v5, %s6160_s13 }
 0x5ae   : > { %1856 = vadd.xlane.f32.xlu1 %v1855_v56 }
 0x5af   : > { %2443 = vrot.lane.b32.xlu0 %v7015_v25, %s6160_s13 }
 0x5b2   : > { %1850 = vadd.xlane.f32.xlu1 %v1849_v9 }
 0x5c3   : > { %1981 = vrot.lane.b32.xlu1 %v6966_v17, %s6159_s11 }
 0x5c7   : > { %1965 = vrot.lane.b32.xlu1 %v6995_v1, %s6159_s11 }
 0x5cb   : > { %1969 = vrot.lane.b32.xlu1 %v7023_v57, %s6159_s11 }
 0x5cf   : > { %2449 = vrot.lane.b32.xlu1 %v6900_v63, %s6160_s13 }
 0x5d3   : > { %2453 = vrot.lane.b32.xlu1 %v6966_v17, %s6160_s13 }
 0x5d7   : > { %2441 = vrot.lane.b32.xlu1 %v6995_v1, %s6160_s13 }
 0x5db   : > { %2445 = vrot.lane.b32.xlu1 %v7023_v57, %s6160_s13 }
 0x5fa   : > { %v1842_v52 = vpop.xlane.xlu0 %1841 }
 0x5fe   : > { %v1845_v58 = vpop.xlane.xlu1 %1844  ;;  %v1836_v55 = vpop.xlane.xlu0 %1835 }
 0x5ff   : > { %5591 = vrcp.f32 %v1845_v58 }
 0x600   : > { %5593 = vrcp.f32 %v1836_v55 }
 0x601   : > { %5595 = vrcp.f32 %v1842_v52 }
 0x602   : > { %v1839_v36 = vpop.xlane.xlu1 %1838 }
 0x603   : > { %5597 = vrcp.f32 %v1839_v36 }
 0x606   : > { %v1978_v30 = vpop.permute.xlu1 %1977 }
 0x607   : > { %v1999_v43 = vsel %vm1456_vm2, %v1978_v30, 0 }
 0x609   : > { %v5592_v61 = vpop.eup %5591 }
 0x60a   : > { %v1854_v29 = vpop.xlane.xlu0 %1853  ;;  %v5594_v39 = vpop.eup %5593  ;;  %v1869_v23 = vmul.f32 %v5592_v61, %v7041_v47 }
 0x60b   : > { %v5596_v50 = vpop.eup %5595  ;;  %v1866_v22 = vmul.f32 %v5594_v39, %v7039_v2  ;;  %v1980_v2 = vpop.permute.xlu1 %1979 }
 0x60c   : > { %v1868_v28 = vmul.f32 %v5596_v50, %v7035_v14  ;;  %v2002_v14 = vsel %vm1456_vm2, %v1980_v2, 0 }
 0x60d   : > { %v5598_v31 = vpop.eup %5597 }
 0x60e   : > { %v1848_v45 = vpop.xlane.xlu0 %1847  ;;  %v1867_v4 = vmul.f32 %v5598_v31, %v5582_v20  ;;  %v1875_v44 = vpack.c.bf16 %v1869_v23, %v1868_v28 }
 0x610   : > { %v1874_v3 = vpack.c.bf16 %v1867_v4, %v1866_v22 }
 0x612   : > { %5055 = vmatprep.mubr.msk.bf16.mxu0 %vm824_vm0, %v1874_v3  ;;  %v1976_v60 = vpop.permute.xlu0 %1975 }
 0x613   : > { %5056 = vmatmul.mubr.msk.bf16.vlgmr.msra.gmra.mrb[16].mxu0 %vm824_vm0, %v1875_v44  ;;  %5251 = vmatprep.subr.msk.bf16.mxu0 %vm1456_vm2, %v1976_v60  ;;  %v1996_v12 = vsel %vm1456_vm2, %v1976_v60, 0 }
 0x614   : > { %5064 = vmatpush3.bf16.xpose.msra.mxu0 %v1996_v12 }
 0x615   : > { %5252 = vmatprep.subr.msk.bf16.mxu0 %vm1456_vm2, %v1978_v30 }
 0x616   : > { %v1964_v13 = vpop.permute.xlu0 %1963 }
 0x61a   : > { %v1968_v46 = vpop.permute.xlu0 %1967 }
 0x61c   : > { %5066 = vmatpush3.bf16.xpose.msra.mxu0 %v1999_v43 }
 0x61d   : > { %5253 = vmatprep.subr.msk.bf16.mxu0 %vm1456_vm2, %v1980_v2 }
 0x61e   : > { %v2448_v20 = vpop.permute.xlu0 %2447 }
 0x61f   : > { %v2468_v58 = vsel %vm1456_vm2, %v2448_v20, 0 }
 0x624   : > { %5068 = vmatpush3.bf16.xpose.msra.mxu0 %v2002_v14 }
 0x63b   : > { %v1857_v47 = vpop.xlane.xlu1 %1856 }
 0x63c   : > { %5599 = vrcp.f32 %v1857_v47 }
 0x63d   : > { %5601 = vrcp.f32 %v1848_v45 }
 0x63e   : > { %5603 = vrcp.f32 %v1854_v29 }
 0x63f   : > { %v1851_v19 = vpop.xlane.xlu1 %1850 }
 0x640   : > { %5605 = vrcp.f32 %v1851_v19 }
 0x643   : > { %v1982_v49 = vpop.permute.xlu1 %1981 }
 0x644   : > { %v2005_v6 = vsel %vm1456_vm2, %v1982_v49, 0  ;;  %5254 = vmatprep.subr.msk.bf16.mxu0 %vm1456_vm2, %v1982_v49 }
 0x645   : > { %5070 = vmatpush3.bf16.xpose.msra.mxu0 %v2005_v6 }
 0x646   : > { %5255 = vmatprep.subr.msk.bf16.mxu0 %vm1456_vm2, %v2448_v20  ;;  %v5600_v11 = vpop.eup %5599 }
 0x647   : > { %v5602_v51 = vpop.eup %5601  ;;  %v1873_v42 = vmul.f32 %v5600_v11, %v7070_v62  ;;  %v1966_v59 = vpop.permute.xlu1 %1965 }
 0x648   : > { %v5604_v15 = vpop.eup %5603  ;;  %v1870_v37 = vmul.f32 %v5602_v51, %v7052_v35  ;;  %v2452_v35 = vpop.permute.xlu0 %2451 }
 0x649   : > { %v1872_v8 = vmul.f32 %v5604_v15, %v7048_v54  ;;  %v2474_v55 = vsel %vm1456_vm2, %v2452_v35, 0 }
 0x64a   : > { %v5606_v10 = vpop.eup %5605 }
 0x64b   : > { %v1871_v27 = vmul.f32 %v5606_v10, %v7076_v21  ;;  %v1877_v9 = vpack.c.bf16 %v1873_v42, %v1872_v8  ;;  %v1970_v52 = vpop.permute.xlu1 %1969 }
 0x64c   : > { %v2440_v54 = vpop.permute.xlu0 %2439 }
 0x64d   : > { %v1876_v56 = vpack.c.bf16 %v1871_v27, %v1870_v37 }
 0x64f   : > { %5059 = vmatprep.mubr.msk.bf16.mxu0 %vm824_vm0, %v1876_v56  ;;  %v2450_v62 = vpop.permute.xlu1 %2449 }
 0x650   : > { %5060 = vmatmul.mubr.msk.bf16.gmra.mrb[20].mxu0 %vm824_vm0, %v1877_v9  ;;  %v2471_v21 = vsel %vm1456_vm2, %v2450_v62, 0  ;;  %v2444_v39 = vpop.permute.xlu0 %2443 }
 0x651   : > { %5071 = vmatprep.mubr.msk.bf16.mxu0 %vm1456_vm2, %v1964_v13 }
 0x653   : > { %v2454_v36 = vpop.permute.xlu1 %2453 }
 0x654   : > { %v2477_v61 = vsel %vm1456_vm2, %v2454_v36, 0 }
 0x657   : > { %v2442_v29 = vpop.permute.xlu1 %2441 }
 0x658   : > { %5072 = vmatmul.mubr.msk.bf16.vlgmr.msra.gmra.mrb[24].mxu0 %vm1456_vm2, %v1966_v59 }
 0x659   : > { %5120 = vmatpush3.bf16.xpose.msra.mxu0 %v2468_v58  ;;  %5075 = vmatprep.mubr.msk.bf16.mxu0 %vm1456_vm2, %v1968_v46 }
 0x65a   : > { %5256 = vmatprep.subr.msk.bf16.mxu0 %vm1456_vm2, %v2450_v62 }
 0x65b   : > { %v2446_v50 = vpop.permute.xlu1 %2445 }
 0x660   : > { %5076 = vmatmul.mubr.msk.bf16.gmra.mrb[28].mxu0 %vm1456_vm2, %v1970_v52 }
 0x661   : > { %5122 = vmatpush3.bf16.xpose.msra.mxu0 %v2471_v21  ;;  %5127 = vmatprep.mubr.msk.bf16.mxu0 %vm1456_vm2, %v2440_v54 }
 0x662   : > { %5257 = vmatprep.subr.msk.bf16.mxu0 %vm1456_vm2, %v2452_v35 }
 0x669   : > { %5124 = vmatpush3.bf16.xpose.msra.mxu0 %v2474_v55 }
 0x66a   : > { %5258 = vmatprep.subr.msk.bf16.mxu0 %vm1456_vm2, %v2454_v36 }
 0x671   : > { %5126 = vmatpush3.bf16.xpose.msra.mxu0 %v2477_v61 }
 0x678   : > { %5128 = vmatmul.mubr.msk.bf16.vlgmr.msra.gmra.mrb[32].mxu0 %vm1456_vm2, %v2442_v29 }
 0x679   : > { %5131 = vmatprep.mubr.msk.bf16.mxu0 %vm1456_vm2, %v2444_v39 }
 0x680   : > { %5132 = vmatmul.mubr.msk.bf16.gmra.mrb[36].mxu0 %vm1456_vm2, %v2446_v50 }
 0x6e6   : > { %v7131_v31 = vpop.f32.mrb[16].mxu0 }
 0x6e7   : > { %v7133_v23 = vpop.f32.mrb[17].mxu0 }
 0x6e8   : > { %v7135_v45 = vpop.f32.mrb[18].mxu0 }
 0x6e9   : > { %v1956_v22 = vpack.c.bf16 %v7135_v45, %v7131_v31  ;;  %v7139_v4 = vpop.f32.mrb[19].mxu0 }
 0x6ea   : > { %v1955_v28 = vpack.c.bf16 %v7139_v4, %v7133_v23 }
 0x723   : > { %v7143_v3 = vpop.f32.mrb[20].mxu0 }
 0x724   : > { %v7145_v44 = vpop.f32.mrb[21].mxu0 }
 0x725   : > { %v7147_v60 = vpop.f32.mrb[22].mxu0 }
 0x726   : > { %v1958_v12 = vpack.c.bf16 %v7147_v60, %v7143_v3  ;;  %v7151_v30 = vpop.f32.mrb[23].mxu0 }
 0x727   : > { %v1957_v43 = vpack.c.bf16 %v7151_v30, %v7145_v44 }
 0x72b   : > { %v5073_v2 = vpop.f32.mrb[24].mxu0 }
 0x72c   : > { %v2041_v14 = vpop.f32.mrb[25].mxu0  ;;  %v2078_v49 = vsel %vm824_vm0, %v5073_v2, -inf }
 0x72d   : > { %v5074_v13 = vpop.f32.mrb[26].mxu0  ;;  %v2072_v47 = vsel %vm824_vm0, %v2041_v14, -inf }
 0x72e   : > { %2073 = vmax.xlane.f32.xlu0 %v2072_v47  ;;  %v2044_v46 = vpop.f32.mrb[27].mxu0  ;;  %v2081_v51 = vsel %vm824_vm0, %v5074_v13, -inf }
 0x72f   : > { %v2075_v19 = vsel %vm824_vm0, %v2044_v46, -inf }
 0x730   : > { %2076 = vmax.xlane.f32.xlu1 %v2075_v19 }
 0x732   : > { %2079 = vmax.xlane.f32.xlu0 %v2078_v49 }
 0x733   : > { %v5077_v6 = vpop.f32.mrb[28].mxu0 }
 0x734   : > { %v2057_v20 = vpop.f32.mrb[29].mxu0  ;;  %v2090_v27 = vsel %vm824_vm0, %v5077_v6, -inf }
 0x735   : > { %v7158_v11 = vpop.f32.mrb[30].mxu0  ;;  %v2084_v42 = vsel %vm824_vm0, %v2057_v20, -inf }
 0x736   : > { %2082 = vmax.xlane.f32.xlu0 %v2081_v51  ;;  %v7161_v15 = vpop.f32.mrb[31].mxu0  ;;  %v2093_v37 = vsel %vm824_vm0, %v7158_v11, -inf }
 0x737   : > { %v2087_v10 = vsel %vm824_vm0, %v7161_v15, -inf }
 0x738   : > { %2088 = vmax.xlane.f32.xlu1 %v2087_v10 }
 0x73a   : > { %2085 = vmax.xlane.f32.xlu0 %v2084_v42 }
 0x73c   : > { %2094 = vmax.xlane.f32.xlu1 %v2093_v37 }
 0x73e   : > { %2091 = vmax.xlane.f32.xlu0 %v2090_v27 }
 0x74b   : > { %v7169_v8 = vpop.f32.mrb[32].mxu0 }
 0x74c   : > { %v7171_v59 = vpop.f32.mrb[33].mxu0 }
 0x74d   : > { %v7173_v56 = vpop.f32.mrb[34].mxu0 }
 0x74e   : > { %v7175_v9 = vpop.f32.mrb[35].mxu0 }
 0x753   : > { %v7177_v52 = vpop.f32.mrb[36].mxu0 }
 0x754   : > { %v7179_v58 = vpop.f32.mrb[37].mxu0 }
 0x755   : > { %v7181_v62 = vpop.f32.mrb[38].mxu0 }
 0x756   : > { %v7183_v35 = vpop.f32.mrb[39].mxu0 }
 0x7bb   : > { %v2074_v54 = vpop.xlane.xlu0 %2073 }
 0x7bc   : > { %v2096_v21 = vsub.f32 %v2041_v14, %v2074_v54 }
 0x7bd   : > { %v2077_v55 = vpop.xlane.xlu1 %2076 }
 0x7be   : > { %v2104_v29 = vmul.f32 1.442695, %v2096_v21  ;;  %v2097_v39 = vsub.f32 %v2044_v46, %v2077_v55 }
 0x7bf   : > { %v2080_v36 = vpop.xlane.xlu0 %2079 }
 0x7c0   : > { %v2098_v61 = vsub.f32 %v5073_v2, %v2080_v36  ;;  %v2106_v49 = vmul.f32 1.442695, %v2097_v39 }
 0x7c2   : > { %v2108_v50 = vmul.f32 1.442695, %v2098_v61 }
 0x7c3   : > { %v2083_v47 = vpop.xlane.xlu0 %2082 }
 0x7c4   : > { %5607 = vpow2.f32 %v2108_v50  ;;  %v2099_v19 = vsub.f32 %v5074_v13, %v2083_v47 }
 0x7c5   : > { %5609 = vpow2.f32 %v2104_v29  ;;  %v2089_v50 = vpop.xlane.xlu1 %2088 }
 0x7c6   : > { %v2110_v51 = vmul.f32 1.442695, %v2099_v19 }
 0x7c7   : > { %v2086_v10 = vpop.xlane.xlu0 %2085 }
 0x7c8   : > { %5611 = vpow2.f32 %v2110_v51  ;;  %v2100_v42 = vsub.f32 %v2057_v20, %v2086_v10 }
 0x7c9   : > { %5613 = vpow2.f32 %v2106_v49  ;;  %v2095_v47 = vpop.xlane.xlu1 %2094  ;;  %v2101_v49 = vsub.f32 %v7161_v15, %v2089_v50  ;;  %v2553_v15 = vsel %vm824_vm0, %v7173_v56, -inf }
 0x7ca   : > { %v2112_v14 = vmul.f32 1.442695, %v2100_v42  ;;  %v2103_v19 = vsub.f32 %v7158_v11, %v2095_v47 }
 0x7cb   : > { %v2092_v37 = vpop.xlane.xlu0 %2091  ;;  %v2114_v10 = vmul.f32 1.442695, %v2101_v49 }
 0x7cc   : > { %v2102_v27 = vsub.f32 %v5077_v6, %v2092_v37  ;;  %v2118_v51 = vmul.f32 1.442695, %v2103_v19  ;;  %v2556_v37 = vsel %vm824_vm0, %v7179_v58, -inf }
 0x7ce   : > { %v7185_v40 = vpop.eup %5607  ;;  %v2116_v54 = vmul.f32 1.442695, %v2102_v27  ;;  %v2562_v27 = vsel %vm824_vm0, %v7177_v52, -inf }
 0x7cf   : > { %v2126_v2 = vsel %vm824_vm0, %v7185_v40, 0.0  ;;  %v7189_v46 = vpop.eup %5609 }
 0x7d0   : > { %5615 = vpow2.f32 %v2116_v54  ;;  %2127 = vadd.xlane.f32.xlu0 %v2126_v2  ;;  %v2120_v21 = vsel %vm824_vm0, %v7189_v46, 0.0 }
 0x7d1   : > { %5617 = vpow2.f32 %v2112_v14 }
 0x7d2   : > { %v7191_v13 = vpop.eup %5611  ;;  %5619 = vpow2.f32 %v2118_v51 }
 0x7d3   : > { %v2129_v6 = vsel %vm824_vm0, %v7191_v13, 0.0  ;;  %v7197_v20 = vpop.eup %5613  ;;  %5621 = vpow2.f32 %v2114_v10 }
 0x7d4   : > { %2121 = vadd.xlane.f32.xlu0 %v2120_v21  ;;  %2130 = vadd.xlane.f32.xlu1 %v2129_v6  ;;  %v2123_v55 = vsel %vm824_vm0, %v7197_v20, 0.0 }
 0x7d8   : > { %2124 = vadd.xlane.f32.xlu1 %v2123_v55 }
 0x7da   : > { %v7201_v36 = vpop.eup %5615 }
 0x7db   : > { %v2138_v61 = vsel %vm824_vm0, %v7201_v36, 0.0  ;;  %v7205_v29 = vpop.eup %5617 }
 0x7dc   : > { %2139 = vadd.xlane.f32.xlu0 %v2138_v61  ;;  %v2132_v39 = vsel %vm824_vm0, %v7205_v29, 0.0  ;;  %v7225_v42 = vpop.eup %5619 }
 0x7dd   : > { %v7229_v11 = vpop.eup %5621 }
 0x7e0   : > { %2133 = vadd.xlane.f32.xlu0 %v2132_v39 }
 0x7e9   : > { %2170 = vrot.lane.b32.xlu1 %v6715_v16, %s6159_s11 }
 0x7ed   : > { %2172 = vrot.lane.b32.xlu1 %v6741_v41, %s6159_s11 }
 0x7f6   : > { %2168 = vrot.lane.b32.xlu0 %v6717_v18, %s6159_s11 }
 0x7fa   : > { %2834 = vrot.lane.b32.xlu0 %v6866_v48, %s6161_s27  ;;  %v2141_v48 = vsel %vm824_vm0, %v7225_v42, 0.0 }
 0x7fe   : > { %2838 = vrot.lane.b32.xlu0 %v6935_v24, %s6161_s27  ;;  %v2135_v24 = vsel %vm824_vm0, %v7229_v11, 0.0 }
 0x802   : > { %2826 = vrot.lane.b32.xlu0 %v6845_v5, %s6161_s27  ;;  %v2544_v5 = vsel %vm824_vm0, %v7171_v59, -inf }
 0x806   : > { %2830 = vrot.lane.b32.xlu0 %v7015_v25, %s6161_s27  ;;  %v2550_v25 = vsel %vm824_vm0, %v7169_v8, -inf }
 0x811   : > { %2142 = vadd.xlane.f32.xlu1 %v2141_v48 }
 0x815   : > { %2136 = vadd.xlane.f32.xlu1 %v2135_v24 }
 0x825   : > { %2545 = vmax.xlane.f32.xlu0 %v2544_v5 }
 0x826   : > { %2174 = vrot.lane.b32.xlu1 %v6738_v26, %s6159_s11  ;;  %s8235_s11 = sld [smem:[#allocation68_spill]] }
 0x829   : > { %2551 = vmax.xlane.f32.xlu0 %v2550_v25 }
 0x82a   : > { %2836 = vrot.lane.b32.xlu1 %v6900_v63, %s6161_s27  ;;  %v2547_v63 = vsel %vm824_vm0, %v7175_v9, -inf }
 0x82d   : > { %2554 = vmax.xlane.f32.xlu0 %v2553_v15 }
 0x82e   : > { %2840 = vrot.lane.b32.xlu1 %v6966_v17, %s6161_s27  ;;  %v2559_v17 = vsel %vm824_vm0, %v7183_v35, -inf }
 0x831   : > { %2557 = vmax.xlane.f32.xlu0 %v2556_v37 }
 0x832   : > { %2828 = vrot.lane.b32.xlu1 %v6995_v1, %s6161_s27  ;;  %v2565_v1 = vsel %vm824_vm0, %v7181_v62, -inf }
 0x835   : > { %2563 = vmax.xlane.f32.xlu0 %v2562_v27 }
 0x836   : > { %2832 = vrot.lane.b32.xlu1 %v7023_v57, %s6161_s27 }
 0x85a   : > { %2548 = vmax.xlane.f32.xlu1 %v2547_v63 }
 0x85d   : > { %v2128_v14 = vpop.xlane.xlu0 %2127 }
 0x85e   : > { %2560 = vmax.xlane.f32.xlu1 %v2559_v17 }
 0x861   : > { %v2131_v54 = vpop.xlane.xlu1 %2130  ;;  %v2122_v2 = vpop.xlane.xlu0 %2121 }
 0x862   : > { %2566 = vmax.xlane.f32.xlu1 %v2565_v1  ;;  %5623 = vrcp.f32 %v2122_v2 }
 0x865   : > { %v2125_v21 = vpop.xlane.xlu1 %2124 }
 0x866   : > { %5625 = vrcp.f32 %v2125_v21 }
 0x867   : > { %5627 = vrcp.f32 %v2131_v54 }
 0x868   : > { %5629 = vrcp.f32 %v2128_v14 }
 0x869   : > { %v2140_v6 = vpop.xlane.xlu0 %2139  ;;  %v2171_v39 = vpop.permute.xlu1 %2170 }
 0x86c   : > { %v5624_v55 = vpop.eup %5623 }
 0x86d   : > { %v2134_v57 = vpop.xlane.xlu0 %2133  ;;  %v2152_v47 = vmul.f32 %v5624_v55, %v7189_v46  ;;  %v2173_v48 = vpop.permute.xlu1 %2172 }
 0x870   : > { %v5626_v61 = vpop.eup %5625 }
 0x871   : > { %v2169_v50 = vpop.permute.xlu0 %2168  ;;  %v2153_v19 = vmul.f32 %v5626_v61, %v7197_v20  ;;  %v5628_v5 = vpop.eup %5627 }
 0x872   : > { %5079 = vmatprep.subr.bf16.mxu1 %v2169_v50  ;;  %v5630_v15 = vpop.eup %5629  ;;  %v2155_v37 = vmul.f32 %v5628_v5, %v7191_v13 }
 0x873   : > { %5080 = vmatpush3.bf16.msra.mxu1 %v2169_v50  ;;  %v2160_v49 = vpack.c.bf16 %v2153_v19, %v2152_v47  ;;  %v2154_v63 = vmul.f32 %v5630_v15, %v7185_v40 }
 0x874   : > { %5081 = vmatprep.subr.bf16.mxu1 %v2171_v39 }
 0x875   : > { %5087 = vmatprep.mubr.msk.bf16.mxu1 %vm824_vm0, %v2160_v49  ;;  %v2835_v51 = vpop.permute.xlu0 %2834  ;;  %v2161_v17 = vpack.c.bf16 %v2155_v37, %v2154_v63 }
 0x876   : > { %v2855_v10 = vsel %vm1456_vm2, %v2835_v51, 0  ;;  %5259 = vmatprep.subr.msk.bf16.mxu0 %vm1456_vm2, %v2835_v51 }
 0x877   : > { %5082 = vmatpush3.bf16.msra.mxu1 %v2171_v39  ;;  %5164 = vmatpush3.bf16.xpose.msra.mxu0 %v2855_v10 }
 0x878   : > { %5083 = vmatprep.subr.bf16.mxu1 %v2173_v48 }
 0x879   : > { %v2839_v24 = vpop.permute.xlu0 %2838 }
 0x87a   : > { %v2861_v19 = vsel %vm1456_vm2, %v2839_v24, 0 }
 0x87b   : > { %5084 = vmatpush3.bf16.msra.mxu1 %v2173_v48 }
 0x87d   : > { %v2827_v46 = vpop.permute.xlu0 %2826 }
 0x87e   : > { %5171 = vmatprep.mubr.msk.bf16.mxu0 %vm1456_vm2, %v2827_v46 }
 0x881   : > { %v2831_v40 = vpop.permute.xlu0 %2830 }
 0x89e   : > { %v2143_v20 = vpop.xlane.xlu1 %2142 }
 0x89f   : > { %5631 = vrcp.f32 %v2143_v20 }
 0x8a0   : > { %5633 = vrcp.f32 %v2134_v57 }
 0x8a1   : > { %5635 = vrcp.f32 %v2140_v6 }
 0x8a2   : > { %v2137_v25 = vpop.xlane.xlu1 %2136 }
 0x8a3   : > { %5637 = vrcp.f32 %v2137_v25 }
 0x8a6   : > { %v2175_v27 = vpop.permute.xlu1 %2174 }
 0x8a7   : > { %5085 = vmatprep.subr.bf16.mxu1 %v2175_v27 }
 0x8a8   : > { %5086 = vmatpush3.bf16.msra.mxu1 %v2175_v27 }
 0x8a9   : > { %v5632_v2 = vpop.eup %5631 }
 0x8aa   : > { %v2837_v1 = vpop.permute.xlu1 %2836  ;;  %v5634_v54 = vpop.eup %5633  ;;  %v2159_v13 = vmul.f32 %v5632_v2, %v7225_v42 }
 0x8ab   : > { %v2858_v14 = vsel %vm1456_vm2, %v2837_v1, 0  ;;  %5088 = vmatmul.mubr.msk.bf16.vlgmr.msra.gmra.mrb[28].mxu1 %vm824_vm0, %v2161_v17  ;;  %5260 = vmatprep.subr.msk.bf16.mxu0 %vm1456_vm2, %v2837_v1  ;;  %v5636_v21 = vpop.eup %5635  ;;  %v2156_v57 = vmul.f32 %v5634_v54, %v7205_v29 }
 0x8ac   : > { %5166 = vmatpush3.bf16.xpose.msra.mxu0 %v2858_v14  ;;  %v2158_v61 = vmul.f32 %v5636_v21, %v7201_v36 }
 0x8ad   : > { %v5638_v6 = vpop.eup %5637  ;;  %5261 = vmatprep.subr.msk.bf16.mxu0 %vm1456_vm2, %v2839_v24 }
 0x8ae   : > { %v2157_v55 = vmul.f32 %v5638_v6, %v7229_v11  ;;  %v2163_v50 = vpack.c.bf16 %v2159_v13, %v2158_v61  ;;  %v2841_v49 = vpop.permute.xlu1 %2840 }
 0x8af   : > { %v2864_v48 = vsel %vm1456_vm2, %v2841_v49, 0 }
 0x8b0   : > { %v2162_v39 = vpack.c.bf16 %v2157_v55, %v2156_v57 }
 0x8b2   : > { %5091 = vmatprep.mubr.msk.bf16.mxu1 %vm824_vm0, %v2162_v39  ;;  %v2546_v47 = vpop.xlane.xlu0 %2545  ;;  %v2829_v5 = vpop.permute.xlu1 %2828  ;;  %v5472_v39 = vld [vmem:[#allocation11 + $0x18] sm:$0xff]  }
 0x8b3   : > { %5092 = vmatmul.mubr.msk.bf16.gmra.mrb[32].mxu1 %vm824_vm0, %v2163_v50  ;;  %v2568_v42 = vsub.f32 %v7171_v59, %v2546_v47  ;;  %v5473_v50 = vld [vmem:[#allocation11] sm:$0xff]  }
 0x8b4   : > { %5168 = vmatpush3.bf16.xpose.msra.mxu0 %v2861_v19 }
 0x8b5   : > { %5262 = vmatprep.subr.msk.bf16.mxu0 %vm1456_vm2, %v2841_v49  ;;  %v2576_v51 = vmul.f32 1.442695, %v2568_v42 }
 0x8b6   : > { %v2552_v29 = vpop.xlane.xlu0 %2551  ;;  %v2833_v17 = vpop.permute.xlu1 %2832 }
 0x8b7   : > { %v2570_v11 = vsub.f32 %v7169_v8, %v2552_v29 }
 0x8b9   : > { %v2580_v36 = vmul.f32 1.442695, %v2570_v11 }
 0x8ba   : > { %v2555_v10 = vpop.xlane.xlu0 %2554 }
 0x8bb   : > { %5639 = vpow2.f32 %v2580_v36  ;;  %v2571_v46 = vsub.f32 %v7173_v56, %v2555_v10 }
 0x8bc   : > { %5170 = vmatpush3.bf16.xpose.msra.mxu0 %v2864_v48  ;;  %5641 = vpow2.f32 %v2576_v51 }
 0x8bd   : > { %v2582_v24 = vmul.f32 1.442695, %v2571_v46 }
 0x8be   : > { %v2558_v20 = vpop.xlane.xlu0 %2557 }
 0x8bf   : > { %5643 = vpow2.f32 %v2582_v24  ;;  %v2572_v59 = vsub.f32 %v7179_v58, %v2558_v20 }
 0x8c1   : > { %v2584_v37 = vmul.f32 1.442695, %v2572_v59 }
 0x8c2   : > { %v2564_v25 = vpop.xlane.xlu0 %2563 }
 0x8c3   : > { %v2574_v15 = vsub.f32 %v7177_v52, %v2564_v25  ;;  %5172 = vmatmul.mubr.msk.bf16.vlgmr.msra.gmra.mrb[40].mxu0 %vm1456_vm2, %v2829_v5 }
 0x8c4   : > { %5175 = vmatprep.mubr.msk.bf16.mxu0 %vm1456_vm2, %v2831_v40  ;;  %v5471_v40 = vld [vmem:[#allocation11 + $0x10] sm:$0xff]  }
 0x8c5   : > { %v7287_v8 = vpop.eup %5639  ;;  %v2588_v27 = vmul.f32 1.442695, %v2574_v15  ;;  %5095 = vmatprep.subr.bf16.mxu1 %v5471_v40  ;;  %v5474_v15 = vld [vmem:[#allocation11 + $0x8] sm:$0xff]  }
 0x8c6   : > { %v2598_v56 = vsel %vm824_vm0, %v7287_v8, 0.0  ;;  %v7291_v63 = vpop.eup %5641  ;;  %5096 = vmatpush3.bf16.msra.mxu1 %v5471_v40 }
 0x8c7   : > { %5645 = vpow2.f32 %v2588_v27  ;;  %2599 = vadd.xlane.f32.xlu0 %v2598_v56  ;;  %v2592_v52 = vsel %vm824_vm0, %v7291_v63, 0.0  ;;  %5097 = vmatprep.subr.bf16.mxu1 %v5472_v39 }
 0x8c8   : > { %5647 = vpow2.f32 %v2584_v37 }
 0x8c9   : > { %v7293_v58 = vpop.eup %5643 }
 0x8ca   : > { %v2601_v2 = vsel %vm824_vm0, %v7293_v58, 0.0  ;;  %5098 = vmatpush3.bf16.msra.mxu1 %v5472_v39 }
 0x8cb   : > { %5176 = vmatmul.mubr.msk.bf16.gmra.mrb[44].mxu0 %vm1456_vm2, %v2833_v17  ;;  %2593 = vadd.xlane.f32.xlu0 %v2592_v52 }
 0x8cc   : > { %2602 = vadd.xlane.f32.xlu1 %v2601_v2  ;;  %3610 = vmatprep.mubr.bf16.mxu0 %v6156_v0 }
 0x8cd   : > { %5107 = vmatprep.subr.bf16.mxu1 %v5473_v50 }
 0x8d1   : > { %v7301_v1 = vpop.eup %5645 }
 0x8d2   : > { %v2610_v54 = vsel %vm824_vm0, %v7301_v1, 0.0  ;;  %v7305_v14 = vpop.eup %5647 }
 0x8d3   : > { %2611 = vadd.xlane.f32.xlu0 %v2610_v54  ;;  %v2604_v21 = vsel %vm824_vm0, %v7305_v14, 0.0 }
 0x8d7   : > { %2605 = vadd.xlane.f32.xlu0 %v2604_v21 }
 0x8e7   : > { %v2549_v6 = vpop.xlane.xlu1 %2548 }
 0x8e8   : > { %v2569_v13 = vsub.f32 %v7175_v9, %v2549_v6 }
 0x8ea   : > { %v2578_v57 = vmul.f32 1.442695, %v2569_v13 }
 0x8eb   : > { %v2561_v9 = vpop.xlane.xlu1 %2560 }
 0x8ec   : > { %5649 = vpow2.f32 %v2578_v57  ;;  %v2573_v49 = vsub.f32 %v7183_v35, %v2561_v9 }
 0x8ed   : > { %2636 = vrot.lane.b32.xlu0 %v6717_v18, %s6160_s13 }
 0x8ee   : > { %v2586_v29 = vmul.f32 1.442695, %v2573_v49 }
 0x8ef   : > { %v2567_v47 = vpop.xlane.xlu1 %2566 }
 0x8f0   : > { %v2575_v19 = vsub.f32 %v7181_v62, %v2567_v47 }
 0x8f2   : > { %v2590_v42 = vmul.f32 1.442695, %v2575_v19 }
 0x8f4   : > { %5651 = vpow2.f32 %v2590_v42 }
 0x8f5   : > { %5653 = vpow2.f32 %v2586_v29 }
 0x8f6   : > { %v7312_v55 = vpop.eup %5649 }
 0x8f7   : > { %v2595_v61 = vsel %vm824_vm0, %v7312_v55, 0.0 }
 0x8f8   : > { %2596 = vadd.xlane.f32.xlu1 %v2595_v61 }
 0x8fe   : > { %v7322_v11 = vpop.eup %5651 }
 0x8ff   : > { %v2613_v51 = vsel %vm824_vm0, %v7322_v11, 0.0  ;;  %v7326_v36 = vpop.eup %5653 }
 0x900   : > { %v2607_v10 = vsel %vm824_vm0, %v7326_v36, 0.0 }
 0x909   : > { %2638 = vrot.lane.b32.xlu1 %v6715_v16, %s6160_s13 }
 0x90d   : > { %2640 = vrot.lane.b32.xlu1 %v6741_v41, %s6160_s13 }
 0x931   : > { %2614 = vadd.xlane.f32.xlu1 %v2613_v51 }
 0x935   : > { %2608 = vadd.xlane.f32.xlu1 %v2607_v10 }
 0x946   : > { %2642 = vrot.lane.b32.xlu1 %v6738_v26, %s6160_s13  ;;  %s8000_s13 = scalar_lea.vmem [#allocation17], %s4637_s28  ;;  %s4826_s28 = sshll.u32 %s6261_s19, 10 }
 0x947   : > { %s4450_s19 = scalar_lea.sflag [#allocation4], %s6548_s6 }
 0x954   : > { %v7332_v62 = vpop.xlane.xlu0 %2599 }
 0x958   : > { %v2594_v35 = vpop.xlane.xlu0 %2593 }
 0x959   : > { %v2603_v37 = vpop.xlane.xlu1 %2602 }
 0x960   : > { %v7334_v48 = vpop.xlane.xlu0 %2611 }
 0x964   : > { %v7336_v27 = vpop.xlane.xlu0 %2605 }
 0x968   : > { %v2637_v6 = vpop.permute.xlu0 %2636 }
 0x97e   : > { %v5089_v46 = vpop.f32.mrb[28].mxu1 }
 0x97f   : > { %v2226_v24 = vpop.f32.mrb[29].mxu1 }
 0x980   : > { %v5090_v20 = vpop.f32.mrb[30].mxu1 }
 0x981   : > { %v2258_v59 = vpack.c.bf16 %v5090_v20, %v5089_v46  ;;  %v2229_v5 = vpop.f32.mrb[31].mxu1  ;;  %v5475_v46 = vld [vmem:[#allocation11 + $0x20] sm:$0xff]  }
 0x982   : > { %v2257_v25 = vpack.c.bf16 %v2229_v5, %v2226_v24 }
 0x984   : > { %5099 = vmatprep.mubr.msk.bf16.mxu1 %vm1456_vm2, %v2257_v25 }
 0x985   : > { %5100 = vmatmul.mubr.msk.bf16.vlgmr.msra.gmra.mrb[36].mxu1 %vm1456_vm2, %v2258_v59  ;;  %v2597_v52 = vpop.xlane.xlu1 %2596 }
 0x986   : > { %5108 = vmatpush3.bf16.msra.mxu1 %v5473_v50  ;;  %v5093_v56 = vpop.f32.mrb[32].mxu1  ;;  %5655 = vrcp.f32 %v2597_v52 }
 0x987   : > { %v2242_v17 = vpop.f32.mrb[33].mxu1  ;;  %5109 = vmatprep.subr.bf16.mxu1 %v5474_v15  ;;  %5657 = vrcp.f32 %v2594_v35 }
 0x988   : > { %v5094_v2 = vpop.f32.mrb[34].mxu1  ;;  %5659 = vrcp.f32 %v2603_v37 }
 0x989   : > { %v2260_v54 = vpack.c.bf16 %v5094_v2, %v5093_v56  ;;  %v2245_v21 = vpop.f32.mrb[35].mxu1  ;;  %v2639_v40 = vpop.permute.xlu1 %2638  ;;  %5661 = vrcp.f32 %v7332_v62 }
 0x98a   : > { %v2259_v13 = vpack.c.bf16 %v2245_v21, %v2242_v17  ;;  %5110 = vmatpush3.bf16.msra.mxu1 %v5474_v15 }
 0x98b   : > { %5135 = vmatprep.subr.bf16.mxu1 %v2637_v6 }
 0x98c   : > { %5103 = vmatprep.mubr.msk.bf16.mxu1 %vm1456_vm2, %v2259_v13 }
 0x98d   : > { %5104 = vmatmul.mubr.msk.bf16.gmra.mrb[40].mxu1 %vm1456_vm2, %v2260_v54 }
 0x98e   : > { %5111 = vmatprep.mubr.msk.bf16.mxu1 %vm1456_vm2, %v1955_v28 }
 0x990   : > { %v5656_v57 = vpop.eup %5655 }
 0x991   : > { %v5658_v39 = vpop.eup %5657  ;;  %v2625_v31 = vmul.f32 %v5656_v57, %v7312_v55 }
 0x992   : > { %v2624_v30 = vmul.f32 %v5658_v39, %v7291_v63  ;;  %v5660_v29 = vpop.eup %5659 }
 0x993   : > { %v5662_v10 = vpop.eup %5661  ;;  %v2627_v35 = vmul.f32 %v5660_v29, %v7293_v58 }
 0x994   : > { %v2632_v50 = vpack.c.bf16 %v2625_v31, %v2624_v30  ;;  %v2626_v20 = vmul.f32 %v5662_v10, %v7287_v8 }
 0x995   : > { %5112 = vmatmul.mubr.msk.bf16.vlgmr.msra.gmra.mrb[36].mxu1 %vm1456_vm2, %v1956_v22  ;;  %v2641_v22 = vpop.permute.xlu1 %2640 }
 0x996   : > { %5136 = vmatpush3.bf16.msra.mxu1 %v2637_v6  ;;  %5115 = vmatprep.mubr.msk.bf16.mxu1 %vm1456_vm2, %v1957_v43  ;;  %v7354_v61 = vpop.f32.mrb[40].mxu0  ;;  %v2633_v62 = vpack.c.bf16 %v2627_v35, %v2626_v20 }
 0x997   : > { %5137 = vmatprep.subr.bf16.mxu1 %v2639_v40  ;;  %v7356_v23 = vpop.f32.mrb[41].mxu0  ;;  %v2937_v43 = vsel %vm824_vm0, %v7354_v61, -inf }
 0x998   : > { %v7358_v4 = vpop.f32.mrb[42].mxu0  ;;  %v2931_v28 = vsel %vm824_vm0, %v7356_v23, -inf }
 0x999   : > { %v7363_v45 = vpop.f32.mrb[43].mxu0  ;;  %2932 = vmax.xlane.f32.xlu0 %v2931_v28  ;;  %v2940_v47 = vsel %vm824_vm0, %v7358_v4, -inf }
 0x99a   : > { %5138 = vmatpush3.bf16.msra.mxu1 %v2639_v40  ;;  %v2934_v44 = vsel %vm824_vm0, %v7363_v45, -inf }
 0x99b   : > { %5139 = vmatprep.subr.bf16.mxu1 %v2641_v22  ;;  %2935 = vmax.xlane.f32.xlu1 %v2934_v44 }
 0x99d   : > { %5116 = vmatmul.mubr.msk.bf16.gmra.mrb[40].mxu1 %vm1456_vm2, %v1958_v12  ;;  %2938 = vmax.xlane.f32.xlu0 %v2937_v43 }
 0x99e   : > { %5140 = vmatpush3.bf16.msra.mxu1 %v2641_v22  ;;  %5143 = vmatprep.mubr.msk.bf16.mxu1 %vm824_vm0, %v2632_v50  ;;  %v7375_v55 = vpop.f32.mrb[44].mxu0 }
 0x99f   : > { %v7377_v9 = vpop.f32.mrb[45].mxu0  ;;  %v2949_v49 = vsel %vm824_vm0, %v7375_v55, -inf }
 0x9a0   : > { %v7379_v63 = vpop.f32.mrb[46].mxu0  ;;  %v2943_v60 = vsel %vm824_vm0, %v7377_v9, -inf }
 0x9a1   : > { %v7383_v19 = vpop.f32.mrb[47].mxu0  ;;  %2941 = vmax.xlane.f32.xlu0 %v2940_v47  ;;  %v2952_v12 = vsel %vm824_vm0, %v7379_v63, -inf }
 0x9a2   : > { %v2946_v3 = vsel %vm824_vm0, %v7383_v19, -inf }
 0x9a3   : > { %2947 = vmax.xlane.f32.xlu1 %v2946_v3 }
 0x9a5   : > { %2944 = vmax.xlane.f32.xlu0 %v2943_v60 }
 0x9a7   : > { %2953 = vmax.xlane.f32.xlu1 %v2952_v12 }
 0x9a9   : > { %2950 = vmax.xlane.f32.xlu0 %v2949_v49 }
 0x9be   : > { %v2615_v42 = vpop.xlane.xlu1 %2614 }
 0x9bf   : > { %3023 = vrot.lane.b32.xlu0 %v6717_v18, %s6161_s27  ;;  %5663 = vrcp.f32 %v2615_v42  ;;  %v5476_v18 = vld [vmem:[#allocation11 + $0x28] sm:$0xff]  }
 0x9c0   : > { %5665 = vrcp.f32 %v7336_v27 }
 0x9c1   : > { %5667 = vrcp.f32 %v7334_v48 }
 0x9c2   : > { %v2609_v51 = vpop.xlane.xlu1 %2608 }
 0x9c3   : > { %5669 = vrcp.f32 %v2609_v51 }
 0x9c6   : > { %v2643_v24 = vpop.permute.xlu1 %2642 }
 0x9c7   : > { %5141 = vmatprep.subr.bf16.mxu1 %v2643_v24 }
 0x9c8   : > { %5142 = vmatpush3.bf16.msra.mxu1 %v2643_v24 }
 0x9c9   : > { %5151 = vmatprep.subr.bf16.mxu1 %v5475_v46  ;;  %v5664_v59 = vpop.eup %5663 }
 0x9ca   : > { %v5666_v5 = vpop.eup %5665  ;;  %v2631_v15 = vmul.f32 %v5664_v59, %v7322_v11 }
 0x9cb   : > { %5144 = vmatmul.mubr.msk.bf16.vlgmr.msra.gmra.mrb[44].mxu1 %vm824_vm0, %v2633_v62  ;;  %v5668_v25 = vpop.eup %5667  ;;  %v2628_v58 = vmul.f32 %v5666_v5, %v7305_v14 }
 0x9cc   : > { %5152 = vmatpush3.bf16.msra.mxu1 %v5475_v46  ;;  %v2630_v8 = vmul.f32 %v5668_v25, %v7301_v1 }
 0x9cd   : > { %v5670_v48 = vpop.eup %5669  ;;  %5153 = vmatprep.subr.bf16.mxu1 %v5476_v18 }
 0x9ce   : > { %v2629_v37 = vmul.f32 %v5670_v48, %v7326_v36  ;;  %v2635_v56 = vpack.c.bf16 %v2631_v15, %v2630_v8 }
 0x9d0   : > { %v2634_v27 = vpack.c.bf16 %v2629_v37, %v2628_v58  ;;  %5154 = vmatpush3.bf16.msra.mxu1 %v5476_v18 }
 0x9d2   : > { %5147 = vmatprep.mubr.msk.bf16.mxu1 %vm824_vm0, %v2634_v27 }
 0x9d3   : > { %5148 = vmatmul.mubr.msk.bf16.gmra.mrb[48].mxu1 %vm824_vm0, %v2635_v56 }
 0xa26   : > { %v2933_v17 = vpop.xlane.xlu0 %2932 }
 0xa27   : > { %v2955_v52 = vsub.f32 %v7356_v23, %v2933_v17 }
 0xa28   : > { %v2936_v2 = vpop.xlane.xlu1 %2935 }
 0xa29   : > { %v2963_v21 = vmul.f32 1.442695, %v2955_v52  ;;  %v2956_v14 = vsub.f32 %v7363_v45, %v2936_v2 }
 0xa2a   : > { %v2939_v54 = vpop.xlane.xlu0 %2938 }
 0xa2b   : > { %v2957_v11 = vsub.f32 %v7354_v61, %v2939_v54  ;;  %v2965_v40 = vmul.f32 1.442695, %v2956_v14 }
 0xa2d   : > { %v2967_v36 = vmul.f32 1.442695, %v2957_v11 }
 0xa2e   : > { %v2942_v6 = vpop.xlane.xlu0 %2941 }
 0xa2f   : > { %5671 = vpow2.f32 %v2967_v36  ;;  %v2958_v1 = vsub.f32 %v7358_v4, %v2942_v6 }
 0xa30   : > { %v2948_v13 = vpop.xlane.xlu1 %2947  ;;  %5673 = vpow2.f32 %v2963_v21 }
 0xa31   : > { %v2969_v57 = vmul.f32 1.442695, %v2958_v1 }
 0xa32   : > { %v2945_v39 = vpop.xlane.xlu0 %2944 }
 0xa33   : > { %5675 = vpow2.f32 %v2969_v57  ;;  %v2959_v23 = vsub.f32 %v7377_v9, %v2945_v39  ;;  %v2960_v9 = vsub.f32 %v7383_v19, %v2948_v13 }
 0xa34   : > { %5677 = vpow2.f32 %v2965_v40  ;;  %v2954_v28 = vpop.xlane.xlu1 %2953 }
 0xa35   : > { %v2971_v45 = vmul.f32 1.442695, %v2959_v23  ;;  %v2962_v44 = vsub.f32 %v7379_v63, %v2954_v28  ;;  %v2973_v12 = vmul.f32 1.442695, %v2960_v9 }
 0xa36   : > { %v2951_v31 = vpop.xlane.xlu0 %2950 }
 0xa37   : > { %v2961_v61 = vsub.f32 %v7375_v55, %v2951_v31  ;;  %v2977_v55 = vmul.f32 1.442695, %v2962_v44 }
 0xa39   : > { %v7413_v22 = vpop.eup %5671  ;;  %v2975_v30 = vmul.f32 1.442695, %v2961_v61  ;;  %v5477_v61 = vld [vmem:[#allocation11 + $0x30] sm:$0xff]  }
 0xa3a   : > { %v3024_v4 = vpop.permute.xlu0 %3023  ;;  %v2985_v43 = vsel %vm824_vm0, %v7413_v22, 0.0  ;;  %v5674_v50 = vpop.eup %5673 }
 0xa3b   : > { %5679 = vpow2.f32 %v2975_v30  ;;  %2986 = vadd.xlane.f32.xlu0 %v2985_v43  ;;  %5179 = vmatprep.subr.bf16.mxu1 %v3024_v4  ;;  %v2979_v3 = vsel %vm824_vm0, %v5674_v50, 0.0  ;;  %v5478_v43 = vld [vmem:[#allocation11 + $0x38] sm:$0xff]  }
 0xa3c   : > { %5681 = vpow2.f32 %v2971_v45 }
 0xa3d   : > { %v7418_v47 = vpop.eup %5675  ;;  %5683 = vpow2.f32 %v2977_v55 }
 0xa3e   : > { %v2988_v63 = vsel %vm824_vm0, %v7418_v47, 0.0  ;;  %v5678_v60 = vpop.eup %5677  ;;  %5685 = vpow2.f32 %v2973_v12 }
 0xa3f   : > { %2980 = vadd.xlane.f32.xlu0 %v2979_v3  ;;  %2989 = vadd.xlane.f32.xlu1 %v2988_v63  ;;  %v2982_v49 = vsel %vm824_vm0, %v5678_v60, 0.0 }
 0xa43   : > { %2983 = vadd.xlane.f32.xlu1 %v2982_v49 }
 0xa45   : > { %v7425_v42 = vpop.eup %5679 }
 0xa46   : > { %v2997_v19 = vsel %vm824_vm0, %v7425_v42, 0.0  ;;  %v7429_v29 = vpop.eup %5681 }
 0xa47   : > { %2998 = vadd.xlane.f32.xlu1 %v2997_v19  ;;  %v2991_v51 = vsel %vm824_vm0, %v7429_v29, 0.0  ;;  %v7433_v10 = vpop.eup %5683 }
 0xa48   : > { %v3000_v35 = vsel %vm824_vm0, %v7433_v10, 0.0  ;;  %v5686_v46 = vpop.eup %5685 }
 0xa49   : > { %v2994_v24 = vsel %vm824_vm0, %v5686_v46, 0.0 }
 0xa4b   : > { %2992 = vadd.xlane.f32.xlu1 %v2991_v51 }
 0xa4f   : > { %3001 = vadd.xlane.f32.xlu1 %v3000_v35 }
 0xa53   : > { %2995 = vadd.xlane.f32.xlu1 %v2994_v24 }
 0xa55   : > { %3027 = vrot.lane.b32.xlu0 %v6741_v41, %s6161_s27 }
 0xa59   : > { %3029 = vrot.lane.b32.xlu0 %v6738_v26, %s6161_s27 }
 0xa64   : > { %3025 = vrot.lane.b32.xlu1 %v6715_v16, %s6161_s27  ;;  %s4463_s27 = sshll.u32 %s8000_s13, 4  ;;  %s8029_s27 = int_to_ptr.vmem [resolvable:$true] %s4463_s27 }
 0xa65   : > { %p6056_p0 = scmp.lt.s32.totalorder %s8029_s27, %s6054_s24 }
 0xa9e   : > { %v5145_v20 = vpop.f32.mrb[44].mxu1 }
 0xa9f   : > { %v2694_v62 = vpop.f32.mrb[45].mxu1 }
 0xaa0   : > { %v5146_v18 = vpop.f32.mrb[46].mxu1 }
 0xaa1   : > { %v2726_v59 = vpack.c.bf16 %v5146_v18, %v5145_v20  ;;  %v2697_v5 = vpop.f32.mrb[47].mxu1  ;;  %v804_v20 = vsub.s32 2, %v6669_v38 }
 0xaa2   : > { %v2725_v25 = vpack.c.bf16 %v2697_v5, %v2694_v62  ;;  %v7466_v62 = vld [vmem:[%s8170_s3] sm:$0x3f] }
 0xaa3   : > { %v805_v18 = vrot.slane %v7466_v62, %v804_v20 }
 0xaa4   : > { %5155 = vmatprep.mubr.msk.bf16.mxu1 %vm1456_vm2, %v2725_v25 }
 0xaa5   : > { %5156 = vmatmul.mubr.msk.bf16.vlgmr.msra.gmra.mrb[36].mxu1 %vm1456_vm2, %v2726_v59  ;;  %v904_v59 = vadd.f32 %v6663_v32, %v805_v18  ;;  %v5786_v32 = vld [vmem:[%s6554_s26 + $0x10] sm:$0xff] }
 0xaa6   : > { %5180 = vmatpush3.bf16.msra.mxu1 %v3024_v4  ;;  %v5149_v48 = vpop.f32.mrb[48].mxu1 }
 0xaa7   : > { %v2710_v15 = vpop.f32.mrb[49].mxu1  ;;  %v3216_v5 = vrot.slane %v904_v59, %v6678_v53 }
 0xaa8   : > { %v5150_v41 = vpop.f32.mrb[50].mxu1 }
 0xaa9   : > { %v2728_v58 = vpack.c.bf16 %v5150_v41, %v5149_v48  ;;  %v2713_v37 = vpop.f32.mrb[51].mxu1 }
 0xaaa   : > { %v2727_v26 = vpack.c.bf16 %v2713_v37, %v2710_v15 }
 0xaac   : > { %5159 = vmatprep.mubr.msk.bf16.mxu1 %vm1456_vm2, %v2727_v26 }
 0xaad   : > { %5160 = vmatmul.mubr.msk.bf16.gmra.mrb[40].mxu1 %vm1456_vm2, %v2728_v58 }
 0xac8   : > { %v2987_v16 = vpop.xlane.xlu0 %2986 }
 0xacc   : > { %v2990_v8 = vpop.xlane.xlu1 %2989  ;;  %v2981_v27 = vpop.xlane.xlu0 %2980 }
 0xacd   : > { %5687 = vrcp.f32 %v2981_v27 }
 0xad0   : > { %v2984_v56 = vpop.xlane.xlu1 %2983  ;;  %v3028_v1 = vpop.permute.xlu0 %3027 }
 0xad1   : > { %5689 = vrcp.f32 %v2984_v56  ;;  %v5785_v56 = vld [vmem:[%s6554_s26 + $0x8] sm:$0xff] }
 0xad2   : > { %5691 = vrcp.f32 %v2990_v8 }
 0xad3   : > { %5693 = vrcp.f32 %v2987_v16  ;;  %v5784_v16 = vld [vmem:[%s6554_s26] sm:$0xff] }
 0xad4   : > { %v2999_v17 = vpop.xlane.xlu1 %2998  ;;  %v3030_v23 = vpop.permute.xlu0 %3029 }
 0xad7   : > { %v5688_v2 = vpop.eup %5687 }
 0xad8   : > { %v2993_v52 = vpop.xlane.xlu1 %2992  ;;  %v3011_v21 = vmul.f32 %v5688_v2, %v5674_v50 }
 0xad9   : > { %5695 = vrcp.f32 %v2993_v52 }
 0xadb   : > { %v5690_v54 = vpop.eup %5689 }
 0xadc   : > { %v3002_v11 = vpop.xlane.xlu1 %3001  ;;  %v3012_v14 = vmul.f32 %v5690_v54, %v5678_v60  ;;  %v5692_v40 = vpop.eup %5691 }
 0xadd   : > { %v5694_v57 = vpop.eup %5693  ;;  %v3014_v31 = vmul.f32 %v5692_v40, %v7418_v47 }
 0xade   : > { %v3019_v36 = vpack.c.bf16 %v3012_v14, %v3011_v21  ;;  %v3013_v44 = vmul.f32 %v5694_v57, %v7413_v22  ;;  %v5788_v57 = vld [vmem:[%s6554_s26 + $0x28] sm:$0xff] }
 0xae0   : > { %v2996_v6 = vpop.xlane.xlu1 %2995  ;;  %5187 = vmatprep.mubr.msk.bf16.mxu1 %vm824_vm0, %v3019_v36  ;;  %v3020_v4 = vpack.c.bf16 %v3014_v31, %v3013_v44  ;;  %v5790_v31 = vld [vmem:[%s6554_s26 + $0x38] sm:$0xff] }
 0xae1   : > { %5697 = vrcp.f32 %v2996_v6 }
 0xae2   : > { %5699 = vrcp.f32 %v3002_v11 }
 0xae3   : > { %5701 = vrcp.f32 %v2999_v17  ;;  %v5696_v39 = vpop.eup %5695 }
 0xae4   : > { %v3026_v13 = vpop.permute.xlu1 %3025  ;;  %v3015_v30 = vmul.f32 %v5696_v39, %v7429_v29 }
 0xae5   : > { %5181 = vmatprep.subr.bf16.mxu1 %v3026_v13 }
 0xae6   : > { %5182 = vmatpush3.bf16.msra.mxu1 %v3026_v13 }
 0xae7   : > { %5183 = vmatprep.subr.bf16.mxu1 %v3028_v1 }
 0xaea   : > { %5184 = vmatpush3.bf16.msra.mxu1 %v3028_v1  ;;  %v5787_v1 = vld [vmem:[%s6554_s26 + $0x18] sm:$0xff] }
 0xaeb   : > { %v5698_v28 = vpop.eup %5697  ;;  %5185 = vmatprep.subr.bf16.mxu1 %v3030_v23 }
 0xaec   : > { %v3016_v45 = vmul.f32 %v5698_v28, %v5686_v46  ;;  %v5700_v50 = vpop.eup %5699 }
 0xaed   : > { %v5702_v55 = vpop.eup %5701  ;;  %v3018_v47 = vmul.f32 %v5700_v50, %v7433_v10  ;;  %v5484_v50 = vld [vmem:[#allocation13 + $0xc] ss:$16 sps:$4 sm:$0xff]  }
 0xaee   : > { %5186 = vmatpush3.bf16.msra.mxu1 %v3030_v23  ;;  %v3021_v9 = vpack.c.bf16 %v3016_v45, %v3015_v30  ;;  %v3017_v3 = vmul.f32 %v5702_v55, %v7425_v42  ;;  %v5789_v23 = vld [vmem:[%s6554_s26 + $0x20] sm:$0xff]  ;;  %v5791_v45 = vld [vmem:[%s6554_s26 + $0x30] sm:$0xff]  ;;  %s8244_s26 = sld [smem:[#allocation70_spill]] }
 0xaef   : > { %5195 = vmatprep.subr.bf16.mxu1 %v5477_v61  ;;  %v5479_v30 = vld [vmem:[#allocation13] ss:$16 sps:$4 sm:$0xff]   ;;  %v5490_v55 = vld [vmem:[#allocation13 + $0x2c] ss:$16 sps:$4 sm:$0xff]  }
 0xaf0   : > { %v3022_v22 = vpack.c.bf16 %v3018_v47, %v3017_v3  ;;  %v5485_v47 = vld [vmem:[#allocation13 + $0x20] ss:$16 sps:$4 sm:$0xff]   ;;  %v5488_v3 = vld [vmem:[#allocation13 + $0x28] ss:$16 sps:$4 sm:$0xff]  }
 0xaf1   : > { %5188 = vmatmul.mubr.msk.bf16.vlgmr.msra.gmra.mrb[52].mxu1 %vm824_vm0, %v3020_v4  ;;  %v5481_v4 = vld [vmem:[#allocation13 + $0x4] ss:$16 sps:$4 sm:$0xff]  }
 0xaf2   : > { %5191 = vmatprep.mubr.msk.bf16.mxu1 %vm824_vm0, %v3021_v9  ;;  %5196 = vmatpush3.bf16.msra.mxu1 %v5477_v61  ;;  %v5487_v9 = vld [vmem:[#allocation13 + $0x24] ss:$16 sps:$4 sm:$0xff]  }
 0xaf3   : > { %5197 = vmatprep.subr.bf16.mxu1 %v5478_v43  ;;  %3578 = vmatprep.subr.bf16.mxu0 %v5481_v4  ;;  %v5508_v4 = vld [vmem:[#allocation13 + $0x8c] ss:$16 sps:$4 sm:$0xff]  }
 0xaf4   : > { %3579 = vmatpush1.bf16.msra.mxu0 %v5479_v30  ;;  %v5505_v30 = vld [vmem:[#allocation13 + $0x84] ss:$16 sps:$4 sm:$0xff]   ;;  %s8027_s20 = scalar_lea.hbm %s8244_s26, %s4826_s28 }
 0xaf5   : > { %3580 = vmatprep.subr.bf16.mxu0 %v5487_v9  ;;  %v5511_v9 = vld [vmem:[#allocation13 + $0xa4] ss:$16 sps:$4 sm:$0xff]  }
 0xaf6   : > { %5198 = vmatpush3.bf16.msra.mxu1 %v5478_v43  ;;  %v5482_v43 = vld [vmem:[#allocation13 + $0x8] ss:$16 sps:$4 sm:$0xff]  }
 0xaf7   : > { %3651 = vmatprep.subr.bf16.mxu1 %v5484_v50  ;;  %v5506_v50 = vld [vmem:[#allocation13 + $0x88] ss:$16 sps:$4 sm:$0xff]  }
 0xaf8   : > { %3581 = vmatpush1.bf16.msra.mxu0 %v5485_v47  ;;  %v5509_v47 = vld [vmem:[#allocation13 + $0xa0] ss:$16 sps:$4 sm:$0xff]  }
 0xaf9   : > { %5192 = vmatmul.mubr.msk.bf16.gmra.mrb[56].mxu1 %vm824_vm0, %v3022_v22 }
 0xbc4   : > { %v5189_v63 = vpop.f32.mrb[52].mxu1 }
 0xbc5   : > { %v3081_v60 = vpop.f32.mrb[53].mxu1 }
 0xbc6   : > { %v5190_v12 = vpop.f32.mrb[54].mxu1 }
 0xbc7   : > { %v3113_v49 = vpack.c.bf16 %v5190_v12, %v5189_v63  ;;  %v3084_v19 = vpop.f32.mrb[55].mxu1 }
 0xbc8   : > { %v3112_v29 = vpack.c.bf16 %v3084_v19, %v3081_v60 }
 0xbca   : > { %5199 = vmatprep.mubr.msk.bf16.mxu1 %vm1456_vm2, %v3112_v29 }
 0xbcb   : > { %5200 = vmatmul.mubr.msk.bf16.vlgmr.msra.gmra.mrb[36].mxu1 %vm1456_vm2, %v3113_v49 }
 0xbcc   : > { %v5193_v51 = vpop.f32.mrb[56].mxu1  ;;  %3652 = vmatpush1.bf16.msra.mxu1 %v5482_v43  ;;  %v5503_v43 = vld [vmem:[#allocation13 + $0x80] ss:$16 sps:$4 sm:$0xff]  }
 0xbcd   : > { %v3097_v35 = vpop.f32.mrb[57].mxu1  ;;  %3653 = vmatprep.subr.bf16.mxu1 %v5490_v55  ;;  %v5514_v55 = vld [vmem:[#allocation13 + $0xac] ss:$16 sps:$4 sm:$0xff]  }
 0xbce   : > { %v5194_v10 = vpop.f32.mrb[58].mxu1 }
 0xbcf   : > { %v3115_v46 = vpack.c.bf16 %v5194_v10, %v5193_v51  ;;  %v3100_v24 = vpop.f32.mrb[59].mxu1 }
 0xbd0   : > { %v3114_v42 = vpack.c.bf16 %v3100_v24, %v3097_v35  ;;  %3654 = vmatpush1.bf16.msra.mxu1 %v5488_v3  ;;  %v5512_v3 = vld [vmem:[#allocation13 + $0xa8] ss:$16 sps:$4 sm:$0xff]  }
 0xbd2   : > { %5203 = vmatprep.mubr.msk.bf16.mxu1 %vm1456_vm2, %v3114_v42 }
 0xbd3   : > { %5204 = vmatmul.mubr.msk.bf16.gmra.mrb[40].mxu1 %vm1456_vm2, %v3115_v46 }
 0xbd4   : > { %3683 = vmatprep.mubr.bf16.mxu1 %v6156_v0 }
 0xc9e   : > { %v5201_v25 = vpop.f32.mrb[36].mxu1 }
 0xc9f   : > { %v3219_v48 = vmul.f32 %v5201_v25, %v3216_v5  ;;  %v3174_v15 = vpop.f32.mrb[37].mxu1 }
 0xca0   : > { %v3217_v41 = vmul.f32 %v3216_v5, %v3174_v15  ;;  %v5202_v58 = vpop.f32.mrb[38].mxu1 }
 0xca1   : > { %v3220_v37 = vmul.f32 %v5202_v58, %v3216_v5  ;;  %v3177_v26 = vpop.f32.mrb[39].mxu1  ;;  %v7481_v52 = vadd.f32 %v5786_v32, %v3219_v48 }
 0xca2   : > { %v7474_v8 = vadd.f32 %v5784_v16, %v3217_v41  ;;  %v3218_v27 = vmul.f32 %v3216_v5, %v3177_v26 }
 0xca3   : > { %8176 = vst [vmem:[#allocation30_spill] sm:$0xff] %v7481_v52  ;;  %v7486_v13 = vadd.f32 %v5787_v1, %v3220_v37  ;;  %v5491_v1 = vld [vmem:[#allocation13 + $0x40] ss:$16 sps:$4 sm:$0xff]  }
 0xca4   : > { %8174 = vst [vmem:[#allocation28_spill] sm:$0xff] %v7474_v8  ;;  %v7477_v17 = vadd.f32 %v5785_v56, %v3218_v27  ;;  %3234 = vadd.xlane.f32.xlu0 %v7474_v8 }
 0xca5   : > { %8177 = vst [vmem:[#allocation31_spill] sm:$0xff] %v7486_v13 }
 0xca6   : > { %8175 = vst [vmem:[#allocation29_spill] sm:$0xff] %v7477_v17  ;;  %3236 = vadd.xlane.f32.xlu1 %v7477_v17  ;;  %v5205_v2 = vpop.f32.mrb[40].mxu1 }
 0xca7   : > { %v3223_v54 = vmul.f32 %v5205_v2, %v3216_v5  ;;  %v3190_v11 = vpop.f32.mrb[41].mxu1 }
 0xca8   : > { %v3221_v21 = vmul.f32 %v3216_v5, %v3190_v11  ;;  %3238 = vadd.xlane.f32.xlu0 %v7481_v52  ;;  %v5206_v14 = vpop.f32.mrb[42].mxu1 }
 0xca9   : > { %v3224_v36 = vmul.f32 %v5206_v14, %v3216_v5  ;;  %v3193_v6 = vpop.f32.mrb[43].mxu1  ;;  %v7501_v44 = vadd.f32 %v5791_v45, %v3223_v54  ;;  %v5500_v45 = vld [vmem:[#allocation13 + $0x68] ss:$16 sps:$4 sm:$0xff]  }
 0xcaa   : > { %v3222_v40 = vmul.f32 %v3216_v5, %v3193_v6  ;;  %v7493_v28 = vadd.f32 %v5789_v23, %v3221_v21  ;;  %v5496_v6 = vld [vmem:[#allocation13 + $0x4c] ss:$16 sps:$4 sm:$0xff]  }
 0xcab   : > { %v7497_v61 = vadd.f32 %v5790_v31, %v3224_v36  ;;  %8181 = vst [vmem:[#allocation35_spill] sm:$0xff] %v7501_v44  ;;  %v5493_v36 = vld [vmem:[#allocation13 + $0x44] ss:$16 sps:$4 sm:$0xff]   ;;  %3655 = vmatprep.subr.bf16.mxu1 %v5496_v6  ;;  %v5502_v23 = vld [vmem:[#allocation13 + $0x6c] ss:$16 sps:$4 sm:$0xff]  }
 0xcac   : > { %v7489_v39 = vadd.f32 %v5788_v57, %v3222_v40  ;;  %3240 = vadd.xlane.f32.xlu0 %v7486_v13  ;;  %8179 = vst [vmem:[#allocation33_spill] sm:$0xff] %v7493_v28  ;;  %v5494_v40 = vld [vmem:[#allocation13 + $0x48] ss:$16 sps:$4 sm:$0xff]   ;;  %3582 = vmatprep.subr.bf16.mxu0 %v5493_v36  ;;  %v5499_v57 = vld [vmem:[#allocation13 + $0x64] ss:$16 sps:$4 sm:$0xff]  }
 0xcad   : > { %8180 = vst [vmem:[#allocation34_spill] sm:$0xff] %v7497_v61  ;;  %3583 = vmatpush1.bf16.msra.mxu0 %v5491_v1  ;;  %3656 = vmatpush1.bf16.msra.mxu1 %v5494_v40  ;;  %v5497_v31 = vld [vmem:[#allocation13 + $0x60] ss:$16 sps:$4 sm:$0xff]  }
 0xcae   : > { %8178 = vst [vmem:[#allocation32_spill] sm:$0xff] %v7489_v39  ;;  %3244 = vadd.xlane.f32.xlu1 %v7489_v39  ;;  %3584 = vmatprep.subr.bf16.mxu0 %v5499_v57 }
 0xcaf   : > { %3657 = vmatprep.subr.bf16.mxu1 %v5502_v23 }
 0xcb0   : > { %3242 = vadd.xlane.f32.xlu0 %v7493_v28 }
 0xcb1   : > { %3585 = vmatpush1.bf16.msra.mxu0 %v5497_v31  ;;  %3658 = vmatpush1.bf16.msra.mxu1 %v5500_v45  ;;  %v4754_v45 = vld [vmem:[%s8182_s17] ss:$0 sm:$0xff]  ;;  %s6049_s17 = scalar_lea.vmem %s8029_s27, 1024 }
 0xcb2   : > { %3248 = vadd.xlane.f32.xlu1 %v7497_v61  ;;  %3586 = vmatprep.subr.bf16.mxu0 %v5505_v30  ;;  %p6050_p6 = scmp.ne.s32.totalorder %s8029_s27, %s6049_s17 }
 0xcb3   : > { %3659 = vmatprep.subr.bf16.mxu1 %v5508_v4 }
 0xcb4   : > { %3246 = vadd.xlane.f32.xlu0 %v7501_v44  ;;  %p6051_p5 = pnand %p6050_p6, %p8246_p10 }
 0xcb5   : > { %3587 = vmatpush1.bf16.msra.mxu0 %v5503_v43  ;;  %3660 = vmatpush1.bf16.msra.mxu1 %v5506_v50 }
 0xcb6   : > { %3588 = vmatprep.subr.bf16.mxu0 %v5511_v9  ;;  %3661 = vmatprep.subr.bf16.mxu1 %v5514_v55  ;;  %p6052_p9 = pneg %p6051_p5 }
 0xcb9   : > { %3589 = vmatpush1.bf16.msra.mxu0 %v5509_v47  ;;  %3662 = vmatpush1.bf16.msra.mxu1 %v5512_v3 }
 0xd31   : > { %v3235_v22 = vpop.xlane.xlu0 %3234 }
 0xd32   : > { %v3250_v63 = vmul.f32 0.0078125, %v3235_v22  ;;  %v5517_v22 = vld [vmem:[#allocation13 + $0xc4] ss:$16 sps:$4 sm:$0xff]  }
 0xd33   : > { %v3237_v60 = vpop.xlane.xlu1 %3236  ;;  %3590 = vmatprep.subr.bf16.mxu0 %v5517_v22 }
 0xd34   : > { %v7506_v12 = vsub.f32 %v7474_v8, %v3250_v63  ;;  %v3251_v49 = vmul.f32 0.0078125, %v3237_v60  ;;  %v5520_v63 = vld [vmem:[#allocation13 + $0xcc] ss:$16 sps:$4 sm:$0xff]   ;;  %v5515_v60 = vld [vmem:[#allocation13 + $0xc0] ss:$16 sps:$4 sm:$0xff]  }
 0xd35   : > { %v3239_v19 = vpop.xlane.xlu0 %3238  ;;  %3663 = vmatprep.subr.bf16.mxu1 %v5520_v63  ;;  %3591 = vmatpush1.bf16.msra.mxu0 %v5515_v60 }
 0xd36   : > { %v7509_v29 = vsub.f32 %v7477_v17, %v3251_v49  ;;  %v3252_v51 = vmul.f32 0.0078125, %v3239_v19  ;;  %v3266_v35 = vmul.f32 %v7506_v12, %v7506_v12  ;;  %v5518_v49 = vld [vmem:[#allocation13 + $0xc8] ss:$16 sps:$4 sm:$0xff]   ;;  %v5523_v19 = vld [vmem:[#allocation13 + $0xe4] ss:$16 sps:$4 sm:$0xff]  }
 0xd37   : > { %3664 = vmatpush1.bf16.msra.mxu1 %v5518_v49  ;;  %3592 = vmatprep.subr.bf16.mxu0 %v5523_v19 }
 0xd38   : > { %v7514_v10 = vsub.f32 %v7481_v52, %v3252_v51  ;;  %3274 = vadd.xlane.f32.xlu0 %v3266_v35  ;;  %v3267_v46 = vmul.f32 %v7509_v29, %v7509_v29  ;;  %v5526_v51 = vld [vmem:[#allocation13 + $0xec] ss:$16 sps:$4 sm:$0xff]   ;;  %v5521_v35 = vld [vmem:[#allocation13 + $0xe0] ss:$16 sps:$4 sm:$0xff]  }
 0xd39   : > { %v3241_v24 = vpop.xlane.xlu0 %3240  ;;  %3665 = vmatprep.subr.bf16.mxu1 %v5526_v51  ;;  %3593 = vmatpush1.bf16.msra.mxu0 %v5521_v35 }
 0xd3a   : > { %v3253_v42 = vmul.f32 0.0078125, %v3241_v24  ;;  %3276 = vadd.xlane.f32.xlu1 %v3267_v46  ;;  %v3268_v18 = vmul.f32 %v7514_v10, %v7514_v10  ;;  %v5524_v46 = vld [vmem:[#allocation13 + $0xe8] ss:$16 sps:$4 sm:$0xff]  }
 0xd3b   : > { %v3245_v59 = vpop.xlane.xlu1 %3244  ;;  %3666 = vmatpush1.bf16.msra.mxu1 %v5524_v46 }
 0xd3c   : > { %v7521_v5 = vsub.f32 %v7486_v13, %v3253_v42  ;;  %v3255_v25 = vmul.f32 0.0078125, %v3245_v59  ;;  %3278 = vadd.xlane.f32.xlu0 %v3268_v18  ;;  %v812_v18 = vsub.s32 4, %v6669_v38 }
 0xd3d   : > { %v3243_v48 = vpop.xlane.xlu0 %3242 }
 0xd3e   : > { %v7524_v15 = vsub.f32 %v7489_v39, %v3255_v25  ;;  %v3254_v41 = vmul.f32 0.0078125, %v3243_v48  ;;  %v3269_v58 = vmul.f32 %v7521_v5, %v7521_v5 }
 0xd3f   : > { %v3249_v37 = vpop.xlane.xlu1 %3248 }
 0xd40   : > { %v7529_v26 = vsub.f32 %v7493_v28, %v3254_v41  ;;  %v3257_v16 = vmul.f32 0.0078125, %v3249_v37  ;;  %3280 = vadd.xlane.f32.xlu1 %v3269_v58  ;;  %v3271_v54 = vmul.f32 %v7524_v15, %v7524_v15 }
 0xd41   : > { %v3247_v27 = vpop.xlane.xlu0 %3246 }
 0xd42   : > { %v7532_v56 = vsub.f32 %v7497_v61, %v3257_v16  ;;  %v3256_v32 = vmul.f32 0.0078125, %v3247_v27  ;;  %v3270_v2 = vmul.f32 %v7529_v26, %v7529_v26  ;;  %v813_v16 = vrot.slane %v7466_v62, %v812_v18 }
 0xd44   : > { %v7539_v11 = vsub.f32 %v7501_v44, %v3256_v32  ;;  %3282 = vadd.xlane.f32.xlu0 %v3270_v2  ;;  %3284 = vadd.xlane.f32.xlu1 %v3271_v54  ;;  %v3273_v14 = vmul.f32 %v7532_v56, %v7532_v56  ;;  %v808_v32 = vsub.s32 3, %v6669_v38 }
 0xd46   : > { %v3272_v21 = vmul.f32 %v7539_v11, %v7539_v11  ;;  %v809_v36 = vrot.slane %v7466_v62, %v808_v32 }
 0xd48   : > { %3286 = vadd.xlane.f32.xlu0 %v3272_v21  ;;  %3288 = vadd.xlane.f32.xlu1 %v3273_v14  ;;  %v945_v21 = vadd.f32 %v6667_v34, %v813_v16  ;;  %v906_v34 = vadd.f32 %v6665_v33, %v809_v36 }
 0xd4a   : > { %v952_v23 = vadd.f32 1.0, %v945_v21  ;;  %v3351_v51 = vrot.slane %v906_v34, %v6678_v53 }
 0xd4c   : > { %v3339_v3 = vrot.slane %v952_v23, %v6678_v53 }
 0xdc5   : > { %v3275_v24 = vpop.xlane.xlu0 %3274 }
 0xdc6   : > { %v3290_v42 = vmul.f32 0.0078125, %v3275_v24 }
 0xdc7   : > { %v3277_v59 = vpop.xlane.xlu1 %3276 }
 0xdc8   : > { %v3298_v25 = vadd.f32 1e-05, %v3290_v42  ;;  %v3291_v48 = vmul.f32 0.0078125, %v3277_v59 }
 0xdc9   : > { %v3279_v41 = vpop.xlane.xlu0 %3278 }
 0xdca   : > { %5703 = vrsqrt.f32 %v3298_v25  ;;  %v3299_v58 = vadd.f32 1e-05, %v3291_v48  ;;  %v3292_v37 = vmul.f32 0.0078125, %v3279_v41 }
 0xdcc   : > { %5705 = vrsqrt.f32 %v3299_v58  ;;  %v3300_v27 = vadd.f32 1e-05, %v3292_v37 }
 0xdcd   : > { %v3281_v2 = vpop.xlane.xlu1 %3280 }
 0xdce   : > { %5707 = vrsqrt.f32 %v3300_v27  ;;  %v3293_v54 = vmul.f32 0.0078125, %v3281_v2 }
 0xdd0   : > { %v3301_v14 = vadd.f32 1e-05, %v3293_v54 }
 0xdd1   : > { %v3283_v6 = vpop.xlane.xlu0 %3282  ;;  %v3285_v1 = vpop.xlane.xlu1 %3284 }
 0xdd2   : > { %5709 = vrsqrt.f32 %v3301_v14  ;;  %v3294_v40 = vmul.f32 0.0078125, %v3283_v6  ;;  %v3295_v57 = vmul.f32 0.0078125, %v3285_v1 }
 0xdd4   : > { %v5704_v31 = vpop.eup %5703  ;;  %v3302_v30 = vadd.f32 1e-05, %v3294_v40  ;;  %v3303_v4 = vadd.f32 1e-05, %v3295_v57 }
 0xdd5   : > { %v3314_v43 = vmul.f32 %v5704_v31, %v7506_v12  ;;  %v3287_v50 = vpop.xlane.xlu0 %3286  ;;  %v3289_v9 = vpop.xlane.xlu1 %3288 }
 0xdd6   : > { %v5706_v62 = vpop.eup %5705  ;;  %5711 = vrsqrt.f32 %v3302_v30  ;;  %v3296_v55 = vmul.f32 0.0078125, %v3287_v50  ;;  %v3297_v47 = vmul.f32 0.0078125, %v3289_v9 }
 0xdd7   : > { %v3328_v22 = vmul.f32 %v4754_v45, %v3314_v43  ;;  %v3315_v63 = vmul.f32 %v5706_v62, %v7509_v29  ;;  %5713 = vrsqrt.f32 %v3303_v4  ;;  %v5529_v62 = vld [vmem:[#allocation14 + $0x48] sm:$0xff]  }
 0xdd8   : > { %v5708_v60 = vpop.eup %5707  ;;  %v3304_v49 = vadd.f32 1e-05, %v3296_v55  ;;  %v3305_v19 = vadd.f32 1e-05, %v3297_v47  ;;  %v5530_v55 = vld [vmem:[#allocation14 + $0x8] sm:$0xff]   ;;  %v5531_v47 = vld [vmem:[#allocation14 + $0x50] sm:$0xff]  }
 0xdd9   : > { %v3329_v33 = vmul.f32 %v4754_v45, %v3315_v63  ;;  %v3340_v35 = vmul.f32 %v3339_v3, %v3328_v22  ;;  %v3316_v12 = vmul.f32 %v5708_v60, %v7514_v10  ;;  %v5533_v22 = vld [vmem:[#allocation14 + $0x10] sm:$0xff]   ;;  %v7572_v63 = vld [vmem:[#allocation14 + $0x80] sm:$0xff]   ;;  %v7575_v60 = vld [vmem:[#allocation14 + $0xc8] sm:$0xff]  }
 0xdda   : > { %5715 = vrsqrt.f32 %v3304_v49  ;;  %8183 = vst [vmem:[#allocation36_spill] sm:$0xff] %v7575_v60  ;;  %v5537_v49 = vld [vmem:[#allocation14 + $0x18] sm:$0xff]  }
 0xddb   : > { %5717 = vrsqrt.f32 %v3305_v19  ;;  %v3341_v46 = vmul.f32 %v3339_v3, %v3329_v33  ;;  %v3352_v24 = vadd.f32 %v3351_v51, %v3340_v35  ;;  %v3330_v42 = vmul.f32 %v4754_v45, %v3316_v12  ;;  %v7577_v19 = vld [vmem:[#allocation14 + $0x88] sm:$0xff]   ;;  %v7581_v33 = vld [vmem:[#allocation14 + $0xd0] sm:$0xff]   ;;  %v5541_v35 = vld [vmem:[#allocation14 + $0x20] sm:$0xff]  }
 0xddc   : > { %v5710_v18 = vpop.eup %5709  ;;  %8184 = vst [vmem:[#allocation37_spill] sm:$0xff] %v7577_v19  ;;  %8185 = vst [vmem:[#allocation38_spill] sm:$0xff] %v7581_v33  ;;  %v7584_v12 = vld [vmem:[#allocation14 + $0x90] sm:$0xff]  }
 0xddd   : > { %v3353_v59 = vadd.f32 %v3351_v51, %v3341_v46  ;;  %v3317_v25 = vmul.f32 %v5710_v18, %v7521_v5  ;;  %v3342_v29 = vmul.f32 %v3339_v3, %v3330_v42  ;;  %8186 = vst [vmem:[#allocation39_spill] sm:$0xff] %v7584_v12  ;;  %v5543_v46 = vld [vmem:[#allocation14 + $0x68] sm:$0xff]   ;;  %v7589_v18 = vld [vmem:[#allocation14 + $0x98] sm:$0xff]  }
 0xdde   : > { %v5545_v42 = vld [vmem:[#allocation14 + $0x28] sm:$0xff]   ;;  %8188 = vst [vmem:[#allocation41_spill] sm:$0xff] %v7589_v18 }
 0xddf   : > { %v3360_v48 = vpack.c.bf16 %v3353_v59, %v3352_v24  ;;  %v3331_v41 = vmul.f32 %v4754_v45, %v3317_v25  ;;  %v3354_v58 = vadd.f32 %v3351_v51, %v3342_v29  ;;  %v7587_v24 = vld [vmem:[#allocation14 + $0xd8] sm:$0xff]   ;;  %v5547_v59 = vld [vmem:[#allocation14 + $0x70] sm:$0xff]   ;;  %v7593_v25 = vld [vmem:[#allocation14 + $0xe0] sm:$0xff]  }
 0xde0   : > { %v5712_v37 = vpop.eup %5711  ;;  %8187 = vst [vmem:[#allocation40_spill] sm:$0xff] %v7587_v24  ;;  %8189 = vst [vmem:[#allocation42_spill] sm:$0xff] %v7593_v25  ;;  %v5549_v29 = vld [vmem:[#allocation14 + $0x30] sm:$0xff]  }
 0xde1   : > { %v5714_v16 = vpop.eup %5713  ;;  %3611 = vmatmul.mubr.bf16.vlgmr.msra.gmra.mrb[48].mxu0 %v3360_v48  ;;  %3684 = vmatmul.mubr.bf16.vlgmr.msra.gmra.mrb[60].mxu1 %v3360_v48  ;;  %v3343_v27 = vmul.f32 %v3339_v3, %v3331_v41  ;;  %v3318_v10 = vmul.f32 %v5712_v37, %v7529_v26  ;;  %v7595_v48 = vld [vmem:[#allocation14 + $0xa0] sm:$0xff]   ;;  %v5551_v41 = vld [vmem:[#allocation14 + $0x78] sm:$0xff]  }
 0xde2   : > { %3620 = vmatprep.mubr.bf16.mxu0 %v6156_v0  ;;  %3693 = vmatprep.mubr.bf16.mxu1 %v6156_v0  ;;  %v3319_v2 = vmul.f32 %v5714_v16, %v7524_v15  ;;  %8190 = vst [vmem:[#allocation43_spill] sm:$0xff] %v7595_v48  ;;  %v5553_v37 = vld [vmem:[#allocation14 + $0x38] sm:$0xff]   ;;  %v7601_v16 = vld [vmem:[#allocation14 + $0xa8] sm:$0xff]  }
 0xde3   : > { %v3355_v54 = vadd.f32 %v3351_v51, %v3343_v27  ;;  %v3332_v21 = vmul.f32 %v4754_v45, %v3318_v10  ;;  %8192 = vst [vmem:[#allocation45_spill] sm:$0xff] %v7601_v16  ;;  %v7605_v27 = vld [vmem:[#allocation14 + $0xf0] sm:$0xff]  }
 0xde4   : > { %v5716_v5 = vpop.eup %5715  ;;  %v3333_v14 = vmul.f32 %v4754_v45, %v3319_v2  ;;  %8193 = vst [vmem:[#allocation46_spill] sm:$0xff] %v7605_v27  ;;  %v7607_v10 = vld [vmem:[#allocation14 + $0xb0] sm:$0xff]   ;;  %v7610_v2 = vld [vmem:[#allocation14 + $0xf8] sm:$0xff]  }
 0xde5   : > { %v5718_v36 = vpop.eup %5717  ;;  %v3320_v6 = vmul.f32 %v5716_v5, %v7539_v11  ;;  %v3361_v1 = vpack.c.bf16 %v3355_v54, %v3354_v58  ;;  %v3344_v40 = vmul.f32 %v3339_v3, %v3332_v21  ;;  %v7599_v58 = vld [vmem:[#allocation14 + $0xe8] sm:$0xff]   ;;  %8194 = vst [vmem:[#allocation47_spill] sm:$0xff] %v7607_v10  ;;  %8195 = vst [vmem:[#allocation48_spill] sm:$0xff] %v7610_v2  ;;  %v7614_v54 = vld [vmem:[#allocation14 + $0xb8] sm:$0xff]  }
 0xde6   : > { %v3321_v57 = vmul.f32 %v5718_v36, %v7532_v56  ;;  %v3345_v23 = vmul.f32 %v3339_v3, %v3333_v14  ;;  %v5527_v56 = vld [vmem:[#allocation14 + $0x40] sm:$0xff]   ;;  %8191 = vst [vmem:[#allocation44_spill] sm:$0xff] %v7599_v58  ;;  %8196 = vst [vmem:[#allocation49_spill] sm:$0xff] %v7614_v54  ;;  %v8198_v36 = vsub.s32 1, %v6669_v38 }
 0xde7   : > { %v3356_v31 = vadd.f32 %v3351_v51, %v3344_v40  ;;  %v3334_v26 = vmul.f32 %v4754_v45, %v3320_v6  ;;  %4927 = vmatprep.subr.bf16.mxu0 %v5527_v56  ;;  %v3396_v21 = vld [vmem:[%s8197_s21] sm:$0xf]  ;;  %s6055_s21 = scalar_lea.vmem %s6054_s24, 2048 }
 0xde8   : > { %v3357_v30 = vadd.f32 %v3351_v51, %v3345_v23  ;;  %v3335_v4 = vmul.f32 %v4754_v45, %v3321_v57  ;;  %v5528_v45 = vld [vmem:[#allocation14] sm:$0xff]   ;;  %v7622_v5 = vrot.slane %v3396_v21, %v804_v20  ;;  %v7625_v14 = vrot.slane %v3396_v21, %v6678_v53  ;;  %p6057_p7 = scmp.lt.s32.totalorder %s6055_s21, %s6049_s17 }
 0xde9   : > { %3621 = vmatmul.mubr.bf16.gmra.mrb[52].mxu0 %v3361_v1  ;;  %3694 = vmatmul.mubr.bf16.gmra.mrb[64].mxu1 %v3361_v1  ;;  %v3346_v34 = vmul.f32 %v3339_v3, %v3334_v26  ;;  %v7629_v6 = vrot.slane %v3396_v21, %v8198_v36  ;;  %v7633_v1 = vrot.slane %v3396_v21, %v808_v32 }
 0xdea   : > { %3630 = vmatprep.mubr.bf16.mxu0 %v6156_v0  ;;  %3703 = vmatprep.mubr.bf16.mxu1 %v6156_v0  ;;  %v3362_v15 = vpack.c.bf16 %v3357_v30, %v3356_v31  ;;  %v3347_v43 = vmul.f32 %v3339_v3, %v3335_v4  ;;  %v5532_v3 = vld [vmem:[#allocation14 + $0xc0] sm:$0xff]   ;;  %p6058_p11 = por %p6057_p7, %p6056_p0 }
 0xdeb   : > { %v3358_v50 = vadd.f32 %v3351_v51, %v3346_v34  ;;  %4928 = vmatpush3.bf16.msra.mxu0 %v5528_v45  ;;  %5207 = vmatprep.subr.bf16.mxu1 %v5532_v3 }
 0xdec   : > { %v3359_v11 = vadd.f32 %v3351_v51, %v3347_v43  ;;  %4929 = vmatprep.subr.bf16.mxu0 %v5529_v62  ;;  %5215 = vmatpush3.bf16.msra.mxu1 %v7572_v63  ;;  %v5539_v51 = vld [vmem:[#allocation14 + $0x60] sm:$0xff]   ;;  %p6059_p8 = pnand %p6058_p11, %p6052_p9 }
 0xded   : > { %5208 = vmatprep.subr.bf16.mxu1 %v7575_v60 }
 0xdee   : > { %v3363_v9 = vpack.c.bf16 %v3359_v11, %v3358_v50 }
 0xdef   : > { %4930 = vmatpush3.bf16.msra.mxu0 %v5530_v55 }
 0xdf0   : > { %4931 = vmatprep.subr.bf16.mxu0 %v5531_v47  ;;  %5216 = vmatpush3.bf16.msra.mxu1 %v7577_v19 }
 0xdf1   : > { %3631 = vmatmul.mubr.bf16.gmra.mrb[56].mxu0 %v3362_v15  ;;  %3704 = vmatmul.mubr.bf16.gmra.mrb[68].mxu1 %v3362_v15 }
 0xdf2   : > { %3640 = vmatprep.mubr.bf16.mxu0 %v6156_v0  ;;  %3713 = vmatprep.mubr.bf16.mxu1 %v6156_v0  ;;  %v5535_v0 = vld [vmem:[#allocation14 + $0x58] sm:$0xff]  }
 0xdf3   : > { %4932 = vmatpush3.bf16.msra.mxu0 %v5533_v22  ;;  %5209 = vmatprep.subr.bf16.mxu1 %v7581_v33 }
 0xdf4   : > { %4933 = vmatprep.subr.bf16.mxu0 %v5535_v0  ;;  %5217 = vmatpush3.bf16.msra.mxu1 %v7584_v12 }
 0xdf5   : > { %5210 = vmatprep.subr.bf16.mxu1 %v7587_v24 }
 0xdf7   : > { %4934 = vmatpush3.bf16.msra.mxu0 %v5537_v49 }
 0xdf8   : > { %4935 = vmatprep.subr.bf16.mxu0 %v5539_v51  ;;  %5218 = vmatpush3.bf16.msra.mxu1 %v7589_v18 }
 0xdf9   : > { %3641 = vmatmul.mubr.bf16.gmra.mrb[60].mxu0 %v3363_v9  ;;  %3714 = vmatmul.mubr.bf16.gmra.mrb[72].mxu1 %v3363_v9 }
 0xdfa   : > { %5211 = vmatprep.subr.bf16.mxu1 %v7593_v25 }
 0xdfb   : > { %4936 = vmatpush3.bf16.msra.mxu0 %v5541_v35 }
 0xdfc   : > { %4937 = vmatprep.subr.bf16.mxu0 %v5543_v46  ;;  %5219 = vmatpush3.bf16.msra.mxu1 %v7595_v48 }
 0xdfd   : > { %5212 = vmatprep.subr.bf16.mxu1 %v7599_v58 }
 0xdff   : > { %4938 = vmatpush3.bf16.msra.mxu0 %v5545_v42 }
 0xe00   : > { %4939 = vmatprep.subr.bf16.mxu0 %v5547_v59  ;;  %5220 = vmatpush3.bf16.msra.mxu1 %v7601_v16 }
 0xe01   : > { %5213 = vmatprep.subr.bf16.mxu1 %v7605_v27 }
 0xe03   : > { %4940 = vmatpush3.bf16.msra.mxu0 %v5549_v29 }
 0xe04   : > { %4941 = vmatprep.subr.bf16.mxu0 %v5551_v41  ;;  %5221 = vmatpush3.bf16.msra.mxu1 %v7607_v10 }
 0xe05   : > { %5214 = vmatprep.subr.bf16.mxu1 %v7610_v2 }
 0xe07   : > { %4942 = vmatpush3.bf16.msra.mxu0 %v5553_v37 }
 0xe08   : > { %4967 = vmatprep.subr.bf16.mxu0 %v5532_v3  ;;  %5222 = vmatpush3.bf16.msra.mxu1 %v7614_v54 }
 0xeb4   : > { %v3612_v40 = vpop.f32.mrb[48].mxu0  ;;  %v3685_v57 = vpop.f32.mrb[60].mxu1 }
 0xeb5   : > { %v3613_v23 = vadd.f32 %v3612_v40, %v7625_v14  ;;  %v7637_v31 = vadd.f32 %v3685_v57, %v7622_v5  ;;  %v3614_v20 = vpop.f32.mrb[49].mxu0  ;;  %v3687_v26 = vpop.f32.mrb[61].mxu1 }
 0xeb6   : > { %v7640_v30 = vadd.f32 %v3614_v20, %v7629_v6  ;;  %v7643_v4 = vadd.f32 %v3687_v26, %v7633_v1  ;;  %v3616_v34 = vpop.f32.mrb[50].mxu0  ;;  %v3689_v15 = vpop.f32.mrb[62].mxu1 }
 0xeb7   : > { %8199 = vst [vmem:[#allocation50_spill] sm:$0xff] %v7637_v31  ;;  %v3756_v43 = vmul.f32 0.044715, %v3613_v23  ;;  %v3758_v32 = vmul.f32 0.044715, %v7637_v31  ;;  %v3617_v9 = vadd.f32 %v3616_v34, %v7625_v14  ;;  %v7650_v56 = vadd.f32 %v3689_v15, %v7622_v5  ;;  %v3618_v45 = vpop.f32.mrb[51].mxu0 }
 0xeb8   : > { %8200 = vst [vmem:[#allocation51_spill] sm:$0xff] %v7643_v4  ;;  %v3757_v50 = vmul.f32 0.044715, %v7640_v30  ;;  %v3759_v11 = vmul.f32 0.044715, %v7643_v4  ;;  %v3691_v62 = vpop.f32.mrb[63].mxu1  ;;  %v7654_v3 = vadd.f32 %v3618_v45, %v7629_v6 }
 0xeb9   : > { %8201 = vst [vmem:[#allocation52_spill] sm:$0xff] %v7650_v56  ;;  %v3788_v55 = vmul.f32 %v3756_v43, %v3613_v23  ;;  %v3790_v47 = vmul.f32 %v3758_v32, %v7637_v31  ;;  %v7657_v22 = vadd.f32 %v3691_v62, %v7633_v1  ;;  %v3760_v0 = vmul.f32 0.044715, %v3617_v9 }
 0xeba   : > { %v3762_v35 = vmul.f32 0.044715, %v7650_v56  ;;  %v3789_v46 = vmul.f32 %v3757_v50, %v7640_v30  ;;  %v3761_v59 = vmul.f32 0.044715, %v7654_v3  ;;  %v3791_v36 = vmul.f32 %v3759_v11, %v7643_v4 }
 0xebb   : > { %8202 = vst [vmem:[#allocation53_spill] sm:$0xff] %v7657_v22  ;;  %v3820_v49 = vmul.f32 %v3788_v55, %v3613_v23  ;;  %v3822_v51 = vmul.f32 %v3790_v47, %v7637_v31  ;;  %v3792_v42 = vmul.f32 %v3760_v0, %v3617_v9  ;;  %v3763_v34 = vmul.f32 0.044715, %v7657_v22 }
 0xebc   : > { %v3622_v29 = vpop.f32.mrb[52].mxu0  ;;  %v3695_v41 = vpop.f32.mrb[64].mxu1  ;;  %v3794_v40 = vmul.f32 %v3762_v35, %v7650_v56  ;;  %v7672_v47 = vmul.f32 0.5, %v3613_v23  ;;  %v7675_v11 = vmul.f32 %v3789_v46, %v7640_v30  ;;  %v7677_v0 = vmul.f32 0.5, %v3617_v9 }
 0xebd   : > { %v3852_v37 = vadd.f32 %v3820_v49, %v3613_v23  ;;  %v3854_v21 = vadd.f32 %v3822_v51, %v7637_v31  ;;  %v3624_v57 = vpop.f32.mrb[53].mxu0  ;;  %v3697_v20 = vpop.f32.mrb[65].mxu1  ;;  %v3824_v26 = vmul.f32 %v3792_v42, %v3617_v9  ;;  %v7668_v15 = vadd.f32 %v3622_v29, %v7625_v14 }
 0xebe   : > { %v3696_v43 = vadd.f32 %v3695_v41, %v7622_v5  ;;  %v3626_v32 = vpop.f32.mrb[54].mxu0  ;;  %v3699_v50 = vpop.f32.mrb[66].mxu1  ;;  %v3826_v45 = vmul.f32 %v3794_v40, %v7650_v56  ;;  %v3793_v49 = vmul.f32 %v3761_v59, %v7654_v3  ;;  %v7681_v51 = vmul.f32 %v3791_v36, %v7643_v4 }
 0xebf   : > { %v3628_v62 = vpop.f32.mrb[55].mxu0  ;;  %v3701_v55 = vpop.f32.mrb[67].mxu1  ;;  %v3856_v35 = vadd.f32 %v3824_v26, %v3617_v9  ;;  %v3764_v42 = vmul.f32 0.044715, %v7668_v15  ;;  %v3884_v41 = vmul.f32 0.7978846, %v3852_v37  ;;  %v3795_v17 = vmul.f32 %v3763_v34, %v7657_v22 }
 0xec0   : > { %8203 = vst [vmem:[#allocation54_spill] sm:$0xff] %v7681_v51  ;;  %v3766_v29 = vmul.f32 0.044715, %v3696_v43  ;;  %v3886_v40 = vmul.f32 0.7978846, %v3854_v21  ;;  %v7686_v23 = vadd.f32 %v3624_v57, %v7629_v6  ;;  %v3858_v46 = vadd.f32 %v3826_v45, %v7650_v56 }
 0xec1   : > { %v7690_v61 = vadd.f32 %v3697_v20, %v7633_v1  ;;  %v7693_v59 = vadd.f32 %v3626_v32, %v7625_v14  ;;  %v7696_v9 = vmul.f32 %v3793_v49, %v7654_v3  ;;  %v7698_v36 = vmul.f32 0.5, %v3696_v43 }
 0xec2   : > { %v3798_v8 = vmul.f32 %v3766_v29, %v3696_v43  ;;  %v3765_v37 = vmul.f32 0.044715, %v7686_v23  ;;  %v3700_v21 = vadd.f32 %v3699_v50, %v7622_v5  ;;  %v3888_v34 = vmul.f32 0.7978846, %v3856_v35 }
 0xec3   : > { %v3796_v45 = vmul.f32 %v3764_v42, %v7668_v15  ;;  %v3767_v20 = vmul.f32 0.044715, %v7690_v61  ;;  %5719 = vtanh.f32 %v3884_v41  ;;  %v3768_v49 = vmul.f32 0.044715, %v7693_v59 }
 0xec4   : > { %v3632_v57 = vpop.f32.mrb[56].mxu0  ;;  %v3705_v26 = vpop.f32.mrb[68].mxu1  ;;  %v3830_v29 = vmul.f32 %v3798_v8, %v3696_v43  ;;  %v3770_v39 = vmul.f32 0.044715, %v3700_v21  ;;  %v7706_v28 = vadd.f32 %v3628_v62, %v7629_v6  ;;  %v3890_v50 = vmul.f32 0.7978846, %v3858_v46 }
 0xec5   : > { %v3634_v44 = vpop.f32.mrb[57].mxu0  ;;  %v3707_v32 = vpop.f32.mrb[69].mxu1  ;;  %v7709_v53 = vmul.f32 %v3795_v17, %v7657_v22  ;;  %v7712_v8 = vadd.f32 %v3701_v55, %v7633_v1  ;;  %5721 = vtanh.f32 %v3886_v40  ;;  %v3797_v41 = vmul.f32 %v3765_v37, %v7686_v23 }
 0xec6   : > { %v3636_v13 = vpop.f32.mrb[58].mxu0  ;;  %v3709_v52 = vpop.f32.mrb[70].mxu1  ;;  %v3862_v35 = vadd.f32 %v3830_v29, %v3696_v43  ;;  %v3802_v38 = vmul.f32 %v3770_v39, %v3700_v21  ;;  %v3769_v54 = vmul.f32 0.044715, %v7706_v28  ;;  %5723 = vtanh.f32 %v3888_v34 }
 0xec7   : > { %8204 = vst [vmem:[#allocation55_spill] sm:$0xff] %v7709_v53  ;;  %v3638_v42 = vpop.f32.mrb[59].mxu0  ;;  %v3711_v7 = vpop.f32.mrb[71].mxu1  ;;  %v7717_v62 = vmul.f32 %v3796_v45, %v7668_v15  ;;  %v3771_v46 = vmul.f32 0.044715, %v7712_v8  ;;  %v7721_v17 = vadd.f32 %v3632_v57, %v7625_v14  ;;  %v3799_v43 = vmul.f32 %v3767_v20, %v7690_v61 }
 0xec8   : > { %v3800_v55 = vmul.f32 %v3768_v49, %v7693_v59  ;;  %v3834_v29 = vmul.f32 %v3802_v38, %v3700_v21  ;;  %v7726_v40 = vadd.f32 %v3705_v26, %v7622_v5  ;;  %5725 = vtanh.f32 %v3890_v50 }
 0xec9   : > { %v3894_v39 = vmul.f32 0.7978846, %v3862_v35  ;;  %v7729_v37 = vadd.f32 %v3634_v44, %v7629_v6  ;;  %v7732_v34 = vadd.f32 %v3707_v32, %v7633_v1  ;;  %v7735_v45 = vmul.f32 %v3797_v41, %v7686_v23 }
 0xeca   : > { %v7737_v57 = vmul.f32 0.5, %v3700_v21  ;;  %v3866_v20 = vadd.f32 %v3834_v29, %v3700_v21  ;;  %v3801_v49 = vmul.f32 %v3769_v54, %v7706_v28  ;;  %v3803_v26 = vmul.f32 %v3771_v46, %v7712_v8 }
 0xecb   : > { %v3772_v50 = vmul.f32 0.044715, %v7721_v17  ;;  %v3774_v44 = vmul.f32 0.044715, %v7726_v40  ;;  %v7744_v35 = vadd.f32 %v3636_v13, %v7625_v14  ;;  %v7747_v41 = vmul.f32 %v3799_v43, %v7690_v61 }
 0xecc   : > { %v3642_v38 = vpop.f32.mrb[60].mxu0  ;;  %v3715_v2 = vpop.f32.mrb[72].mxu1  ;;  %v7750_v21 = vmul.f32 %v3800_v55, %v7693_v59  ;;  %v3773_v54 = vmul.f32 0.044715, %v7729_v37  ;;  %v7754_v29 = vadd.f32 %v3709_v52, %v7622_v5  ;;  %5727 = vtanh.f32 %v3894_v39 }
 0xecd   : > { %v3644_v32 = vpop.f32.mrb[61].mxu0  ;;  %v3717_v10 = vpop.f32.mrb[73].mxu1  ;;  %v3898_v16 = vmul.f32 0.7978846, %v3866_v20  ;;  %v3775_v13 = vmul.f32 0.044715, %v7732_v34  ;;  %v7758_v58 = vadd.f32 %v3638_v42, %v7629_v6  ;;  %v7761_v55 = vmul.f32 %v3801_v49, %v7706_v28 }
 0xece   : > { %v3646_v46 = vpop.f32.mrb[62].mxu0  ;;  %v3719_v27 = vpop.f32.mrb[74].mxu1  ;;  %v3776_v31 = vmul.f32 0.044715, %v7744_v35  ;;  %v3778_v52 = vmul.f32 0.044715, %v7754_v29  ;;  %v7766_v53 = vadd.f32 %v3711_v7, %v7633_v1  ;;  %v7769_v39 = vmul.f32 %v3803_v26, %v7712_v8 }
 0xecf   : > { %v3648_v48 = vpop.f32.mrb[63].mxu0  ;;  %v3721_v43 = vpop.f32.mrb[75].mxu1  ;;  %v3804_v20 = vmul.f32 %v3772_v50, %v7721_v17  ;;  %v3806_v42 = vmul.f32 %v3774_v44, %v7726_v40  ;;  %v3777_v22 = vmul.f32 0.044715, %v7758_v58  ;;  %v3805_v49 = vmul.f32 %v3773_v54, %v7729_v37 }
 0xed0   : > { %v5720_v56 = vpop.eup %5719  ;;  %v3779_v4 = vmul.f32 0.044715, %v7766_v53  ;;  %v7779_v25 = vadd.f32 %v3642_v38, %v7625_v14  ;;  %v7782_v7 = vadd.f32 %v3715_v2, %v7622_v5  ;;  %5729 = vtanh.f32 %v3898_v16 }
 0xed1   : > { %v7774_v51 = vpop.eup %5721  ;;  %v3807_v50 = vmul.f32 %v3775_v13, %v7732_v34  ;;  %v7786_v44 = vadd.f32 %v3644_v32, %v7629_v6  ;;  %v7789_v18 = vadd.f32 %v3717_v10, %v7633_v1  ;;  %v3808_v54 = vmul.f32 %v3776_v31, %v7744_v35 }
 0xed2   : > { %8205 = vst [vmem:[#allocation56_spill] sm:$0xff] %v7774_v51  ;;  %8206 = vst [vmem:[#allocation57_spill] sm:$0xff] %v7782_v7  ;;  %v5724_v26 = vpop.eup %5723  ;;  %v3810_v51 = vmul.f32 %v3778_v52, %v7754_v29  ;;  %v3780_v38 = vmul.f32 0.044715, %v7779_v25  ;;  %v3782_v24 = vmul.f32 0.044715, %v7782_v7  ;;  %v3809_v16 = vmul.f32 %v3777_v22, %v7758_v58 }
 0xed3   : > { %v7795_v2 = vpop.eup %5725  ;;  %v3781_v13 = vmul.f32 0.044715, %v7786_v44  ;;  %v3783_v32 = vmul.f32 0.044715, %v7789_v18  ;;  %v7801_v12 = vadd.f32 %v3646_v46, %v7625_v14  ;;  %v3811_v10 = vmul.f32 %v3779_v4, %v7766_v53 }
 0xed4   : > { %8207 = vst [vmem:[#allocation58_spill] sm:$0xff] %v7795_v2  ;;  %v3812_v31 = vmul.f32 %v3780_v38, %v7779_v25  ;;  %v3814_v52 = vmul.f32 %v3782_v24, %v7782_v7  ;;  %v7807_v33 = vadd.f32 %v3719_v27, %v7622_v5  ;;  %v7810_v2 = vmul.f32 %v3804_v20, %v7721_v17 }
 0xed5   : > { %v3813_v22 = vmul.f32 %v3781_v13, %v7786_v44  ;;  %v3784_v19 = vmul.f32 0.044715, %v7801_v12  ;;  %v7815_v60 = vadd.f32 %v3648_v48, %v7629_v6  ;;  %v7818_v14 = vmul.f32 %v3806_v42, %v7726_v40 }
 0xed6   : > { %v3837_v4 = vmul.f32 %v3805_v49, %v7729_v37  ;;  %v3815_v24 = vmul.f32 %v3783_v32, %v7789_v18  ;;  %v7823_v27 = vadd.f32 %v3721_v43, %v7633_v1  ;;  %v5728_v5 = vpop.eup %5727  ;;  %v3839_v46 = vmul.f32 %v3807_v50, %v7732_v34 }
 0xed7   : > { %v7827_v20 = vmul.f32 %v3808_v54, %v7744_v35  ;;  %v7830_v38 = vmul.f32 %v3810_v51, %v7754_v29  ;;  %v3786_v48 = vmul.f32 0.044715, %v7807_v33  ;;  %v3841_v6 = vmul.f32 %v3809_v16, %v7758_v58 }
 0xed8   : > { %v3843_v42 = vmul.f32 %v3811_v10, %v7766_v53  ;;  %v7836_v49 = vmul.f32 %v3812_v31, %v7779_v25  ;;  %v7839_v1 = vmul.f32 %v3814_v52, %v7782_v7  ;;  %v7842_v43 = vmul.f32 %v3813_v22, %v7786_v44 }
 0xed9   : > { %v3816_v50 = vmul.f32 %v3784_v19, %v7801_v12  ;;  %v3853_v51 = vadd.f32 %v7675_v11, %v7640_v30  ;;  %v3857_v54 = vadd.f32 %v7696_v9, %v7654_v3  ;;  %v7850_v16 = vmul.f32 %v3815_v24, %v7789_v18 }
 0xeda   : > { %8208 = vst [vmem:[#allocation59_spill] sm:$0xff] %v7839_v1  ;;  %v3785_v13 = vmul.f32 0.044715, %v7815_v60  ;;  %v3948_v32 = vadd.f32 1.0, %v5720_v56  ;;  %v3952_v10 = vadd.f32 1.0, %v5724_v26  ;;  %v5730_v31 = vpop.eup %5729  ;;  %v3818_v52 = vmul.f32 %v3786_v48, %v7807_v33 }
 0xedb   : > { %v3787_v22 = vmul.f32 0.044715, %v7823_v27  ;;  %v3885_v1 = vmul.f32 0.7978846, %v3853_v51  ;;  %v3889_v19 = vmul.f32 0.7978846, %v3857_v54  ;;  %v7864_v56 = vmul.f32 %v3816_v50, %v7801_v12 }
 0xedc   : > { %v3725_v7 = vmul.f32 0.5, %v7640_v30  ;;  %v3729_v11 = vmul.f32 0.5, %v7654_v3  ;;  %v7858_v9 = vmul.f32 %v3948_v32, %v7672_v47  ;;  %v7861_v24 = vmul.f32 %v3952_v10, %v7677_v0 }
 0xedd   : > { %5731 = vtanh.f32 %v3885_v1  ;;  %v3861_v26 = vadd.f32 %v7735_v45, %v7686_v23  ;;  %v3865_v48 = vadd.f32 %v7761_v55, %v7706_v28  ;;  %v3817_v30 = vmul.f32 %v3785_v13, %v7815_v60 }
 0xede   : > { %5733 = vtanh.f32 %v3889_v19  ;;  %v4012_v3 = vpack.c.bf16 %v7861_v24, %v7858_v9  ;;  %v3863_v47 = vadd.f32 %v7747_v41, %v7690_v61  ;;  %v7876_v0 = vmul.f32 %v3818_v52, %v7807_v33 }
 0xedf   : > { %v3893_v50 = vmul.f32 0.7978846, %v3861_v26  ;;  %v3897_v1 = vmul.f32 0.7978846, %v3865_v48  ;;  %v3867_v45 = vadd.f32 %v7769_v39, %v7712_v8  ;;  %v3819_v51 = vmul.f32 %v3787_v22, %v7823_v27 }
 0xee0   : > { %v3895_v55 = vmul.f32 0.7978846, %v3863_v47  ;;  %v3860_v54 = vadd.f32 %v7717_v62, %v7668_v15  ;;  %v3864_v13 = vadd.f32 %v7750_v21, %v7693_v59  ;;  %v3958_v41 = vadd.f32 1.0, %v5728_v5 }
 0xee1   : > { %5735 = vtanh.f32 %v3893_v50  ;;  %v3899_v32 = vmul.f32 0.7978846, %v3867_v45  ;;  %v3962_v10 = vadd.f32 1.0, %v5730_v31  ;;  %v7886_v52 = vmul.f32 %v3817_v30, %v7815_v60 }
 0xee2   : > { %5737 = vtanh.f32 %v3897_v1  ;;  %v3892_v19 = vmul.f32 0.7978846, %v3860_v54  ;;  %v3896_v26 = vmul.f32 0.7978846, %v3864_v13  ;;  %v3733_v39 = vmul.f32 0.5, %v7686_v23 }
 0xee3   : > { %5739 = vtanh.f32 %v3895_v55  ;;  %v7890_v22 = vmul.f32 %v3958_v41, %v7698_v36  ;;  %v7893_v62 = vmul.f32 %v3962_v10, %v7737_v57  ;;  %v7896_v21 = vmul.f32 %v3819_v51, %v7823_v27 }
 0xee4   : > { %5741 = vtanh.f32 %v3899_v32  ;;  %v3869_v5 = vadd.f32 %v3837_v4, %v7729_v37  ;;  %v3873_v31 = vadd.f32 %v3841_v6, %v7758_v58  ;;  %v3737_v48 = vmul.f32 0.5, %v7706_v28 }
 0xee5   : > { %5743 = vtanh.f32 %v3892_v19  ;;  %v4018_v23 = vpack.c.bf16 %v7893_v62, %v7890_v22  ;;  %v3871_v36 = vadd.f32 %v3839_v46, %v7732_v34  ;;  %v3875_v47 = vadd.f32 %v3843_v42, %v7766_v53  ;;  %v8212_v62 = vld [vmem:[#allocation39_spill] sm:$0xff] }
 0xee6   : > { %5745 = vtanh.f32 %v3896_v26  ;;  %v3901_v30 = vmul.f32 0.7978846, %v3869_v5  ;;  %v3905_v57 = vmul.f32 0.7978846, %v3873_v31  ;;  %v3735_v1 = vmul.f32 0.5, %v7690_v61 }
 0xee7   : > { %v5732_v50 = vpop.eup %5731  ;;  %v3739_v4 = vmul.f32 0.5, %v7712_v8  ;;  %v3903_v45 = vmul.f32 0.7978846, %v3871_v36  ;;  %v3868_v28 = vadd.f32 %v7810_v2, %v7721_v17  ;;  %v3907_v55 = vmul.f32 0.7978846, %v3875_v47 }
 0xee8   : > { %v5734_v6 = vpop.eup %5733  ;;  %v3949_v51 = vadd.f32 1.0, %v5732_v50  ;;  %5747 = vtanh.f32 %v3901_v30  ;;  %v3872_v46 = vadd.f32 %v7827_v20, %v7744_v35  ;;  %v3732_v13 = vmul.f32 0.5, %v7668_v15 }
 0xee9   : > { %v3953_v54 = vadd.f32 1.0, %v5734_v6  ;;  %5749 = vtanh.f32 %v3905_v57  ;;  %v3900_v42 = vmul.f32 0.7978846, %v3868_v28  ;;  %v3736_v61 = vmul.f32 0.5, %v7693_v59 }
 0xeea   : > { %v3981_v32 = vmul.f32 %v3949_v51, %v3725_v7  ;;  %5751 = vtanh.f32 %v3903_v45  ;;  %v3904_v8 = vmul.f32 0.7978846, %v3872_v46  ;;  %v3870_v2 = vadd.f32 %v7818_v14, %v7726_v40 }
 0xeeb   : > { %v5736_v41 = vpop.eup %5735  ;;  %v3985_v10 = vmul.f32 %v3953_v54, %v3729_v11  ;;  %5753 = vtanh.f32 %v3907_v55  ;;  %v3874_v19 = vadd.f32 %v7830_v38, %v7754_v29  ;;  %v3741_v15 = vmul.f32 0.5, %v7729_v37  ;;  %v8209_v54 = vld [vmem:[#allocation36_spill] sm:$0xff] }
 0xeec   : > { %v5738_v20 = vpop.eup %5737  ;;  %v3957_v26 = vadd.f32 1.0, %v5736_v41  ;;  %v3745_v5 = vmul.f32 0.5, %v7758_v58  ;;  %5755 = vtanh.f32 %v3900_v42  ;;  %v3902_v36 = vmul.f32 0.7978846, %v3870_v2 }
 0xeed   : > { %v5740_v7 = vpop.eup %5739  ;;  %v4013_v59 = vpack.c.bf16 %v3985_v10, %v3981_v32  ;;  %v3961_v31 = vadd.f32 1.0, %v5738_v20  ;;  %5757 = vtanh.f32 %v3904_v8  ;;  %v3906_v47 = vmul.f32 0.7978846, %v3874_v19  ;;  %v8210_v10 = vld [vmem:[#allocation37_spill] sm:$0xff] }
 0xeee   : > { %v5742_v11 = vpop.eup %5741  ;;  %v3989_v30 = vmul.f32 %v3957_v26, %v3733_v39  ;;  %v3959_v57 = vadd.f32 1.0, %v5740_v7  ;;  %v3877_v14 = vadd.f32 %v7842_v43, %v7786_v44  ;;  %5759 = vtanh.f32 %v3902_v36  ;;  %v8211_v26 = vld [vmem:[#allocation38_spill] sm:$0xff] }
 0xeef   : > { %v5744_v38 = vpop.eup %5743  ;;  %4323 = vmatprep.mubr.bf16.mxu0 %v4013_v59  ;;  %v3993_v50 = vmul.f32 %v3961_v31, %v3737_v48  ;;  %v3963_v45 = vadd.f32 1.0, %v5742_v11  ;;  %v3881_v58 = vadd.f32 %v7886_v52, %v7815_v60  ;;  %5761 = vtanh.f32 %v3906_v47 }
 0xef0   : > { %v5746_v37 = vpop.eup %5745  ;;  %4324 = vmatmul.mubr.bf16.vlgmr.msra.gmra.mrb[64].mxu0 %v4012_v3  ;;  %v3991_v28 = vmul.f32 %v3959_v57, %v3735_v1  ;;  %v3956_v39 = vadd.f32 1.0, %v5744_v38  ;;  %v3909_v6 = vmul.f32 0.7978846, %v3877_v14  ;;  %v3743_v52 = vmul.f32 0.5, %v7732_v34  ;;  %v8213_v38 = vld [vmem:[#allocation40_spill] sm:$0xff] }
 0xef1   : > { %4968 = vmatpush3.bf16.msra.mxu0 %v7572_v63  ;;  %v4017_v43 = vpack.c.bf16 %v3993_v50, %v3989_v30  ;;  %v3995_v51 = vmul.f32 %v3963_v45, %v3739_v4  ;;  %v3960_v55 = vadd.f32 1.0, %v5746_v37  ;;  %v3913_v48 = vmul.f32 0.7978846, %v3881_v58 }
 0xef2   : > { %v5748_v46 = vpop.eup %5747  ;;  %4969 = vmatprep.subr.bf16.mxu0 %v8209_v54  ;;  %v3988_v42 = vmul.f32 %v3956_v39, %v3732_v13  ;;  %v3747_v32 = vmul.f32 0.5, %v7766_v53  ;;  %5763 = vtanh.f32 %v3909_v6  ;;  %v3740_v4 = vmul.f32 0.5, %v7721_v17  ;;  %v8215_v39 = vld [vmem:[#allocation59_spill] sm:$0xff] }
 0xef3   : > { %v5750_v9 = vpop.eup %5749  ;;  %4331 = vmatprep.mubr.bf16.mxu0 %v4017_v43  ;;  %v4019_v24 = vpack.c.bf16 %v3995_v51, %v3991_v28  ;;  %v3992_v3 = vmul.f32 %v3960_v55, %v3736_v61  ;;  %v3965_v1 = vadd.f32 1.0, %v5748_v46  ;;  %5765 = vtanh.f32 %v3913_v48  ;;  %v8214_v28 = vld [vmem:[#allocation57_spill] sm:$0xff] }
 0xef4   : > { %v5752_v63 = vpop.eup %5751  ;;  %v3969_v8 = vadd.f32 1.0, %v5750_v9  ;;  %v3879_v41 = vadd.f32 %v7850_v16, %v7789_v18  ;;  %v3883_v13 = vadd.f32 %v7896_v21, %v7823_v27  ;;  %v3744_v61 = vmul.f32 0.5, %v7744_v35  ;;  %v8216_v46 = vld [vmem:[#allocation41_spill] sm:$0xff] }
 0xef5   : > { %v5754_v34 = vpop.eup %5753  ;;  %4970 = vmatpush3.bf16.msra.mxu0 %v8210_v10  ;;  %4396 = vmatprep.mubr.bf16.mxu1 %v4019_v24  ;;  %v4016_v53 = vpack.c.bf16 %v3992_v3, %v3988_v42  ;;  %v3997_v2 = vmul.f32 %v3965_v1, %v3741_v15  ;;  %v3967_v19 = vadd.f32 1.0, %v5752_v63  ;;  %v3876_v15 = vadd.f32 %v7836_v49, %v7779_v25  ;;  %v8218_v1 = vld [vmem:[#allocation51_spill] sm:$0xff]  ;;  %v8219_v63 = vld [vmem:[#allocation54_spill] sm:$0xff] }
 0xef6   : > { %v5756_v20 = vpop.eup %5755  ;;  %4971 = vmatprep.subr.bf16.mxu0 %v8211_v26  ;;  %4397 = vmatmul.mubr.bf16.vlgmr.msra.gmra.mrb[76].mxu1 %v4018_v23  ;;  %v4001_v17 = vmul.f32 %v3969_v8, %v3745_v5  ;;  %v3971_v16 = vadd.f32 1.0, %v5754_v34  ;;  %v3911_v7 = vmul.f32 0.7978846, %v3879_v41  ;;  %v3915_v21 = vmul.f32 0.7978846, %v3883_v13  ;;  %v8221_v41 = vld [vmem:[#allocation55_spill] sm:$0xff] }
 0xef7   : > { %v5758_v59 = vpop.eup %5757  ;;  %v3999_v31 = vmul.f32 %v3967_v19, %v3743_v52  ;;  %v3964_v36 = vadd.f32 1.0, %v5756_v20  ;;  %v3880_v35 = vadd.f32 %v7864_v56, %v7801_v12  ;;  %v3742_v23 = vmul.f32 0.5, %v7726_v40  ;;  %v8223_v19 = vld [vmem:[#allocation50_spill] sm:$0xff]  ;;  %v8225_v26 = vld [vmem:[#allocation43_spill] sm:$0xff] }
 0xef8   : > { %4332 = vmatmul.mubr.bf16.gmra.mrb[68].mxu0 %v4016_v53  ;;  %v4021_v11 = vpack.c.bf16 %v4001_v17, %v3997_v2  ;;  %v4003_v30 = vmul.f32 %v3971_v16, %v3747_v32  ;;  %v3968_v57 = vadd.f32 1.0, %v5758_v59  ;;  %5767 = vtanh.f32 %v3911_v7  ;;  %v5760_v22 = vpop.eup %5759  ;;  %v8217_v32 = vld [vmem:[#allocation42_spill] sm:$0xff]  ;;  %v8222_v53 = vld [vmem:[#allocation56_spill] sm:$0xff] }
 0xef9   : > { %4972 = vmatpush3.bf16.msra.mxu0 %v8212_v62  ;;  %5769 = vtanh.f32 %v3915_v21  ;;  %v3908_v5 = vmul.f32 0.7978846, %v3876_v15  ;;  %v3912_v47 = vmul.f32 0.7978846, %v3880_v35  ;;  %v5762_v14 = vpop.eup %5761  ;;  %v3996_v50 = vmul.f32 %v3964_v36, %v3740_v4  ;;  %v8226_v16 = vld [vmem:[#allocation58_spill] sm:$0xff]  ;;  %v8227_v59 = vld [vmem:[#allocation44_spill] sm:$0xff] }
 0xefa   : > { %4973 = vmatprep.subr.bf16.mxu0 %v8213_v38  ;;  %4339 = vmatprep.mubr.bf16.mxu0 %v4021_v11  ;;  %v4023_v49 = vpack.c.bf16 %v4003_v30, %v3999_v31  ;;  %v4000_v56 = vmul.f32 %v3968_v57, %v3744_v61  ;;  %v3966_v45 = vadd.f32 1.0, %v5760_v22  ;;  %v3746_v58 = vmul.f32 0.5, %v7754_v29 }
 0xefb   : > { %v3970_v37 = vadd.f32 1.0, %v5762_v14  ;;  %5771 = vtanh.f32 %v3908_v5  ;;  %v3878_v6 = vadd.f32 %v8215_v39, %v8214_v28  ;;  %v3749_v51 = vmul.f32 0.5, %v7786_v44 }
 0xefc   : > { %v5764_v43 = vpop.eup %5763  ;;  %4404 = vmatprep.mubr.bf16.mxu1 %v4023_v49  ;;  %v4020_v40 = vpack.c.bf16 %v4000_v56, %v3996_v50  ;;  %5773 = vtanh.f32 %v3912_v47  ;;  %v3882_v55 = vadd.f32 %v7876_v0, %v7807_v33  ;;  %v3998_v54 = vmul.f32 %v3966_v45, %v3742_v23  ;;  %v8220_v0 = vld [vmem:[#allocation53_spill] sm:$0xff]  ;;  %v8229_v50 = vld [vmem:[#allocation46_spill] sm:$0xff] }
 0xefd   : > { %v5766_v48 = vpop.eup %5765  ;;  %4974 = vmatpush3.bf16.msra.mxu0 %v8216_v46  ;;  %v4002_v42 = vmul.f32 %v3970_v37, %v3746_v58  ;;  %v3973_v29 = vadd.f32 1.0, %v5764_v43  ;;  %v3910_v52 = vmul.f32 0.7978846, %v3878_v6  ;;  %v3753_v9 = vmul.f32 0.5, %v7815_v60  ;;  %v8224_v60 = vld [vmem:[#allocation52_spill] sm:$0xff]  ;;  %v8228_v23 = vld [vmem:[#allocation45_spill] sm:$0xff] }
 0xefe   : > { %4975 = vmatprep.subr.bf16.mxu0 %v8217_v32  ;;  %v3977_v24 = vadd.f32 1.0, %v5766_v48  ;;  %v3914_v3 = vmul.f32 0.7978846, %v3882_v55  ;;  %v3855_v44 = vadd.f32 %v8219_v63, %v8218_v1  ;;  %v3859_v13 = vadd.f32 %v8221_v41, %v8220_v0  ;;  %v8230_v6 = vld [vmem:[#allocation47_spill] sm:$0xff]  ;;  %v8233_v41 = vld [vmem:[#allocation25_spill] sm:$0xff] }
 0xeff   : > { %v4022_v8 = vpack.c.bf16 %v4002_v42, %v3998_v54  ;;  %v4005_v4 = vmul.f32 %v3973_v29, %v3749_v51  ;;  %5775 = vtanh.f32 %v3910_v52  ;;  %v3950_v2 = vadd.f32 1.0, %v8222_v53  ;;  %v8231_v51 = vld [vmem:[#allocation48_spill] sm:$0xff] }
 0xf00   : > { %4340 = vmatmul.mubr.bf16.gmra.mrb[72].mxu0 %v4020_v40  ;;  %v4009_v34 = vmul.f32 %v3977_v24, %v3753_v9  ;;  %5777 = vtanh.f32 %v3914_v3  ;;  %v3887_v10 = vmul.f32 0.7978846, %v3855_v44  ;;  %v3726_v61 = vmul.f32 0.5, %v8223_v19  ;;  %v8232_v3 = vld [vmem:[#allocation49_spill] sm:$0xff] }
 0xf01   : > { %v3730_v20 = vmul.f32 0.5, %v8224_v60  ;;  %4405 = vmatmul.mubr.bf16.gmra.mrb[80].mxu1 %v4022_v8  ;;  %4976 = vmatpush3.bf16.msra.mxu0 %v8225_v26  ;;  %v3891_v17 = vmul.f32 0.7978846, %v3859_v13  ;;  %v3954_v7 = vadd.f32 1.0, %v8226_v16  ;;  %v3751_v30 = vmul.f32 0.5, %v7789_v18 }
 0xf02   : > { %v5768_v21 = vpop.eup %5767  ;;  %4977 = vmatprep.subr.bf16.mxu0 %v8227_v59  ;;  %v4025_v31 = vpack.c.bf16 %v4009_v34, %v4005_v4  ;;  %5779 = vtanh.f32 %v3887_v10  ;;  %v3982_v35 = vmul.f32 %v3950_v2, %v3726_v61  ;;  %v3755_v57 = vmul.f32 0.5, %v7823_v27 }
 0xf03   : > { %v5770_v36 = vpop.eup %5769  ;;  %v3975_v15 = vadd.f32 1.0, %v5768_v21  ;;  %5781 = vtanh.f32 %v3891_v17  ;;  %v3986_v11 = vmul.f32 %v3954_v7, %v3730_v20  ;;  %v3748_v56 = vmul.f32 0.5, %v7779_v25  ;;  %v8234_v7 = vld [vmem:[#allocation27_spill] sm:$0xff] }
 0xf04   : > { %4347 = vmatprep.mubr.bf16.mxu0 %v4025_v31  ;;  %v3979_v22 = vadd.f32 1.0, %v5770_v36  ;;  %v3752_v45 = vmul.f32 0.5, %v7801_v12  ;;  %v3750_v48 = vmul.f32 0.5, %v8214_v28  ;;  %v3754_v46 = vmul.f32 0.5, %v7807_v33 }
 0xf05   : > { %v5772_v62 = vpop.eup %5771  ;;  %4978 = vmatpush3.bf16.msra.mxu0 %v8228_v23  ;;  %v4014_v5 = vpack.c.bf16 %v3986_v11, %v3982_v35  ;;  %v4007_v14 = vmul.f32 %v3975_v15, %v3751_v30  ;;  %v3727_v32 = vmul.f32 0.5, %v8218_v1  ;;  %v3731_v9 = vmul.f32 0.5, %v8220_v0  ;;  %v5792_v0 = vld [vmem:[%s8170_s3] sm:$0x3f] }
 0xf06   : > { %v5774_v47 = vpop.eup %5773  ;;  %v4011_v38 = vmul.f32 %v3979_v22, %v3755_v57  ;;  %v3972_v49 = vadd.f32 1.0, %v5772_v62  ;;  %4979 = vmatprep.subr.bf16.mxu0 %v8229_v50  ;;  %v816_v13 = vsub.s32 5, %v8233_v41  ;;  %v4787_v15 = vld [vmem:[%s8235_s11] ss:$0 sm:$0xff]  ;;  %v8236_v57 = vld [vmem:[#allocation26_spill] sm:$0xff] }
 0xf07   : > { %v3976_v58 = vadd.f32 1.0, %v5774_v47  ;;  %v8237_v50 = vld [vmem:[#allocation30_spill] sm:$0xff] }
 0xf08   : > { %v4027_v37 = vpack.c.bf16 %v4011_v38, %v4007_v14  ;;  %v4004_v39 = vmul.f32 %v3972_v49, %v3748_v56  ;;  %v817_v2 = vrot.slane %v5792_v0, %v816_v13 }
 0xf09   : > { %v5776_v18 = vpop.eup %5775  ;;  %v4008_v27 = vmul.f32 %v3976_v58, %v3752_v45  ;;  %4980 = vmatpush3.bf16.msra.mxu0 %v8230_v6 }
 0xf0a   : > { %v5778_v43 = vpop.eup %5777  ;;  %4412 = vmatprep.mubr.bf16.mxu1 %v4027_v37  ;;  %v3974_v40 = vadd.f32 1.0, %v5776_v18  ;;  %4981 = vmatprep.subr.bf16.mxu0 %v8231_v51  ;;  %v947_v21 = vadd.f32 %v8234_v7, %v817_v2 }
 0xf0b   : > { %v4024_v55 = vpack.c.bf16 %v4008_v27, %v4004_v39  ;;  %v3978_v25 = vadd.f32 1.0, %v5778_v43  ;;  %v8238_v43 = vld [vmem:[#allocation31_spill] sm:$0xff] }
 0xf0c   : > { %v5780_v54 = vpop.eup %5779  ;;  %v4006_v42 = vmul.f32 %v3974_v40, %v3750_v48  ;;  %v7993_v22 = vrot.slane %v947_v21, %v8236_v57 }
 0xf0d   : > { %v5782_v12 = vpop.eup %5781  ;;  %4348 = vmatmul.mubr.bf16.gmra.mrb[76].mxu0 %v4024_v55  ;;  %v4010_v29 = vmul.f32 %v3978_v25, %v3754_v46  ;;  %v3951_v52 = vadd.f32 1.0, %v5780_v54 }
 0xf0e   : > { %v3955_v24 = vadd.f32 1.0, %v5782_v12  ;;  %4982 = vmatpush3.bf16.msra.mxu0 %v8232_v3 }
 0xf0f   : > { %v4026_v63 = vpack.c.bf16 %v4010_v29, %v4006_v42  ;;  %v3983_v44 = vmul.f32 %v3951_v52, %v3727_v32  ;;  %v8239_v29 = vld [vmem:[#allocation33_spill] sm:$0xff] }
 0xf10   : > { %v3987_v8 = vmul.f32 %v3955_v24, %v3731_v9  ;;  %v8240_v9 = vld [vmem:[#allocation32_spill] sm:$0xff] }
 0xf11   : > { %4413 = vmatmul.mubr.bf16.gmra.mrb[84].mxu1 %v4026_v63 }
 0xf12   : > { %v4015_v28 = vpack.c.bf16 %v3987_v8, %v3983_v44 }
 0xf14   : > { %4388 = vmatprep.mubr.bf16.mxu0 %v4015_v28 }
 0xf15   : > { %4389 = vmatmul.mubr.bf16.vlgmr.msra.gmra.mrb[80].mxu0 %v4014_v5 }
 0xfc3   : > { %v4943_v33 = vpop.f32.mrb[64].mxu0 }
 0xfc4   : > { %v4944_v4 = vpop.f32.mrb[65].mxu0 }
 0xfc5   : > { %v7981_v34 = vadd.f32 %v4944_v4, %v4943_v33  ;;  %v4946_v10 = vpop.f32.mrb[66].mxu0 }
 0xfc6   : > { %v4947_v1 = vpop.f32.mrb[67].mxu0 }
 0xfc7   : > { %v7983_v53 = vadd.f32 %v4947_v1, %v4946_v10 }
 0xfc9   : > { %v4989_v19 = vpop.f32.mrb[76].mxu1 }
 0xfca   : > { %v4990_v61 = vpop.f32.mrb[77].mxu1 }
 0xfcb   : > { %v4949_v60 = vpop.f32.mrb[68].mxu0  ;;  %v4991_v20 = vadd.f32 %v4990_v61, %v4989_v19  ;;  %v4992_v26 = vpop.f32.mrb[78].mxu1 }
 0xfcc   : > { %v4950_v17 = vpop.f32.mrb[69].mxu0  ;;  %v4993_v16 = vpop.f32.mrb[79].mxu1 }
 0xfcd   : > { %v4951_v59 = vadd.f32 %v4950_v17, %v4949_v60  ;;  %v4952_v31 = vpop.f32.mrb[70].mxu0  ;;  %v4994_v36 = vadd.f32 %v4993_v16, %v4992_v26  ;;  %v4326_v26 = vadd.f32 %v7981_v34, %v4787_v15  ;;  %v8242_v34 = vld [vmem:[#allocation34_spill] sm:$0xff] }
 0xfce   : > { %v4953_v35 = vpop.f32.mrb[71].mxu0 }
 0xfcf   : > { %v4334_v11 = vadd.f32 %v4951_v59, %v4787_v15  ;;  %v4954_v30 = vadd.f32 %v4953_v35, %v4952_v31  ;;  %v4329_v59 = vadd.f32 %v7983_v53, %v4787_v15  ;;  %v8243_v53 = vld [vmem:[#allocation28_spill] sm:$0xff] }
 0xfd1   : > { %v4399_v62 = vadd.f32 %v4991_v20, %v4334_v11  ;;  %v4337_v23 = vadd.f32 %v4954_v30, %v4787_v15 }
 0xfd3   : > { %v4427_v5 = vmul.f32 %v7993_v22, %v4399_v62  ;;  %v4402_v47 = vadd.f32 %v4994_v36, %v4337_v23  ;;  %v4955_v14 = vpop.f32.mrb[72].mxu0  ;;  %v8241_v36 = vld [vmem:[#allocation35_spill] sm:$0xff] }
 0xfd4   : > { %v4995_v38 = vpop.f32.mrb[80].mxu1  ;;  %v4956_v49 = vpop.f32.mrb[73].mxu0 }
 0xfd5   : > { %v4435_v56 = vadd.f32 %v4427_v5, %v8237_v50  ;;  %v4428_v45 = vmul.f32 %v7993_v22, %v4402_v47  ;;  %v4957_v58 = vadd.f32 %v4956_v49, %v4955_v14  ;;  %v4996_v37 = vpop.f32.mrb[81].mxu1  ;;  %v4958_v18 = vpop.f32.mrb[74].mxu0  ;;  %v8245_v14 = vld [vmem:[#allocation29_spill] sm:$0xff] }
 0xfd6   : > { %v4997_v39 = vadd.f32 %v4996_v37, %v4995_v38  ;;  %v4998_v27 = vpop.f32.mrb[82].mxu1  ;;  %v4959_v6 = vpop.f32.mrb[75].mxu0 }
 0xfd7   : > { %4443 = vst [vmem:[%s8000_s13 + $0x10] sm:$0xff] %v4435_v56  ;;  %v4436_v40 = vadd.f32 %v4428_v45, %v8238_v43  ;;  %v4342_v51 = vadd.f32 %v4957_v58, %v4787_v15  ;;  %v4960_v55 = vadd.f32 %v4959_v6, %v4958_v18  ;;  %v4999_v48 = vpop.f32.mrb[83].mxu1 }
 0xfd8   : > { %v5000_v46 = vadd.f32 %v4999_v48, %v4998_v27 }
 0xfd9   : > { %4444 = vst [vmem:[%s8000_s13 + $0x18] sm:$0xff] %v4436_v40  ;;  %v4407_v25 = vadd.f32 %v4997_v39, %v4342_v51  ;;  %v4345_v54 = vadd.f32 %v4960_v55, %v4787_v15 }
 0xfdb   : > { %v4429_v12 = vmul.f32 %v7993_v22, %v4407_v25  ;;  %v4410_v42 = vadd.f32 %v5000_v46, %v4345_v54 }
 0xfdd   : > { %v4437_v52 = vadd.f32 %v4429_v12, %v8239_v29  ;;  %v4430_v32 = vmul.f32 %v7993_v22, %v4410_v42 }
 0xfdf   : > { %4445 = vst [vmem:[%s8000_s13 + $0x20] sm:$0xff] %v4437_v52  ;;  %v4438_v24 = vadd.f32 %v4430_v32, %v8240_v9 }
 0xfe0   : > { %v4961_v3 = vpop.f32.mrb[76].mxu0 }
 0xfe1   : > { %4446 = vst [vmem:[%s8000_s13 + $0x28] sm:$0xff] %v4438_v24  ;;  %v4962_v63 = vpop.f32.mrb[77].mxu0 }
 0xfe2   : > { %v4963_v44 = vadd.f32 %v4962_v63, %v4961_v3  ;;  %v4964_v8 = vpop.f32.mrb[78].mxu0 }
 0xfe3   : > { %v4965_v28 = vpop.f32.mrb[79].mxu0 }
 0xfe4   : > { %v5001_v33 = vpop.f32.mrb[84].mxu1  ;;  %v4350_v4 = vadd.f32 %v4963_v44, %v4787_v15  ;;  %v4966_v41 = vadd.f32 %v4965_v28, %v4964_v8 }
 0xfe5   : > { %v5002_v13 = vpop.f32.mrb[85].mxu1 }
 0xfe6   : > { %v5003_v10 = vadd.f32 %v5002_v13, %v5001_v33  ;;  %v5004_v1 = vpop.f32.mrb[86].mxu1  ;;  %v4353_v0 = vadd.f32 %v4966_v41, %v4787_v15 }
 0xfe7   : > { %v5005_v2 = vpop.f32.mrb[87].mxu1 }
 0xfe8   : > { %v4415_v19 = vadd.f32 %v5003_v10, %v4350_v4  ;;  %v5006_v61 = vadd.f32 %v5005_v2, %v5004_v1  ;;  %v4983_v60 = vpop.f32.mrb[80].mxu0 }
 0xfe9   : > { %v4984_v20 = vpop.f32.mrb[81].mxu0 }
 0xfea   : > { %v4431_v17 = vmul.f32 %v7993_v22, %v4415_v19  ;;  %v4418_v16 = vadd.f32 %v5006_v61, %v4353_v0  ;;  %v4985_v7 = vadd.f32 %v4984_v20, %v4983_v60  ;;  %v4986_v21 = vpop.f32.mrb[82].mxu0 }
 0xfeb   : > { %v4987_v31 = vpop.f32.mrb[83].mxu0 }
 0xfec   : > { %v4439_v35 = vadd.f32 %v4431_v17, %v8241_v36  ;;  %v4432_v11 = vmul.f32 %v7993_v22, %v4418_v16  ;;  %v4391_v30 = vadd.f32 %v4985_v7, %v4326_v26  ;;  %v4988_v57 = vadd.f32 %v4987_v31, %v4986_v21 }
 0xfee   : > { %4447 = vst [vmem:[%s8000_s13 + $0x30] sm:$0xff] %v4439_v35  ;;  %v4440_v62 = vadd.f32 %v4432_v11, %v8242_v34  ;;  %v4425_v23 = vmul.f32 %v7993_v22, %v4391_v30  ;;  %v4394_v5 = vadd.f32 %v4988_v57, %v4329_v59 }
 0xff0   : > { %4448 = vst [vmem:[%s8000_s13 + $0x38] sm:$0xff] %v4440_v62  ;;  %v4433_v15 = vadd.f32 %v4425_v23, %v8243_v53  ;;  %v4426_v47 = vmul.f32 %v7993_v22, %v4394_v5 }
 0xff2   : > { %4441 = vst [vmem:[%s8000_s13] sm:$0xff] %v4433_v15  ;;  %v4434_v38 = vadd.f32 %v4426_v47, %v8245_v14 }
 0xff4   : > { %4442 = vst [vmem:[%s8000_s13 + $0x8] sm:$0xff] %v4434_v38 }
 0xff5   : > { %6062 = shalt.err (!%p6059_p8)
}
 0xff6   : > { %s6063_s14 = scalar_lea.hbm %s8027_s20, 1024  ;;  %s6067_s0 = scalar_lea.hbm %s8244_s26, 2048 }
 0xff7   : > { %p6064_p4 = scmp.ne.s32.totalorder %s8027_s20, %s6063_s14  ;;  %p6068_p1 = scmp.lt.u32.totalorder %s8027_s20, %s8244_s26 }
 0xff8   : > { %p6069_p3 = scmp.lt.u32.totalorder %s6067_s0, %s6063_s14  ;;  %p6071_p6 = scmp.lt.u32.totalorder %s6063_s14, %s8027_s20 }
 0xff9   : > { %p6065_p12 = pnand %p6064_p4, %p8246_p10 }
 0xffa   : > { %p6070_p2 = por %p6069_p3, %p6068_p1 }
 0xffb   : > { %p6066_p13 = pneg %p6065_p12 }
 0xffc   : > { %p6072_p5 = por %p6071_p6, %p6070_p2 }
 0xffe   : > { %p6073_p9 = pnand %p6072_p5, %p6066_p13 }
0x1000   : > { %6076 = shalt.err (!%p6073_p9)
}
0x1001   : > { %s6163_s28 = smov 128   ;;  %s6164_s9 = smov 8  }
0x1002   : > { %5295 = dma.vmem_to_hbm [thread:$0]  (%p8246_p10), %s8029_s27, 1024, %s8027_s20, %s4450_s19, %s6163_s28, %s6163_s28, %s6164_s9  }
0x1003 PF: > { %s4478_s5 = sand.u32 1, %s6123_s29   ;;  %p8247_p0 = scmp.ne.s32.totalorder %s8153_s2, 0 }
0x1004   : > { %p8248_p7 = scmp.ge.s32.totalorder %s6135_s16, 2  ;;  %s4479_s17 = scalar_lea.sflag [#allocation4], %s4478_s5 }
0x1006   : > { %p5327_p11 = pnand %p8248_p7, %p8247_p0 }
0x1008   : > { %6118 = dma.done.wait (!%p5327_p11), %s4479_s17, 1024  }
0x1009   : > { %6120 = vsyncadd (!%p5327_p11), %s4479_s17, 4294966272  ;;  %p33_p8 = scmp.ge.s32.totalorder %s6440_s18, 4   ;;  %s8249_s29 = smov %s6127_s30 }
0x100a   : > { %s8250_s30 = smov %s6131_s15  ;;  %s8251_s15 = smov %s6452_s23 }
0x100b   : > { %s8252_s16 = smov %s6440_s18  ;;  %35 = sbr.rel (!%p33_p8) target bundleno = 22 (0x16), region = 162 }
0x1012   :  { %4484 = vsyncpa [#allocation3], 1 }
0x1013   :  { %4486 = vsyncpa [#allocation3 + $0x1], 1 }
0x1014   :  { %4487 = vsyncpa [#allocation6], 1 }
0x1015   :  { %4489 = vsyncpa [#allocation6 + $0x1], 1 }
0x1016   :  { %4490 = vsyncpa [#allocation9], 1 }
0x1017   :  { %4491 = vsyncpa [#allocation12], 1 }
0x1018   :  { %4492 = vsyncpa [#allocation15], 1 }
0x1019   :  { %4493 = vsyncpa [#allocation4], 1 }
0x101a   :  { %4495 = vsyncpa [#allocation4 + $0x1], 1 }

</bundles_post_ra>
